<compile_context>
chip_gen: v6e
topology: v6e:2x2x1
jax: 0.10.0
libtpu: 0.0.40
codegen_flags: <defaults>
</compile_context>

<pallas_src>
import jax
import jax.numpy as jnp
from jax.experimental import pallas as pl
from jax.experimental.pallas import tpu as pltpu

EMBED_DIM = 32          # cfg.embed_dim (synthetic choice)
SEQ_LEN = 20            # forced by fc1: 256 * (SEQ_LEN // 4) == 1280
C = 256                 # conv channel width
L_POOL = SEQ_LEN // 4   # 5
TB_DEFAULT = 128        # batch tile per grid step
TB_ALIGN = 16           # bf16 sublane packing -> keep batch tile % 16 == 0


def _cdiv(a, b):
    return -(-a // b)


def _round_up(x, m):
    return ((x + m - 1) // m) * m


# ---------------------------------------------------------------------------
# In-kernel helpers.  Activations are position-major: (L*TB, C) with row index
# l*TB + b, so a shift by one sequence position is a shift by TB rows, which
# is sublane-tile aligned (TB % 16 == 0) -> pure aligned block moves.
# ---------------------------------------------------------------------------
def _conv_relu_k3(x_bf, w_ref, b_ref, tb):
    """Fused 3-tap 'same' conv + bias + ReLU as one MXU dot.

    x_bf : (n, Cin) bf16, position-major (n = L*tb)
    w_ref: (3*Cin, Cout) bf16, rows ordered [k=0 (prev) | k=1 (cur) | k=2 (next)]
    b_ref: (1, Cout) f32
    """
    n, cin = x_bf.shape
    pad = jnp.zeros((tb, cin), x_bf.dtype)
    xp = jnp.concatenate([pad, x_bf, pad], axis=0)            # (n + 2*tb, Cin)
    # prev[i] = x[i - tb], cur[i] = x[i], next[i] = x[i + tb]
    x_cat = jnp.concatenate(
        [xp[:n], x_bf, xp[2 * tb:]], axis=1)                  # (n, 3*Cin) bf16
    acc = jnp.dot(x_cat, w_ref[...], preferred_element_type=jnp.float32)
    return jax.nn.relu((acc + b_ref[...]).astype(jnp.bfloat16))


def _maxpool2(x, tb):
    # MaxPool1d(2) along the sequence axis of a position-major (L*TB, C) tile.
    n, c = x.shape
    half = n // 2
    y = x.reshape(half // tb, 2 * tb, c)                       # leading-dim split only
    return jnp.maximum(y[:, :tb, :], y[:, tb:, :]).reshape(half, c)


# ---------------------------------------------------------------------------
# Kernel: full forward pass for one tile of TB batch elements.
# ---------------------------------------------------------------------------
def cnn_classifier_kernel(x_ref,
                          w1_ref, b1_ref, w2_ref, b2_ref, w3_ref, b3_ref,
                          fc1_w_ref, fc1_b_ref, fc2_w_ref, fc2_b_ref,
                          fc3_w_ref, fc3_b_ref,
                          out_ref):
    seq, tb, emb = x_ref.shape
    x = x_ref[...].reshape(seq * tb, emb)                       # (20*TB, 32) bf16

    h = _conv_relu_k3(x, w1_ref, b1_ref, tb)                    # (20*TB, 256) bf16
    h = _conv_relu_k3(h, w2_ref, b2_ref, tb)                    # (20*TB, 256) bf16
    h = _maxpool2(h, tb)                                        # (10*TB, 256) bf16
    h = _conv_relu_k3(h, w3_ref, b3_ref, tb)                    # (10*TB, 256) bf16
    h = _maxpool2(h, tb)                                        # ( 5*TB, 256) bf16

    # fc1 over the flattened features as ONE dot: lane-concat the 5 pooled
    # positions into (TB, 1280) (column index l*256 + c); fc1_w was
    # pre-permuted host-side to the same row order.
    h_cat = jnp.concatenate(
        [h[l * tb:(l + 1) * tb, :] for l in range(L_POOL)], axis=1)  # (TB, 1280)
    z = jax.nn.relu(
        (jnp.dot(h_cat, fc1_w_ref[...], preferred_element_type=jnp.float32)
         + fc1_b_ref[...]).astype(jnp.bfloat16))                 # (TB, 256) bf16
    z = jax.nn.relu(
        (jnp.dot(z, fc2_w_ref[...], preferred_element_type=jnp.float32)
         + fc2_b_ref[...]).astype(jnp.bfloat16))                 # (TB, 128) bf16

    # fc3 (128 -> 1), lane-dense: bf16 (1,128) @ (128,TB) -> (1, TB).
    logits = jnp.dot(fc3_w_ref[...], z.T,
                     preferred_element_type=jnp.float32) + fc3_b_ref[...]
    out_ref[...] = jax.nn.sigmoid(logits).reshape(1, 1, tb)


# ---------------------------------------------------------------------------
# Wrapper
# ---------------------------------------------------------------------------
def _full_spec(shape):
    n = len(shape)
    return pl.BlockSpec(shape, lambda i, _n=n: (0,) * _n)


def cnn_classifier(x_ncl, kparams, tb=TB_DEFAULT):
    """x_ncl: (B, EMBED_DIM, SEQ_LEN) float32, PyTorch NCL layout."""
    b_dim = x_ncl.shape[0]

    # Pick the batch tile: prefer TB_DEFAULT, but for multi-tile batches
    # rebalance to an EVEN tile count (v7x: grid shards across 2 TensorCores)
    # with minimal padding.  Keep tb a multiple of 16 (bf16 sublane packing).
    tb = min(tb, _round_up(b_dim, TB_ALIGN))
    tb = _round_up(tb, TB_ALIGN)
    num_tiles = _cdiv(b_dim, tb)
    if num_tiles > 1:
        num_tiles = _round_up(num_tiles, 2)
        tb = _round_up(_cdiv(b_dim, num_tiles), TB_ALIGN)
        num_tiles = _cdiv(b_dim, tb)
    b_pad = num_tiles * tb

    # (B, E, L) -> (L, B, E) bf16: a batch tile is one contiguous (L, TB, E)
    # block and the per-tile input DMA is halved vs f32.
    x_lbe = jnp.transpose(x_ncl, (2, 0, 1)).astype(jnp.bfloat16)
    if b_pad != b_dim:
        x_lbe = jnp.pad(x_lbe, ((0, 0), (0, b_pad - b_dim), (0, 0)))

    (w1, b1, w2, b2, w3, b3,
     fc1_w, fc1_b, fc2_w, fc2_b, fc3_w, fc3_b) = kparams

    in_specs = [
        pl.BlockSpec((SEQ_LEN, tb, EMBED_DIM), lambda i: (0, i, 0)),
        _full_spec(w1.shape), _full_spec(b1.shape),
        _full_spec(w2.shape), _full_spec(b2.shape),
        _full_spec(w3.shape), _full_spec(b3.shape),
        _full_spec(fc1_w.shape), _full_spec(fc1_b.shape),
        _full_spec(fc2_w.shape), _full_spec(fc2_b.shape),
        _full_spec(fc3_w.shape), _full_spec(fc3_b.shape),
    ]

    out = pl.pallas_call(
        cnn_classifier_kernel,
        out_shape=jax.ShapeDtypeStruct((num_tiles, 1, tb), jnp.float32),
        grid=(num_tiles,),
        in_specs=in_specs,
        out_specs=pl.BlockSpec((1, 1, tb), lambda i: (i, 0, 0)),
        compiler_params=pltpu.CompilerParams(
            dimension_semantics=("parallel",),
            # Lift v5e's 16 MiB scoped default; matches the v6e/v7x default and
            # leaves headroom on v7x's 64 MiB/TC physical VMEM.
            vmem_limit_bytes=32 * 1024 * 1024),
    )(x_lbe, w1, b1, w2, b2, w3, b3,
      fc1_w, fc1_b, fc2_w, fc2_b, fc3_w, fc3_b)

    # torch.sigmoid(...).squeeze(): (B, 1) -> (B,).
    # NOTE: for B == 1 PyTorch's .squeeze() would return a 0-d tensor; we
    # return shape (1,) instead (minor API mismatch, B > 1 assumed).
    return out.reshape(b_pad)[:b_dim]


# ---------------------------------------------------------------------------
# Deterministic parameter construction (PyTorch layouts) + kernel layouts
# ---------------------------------------------------------------------------
def make_torch_params(key):
    ks = jax.random.split(key, 12)

    def u(k, shape, fan_in):
        bound = 1.0 / (fan_in ** 0.5)
        return jax.random.uniform(k, shape, jnp.float32, -bound, bound)

    # PyTorch layouts: Conv1d weight (C_out, C_in, K); Linear weight (out, in).
    return (u(ks[0], (C, EMBED_DIM, 3), EMBED_DIM * 3),  # conv1 w
            u(ks[1], (C,), EMBED_DIM * 3),               # conv1 b
            u(ks[2], (C, C, 3), C * 3),                  # conv2 w
            u(ks[3], (C,), C * 3),                       # conv2 b
            u(ks[4], (C, C, 3), C * 3),                  # conv3 w
            u(ks[5], (C,), C * 3),                       # conv3 b
            u(ks[6], (256, 1280), 1280),                 # fc1 w
            u(ks[7], (256,), 1280),                      # fc1 b
            u(ks[8], (128, 256), 256),                   # fc2 w
            u(ks[9], (128,), 256),                       # fc2 b
            u(ks[10], (1, 128), 128),                    # fc3 w
            u(ks[11], (1,), 128))                        # fc3 b


def to_kernel_params(tp):
    (w1, b1, w2, b2, w3, b3,
     fc1_w, fc1_b, fc2_w, fc2_b, fc3_w, fc3_b) = tp

    def fuse_conv_w(w):
        # (Cout, Cin, 3) -> (3*Cin, Cout), row index k*Cin + cin: matches the
        # kernel's x_cat column order [prev | cur | next] (k=0 is the l-1 tap).
        cout = w.shape[0]
        return jnp.transpose(w, (2, 1, 0)).reshape(-1, cout).astype(jnp.bfloat16)

    # fc1 input index in PyTorch is c*L_pool + l; kernel consumes l*256 + c.
    fc1_wk = jnp.transpose(fc1_w.reshape(256, C, L_POOL), (2, 1, 0)) \
               .reshape(L_POOL * C, 256).astype(jnp.bfloat16)        # (1280, 256)

    return (fuse_conv_w(w1), b1.reshape(1, C),
            fuse_conv_w(w2), b2.reshape(1, C),
            fuse_conv_w(w3), b3.reshape(1, C),
            fc1_wk, fc1_b.reshape(1, 256),
            fc2_w.T.astype(jnp.bfloat16), fc2_b.reshape(1, 128),
            fc3_w.astype(jnp.bfloat16), fc3_b.reshape(1, 1))


# ---------------------------------------------------------------------------
# Pure-JAX f32 reference of the PyTorch forward (for a tolerance check).
# ---------------------------------------------------------------------------
def reference_forward(x_ncl, tp):
    (w1, b1, w2, b2, w3, b3,
     fc1_w, fc1_b, fc2_w, fc2_b, fc3_w, fc3_b) = tp

    def conv1d(x, w, b):
        y = jax.lax.conv_general_dilated(
            x, w, window_strides=(1,), padding=((1, 1),),
            dimension_numbers=("NCH", "OIH", "NCH"))
        return y + b[None, :, None]

    def maxpool2(x):
        bb, cc, ll = x.shape
        return x.reshape(bb, cc, ll // 2, 2).max(axis=-1)

    h = jax.nn.relu(conv1d(x_ncl, w1, b1))
    h = jax.nn.relu(conv1d(h, w2, b2))
    h = maxpool2(h)
    h = jax.nn.relu(conv1d(h, w3, b3))
    h = maxpool2(h)
    feat = h.reshape(h.shape[0], -1)                       # (B, 1280), c*L_pool + l
    feat = jax.nn.relu(feat @ fc1_w.T + fc1_b)
    feat = jax.nn.relu(feat @ fc2_w.T + fc2_b)
    return jax.nn.sigmoid(feat @ fc3_w.T + fc3_b).reshape(-1)


if __name__ == "__main__":
    key = jax.random.PRNGKey(0)
    xkey, pkey, xkey2 = jax.random.split(key, 3)
    torch_params = make_torch_params(pkey)
    kparams = to_kernel_params(torch_params)

    # Small PyTorch-style NCL input: (batch=2, cfg.embed_dim=32, seq_len=20).
    x_small = jax.random.normal(xkey, (2, EMBED_DIM, SEQ_LEN), jnp.float32)
    probs_small = cnn_classifier(x_small, kparams)
    jax.block_until_ready(probs_small)
    assert probs_small.shape == (2,)
    ref_small = reference_forward(x_small, torch_params)
    assert float(jnp.max(jnp.abs(probs_small - ref_small))) < 5e-2  # bf16 tolerance

    # Larger batch: exercises multi-tile grid (even tile count) and padding.
    x_large = jax.random.normal(xkey2, (160, EMBED_DIM, SEQ_LEN), jnp.float32)
    probs_large = cnn_classifier(x_large, kparams)
    jax.block_until_ready(probs_large)
    assert probs_large.shape == (160,)
    ref_large = reference_forward(x_large, torch_params)
    assert float(jnp.max(jnp.abs(probs_large - ref_large))) < 5e-2  # bf16 tolerance

    print("KERNEL_OK")
</pallas_src>

<mosaic_0001>
module attributes {stable_mosaic.version = 11 : i64} {
  func.func @cnn_classifier_kernel(%arg0: i32, %arg1: memref<20x16x32xbf16, #tpu.memory_space<vmem>>, %arg2: memref<96x256xbf16, #tpu.memory_space<vmem>>, %arg3: memref<1x256xf32, #tpu.memory_space<vmem>>, %arg4: memref<768x256xbf16, #tpu.memory_space<vmem>>, %arg5: memref<1x256xf32, #tpu.memory_space<vmem>>, %arg6: memref<768x256xbf16, #tpu.memory_space<vmem>>, %arg7: memref<1x256xf32, #tpu.memory_space<vmem>>, %arg8: memref<1280x256xbf16, #tpu.memory_space<vmem>>, %arg9: memref<1x256xf32, #tpu.memory_space<vmem>>, %arg10: memref<256x128xbf16, #tpu.memory_space<vmem>>, %arg11: memref<1x128xf32, #tpu.memory_space<vmem>>, %arg12: memref<1x128xbf16, #tpu.memory_space<vmem>>, %arg13: memref<1x1xf32, #tpu.memory_space<vmem>>, %arg14: memref<1x1x16xf32, #tpu.memory_space<vmem>>) attributes {dimension_semantics = [#tpu.dimension_semantics<parallel>], iteration_bounds = array<i64: 1>, scalar_prefetch = 0 : i64, scratch_operands = 0 : i64, tpu.core_type = #tpu.core_type<tc>, window_params = [{transform_indices = @transform_0, window_bounds = array<i64: 20, 16, 32>}, {pipeline_mode = #tpu.pipeline_mode<synchronous>, transform_indices = @transform_1, window_bounds = array<i64: 96, 256>}, {pipeline_mode = #tpu.pipeline_mode<synchronous>, transform_indices = @transform_2, window_bounds = array<i64: 1, 256>}, {pipeline_mode = #tpu.pipeline_mode<synchronous>, transform_indices = @transform_3, window_bounds = array<i64: 768, 256>}, {pipeline_mode = #tpu.pipeline_mode<synchronous>, transform_indices = @transform_4, window_bounds = array<i64: 1, 256>}, {pipeline_mode = #tpu.pipeline_mode<synchronous>, transform_indices = @transform_5, window_bounds = array<i64: 768, 256>}, {pipeline_mode = #tpu.pipeline_mode<synchronous>, transform_indices = @transform_6, window_bounds = array<i64: 1, 256>}, {pipeline_mode = #tpu.pipeline_mode<synchronous>, transform_indices = @transform_7, window_bounds = array<i64: 1280, 256>}, {pipeline_mode = #tpu.pipeline_mode<synchronous>, transform_indices = @transform_8, window_bounds = array<i64: 1, 256>}, {pipeline_mode = #tpu.pipeline_mode<synchronous>, transform_indices = @transform_9, window_bounds = array<i64: 256, 128>}, {pipeline_mode = #tpu.pipeline_mode<synchronous>, transform_indices = @transform_10, window_bounds = array<i64: 1, 128>}, {pipeline_mode = #tpu.pipeline_mode<synchronous>, transform_indices = @transform_11, window_bounds = array<i64: 1, 128>}, {pipeline_mode = #tpu.pipeline_mode<synchronous>, transform_indices = @transform_12, window_bounds = array<i64: 1, 1>}, {transform_indices = @transform_13, window_bounds = array<i64: 1, 1, 16>}]} {
    %c0 = arith.constant 0 : index
    %c0_0 = arith.constant 0 : index
    %c0_1 = arith.constant 0 : index
    %0 = vector.load %arg1[%c0, %c0_0, %c0_1] : memref<20x16x32xbf16, #tpu.memory_space<vmem>>, vector<20x16x32xbf16>
    %1 = vector.shape_cast %0 : vector<20x16x32xbf16> to vector<320x32xbf16>
    %cst = arith.constant 0.000000e+00 : bf16
    %2 = vector.broadcast %cst : bf16 to vector<16x32xbf16>
    %3 = tpu.concatenate %2, %1, %2 in 0 : vector<16x32xbf16>, vector<320x32xbf16>, vector<16x32xbf16> -> vector<352x32xbf16>
    %4 = vector.extract_strided_slice %3 {offsets = [0, 0], sizes = [320, 32], strides = [1, 1]} : vector<352x32xbf16> to vector<320x32xbf16>
    %5 = vector.extract_strided_slice %3 {offsets = [32, 0], sizes = [320, 32], strides = [1, 1]} : vector<352x32xbf16> to vector<320x32xbf16>
    %6 = tpu.concatenate %4, %1, %5 in 1 : vector<320x32xbf16>, vector<320x32xbf16>, vector<320x32xbf16> -> vector<320x96xbf16>
    %c0_2 = arith.constant 0 : index
    %c0_3 = arith.constant 0 : index
    %7 = vector.load %arg2[%c0_2, %c0_3] : memref<96x256xbf16, #tpu.memory_space<vmem>>, vector<96x256xbf16>
    %cst_4 = arith.constant dense<0.000000e+00> : vector<320x256xf32>
    %8 = tpu.matmul %6, %7, %cst_4 {dimension_numbers = #tpu.dot_dimension_numbers<[1], [0], [0], [1], [0, 0, 1, 1], [], []>} : vector<320x96xbf16>, vector<96x256xbf16>, vector<320x256xf32> -> vector<320x256xf32>
    %c0_5 = arith.constant 0 : index
    %c0_6 = arith.constant 0 : index
    %9 = vector.load %arg3[%c0_5, %c0_6] : memref<1x256xf32, #tpu.memory_space<vmem>>, vector<1x256xf32>
    %10 = vector.broadcast %9 : vector<1x256xf32> to vector<320x256xf32>
    %11 = arith.addf %8, %10 : vector<320x256xf32>
    %12 = arith.truncf %11 : vector<320x256xf32> to vector<320x256xbf16>
    %cst_7 = arith.constant 0.000000e+00 : bf16
    %13 = vector.broadcast %cst_7 : bf16 to vector<320x256xbf16>
    %14 = arith.maximumf %12, %13 : vector<320x256xbf16>
    %cst_8 = arith.constant 0.000000e+00 : bf16
    %15 = vector.broadcast %cst_8 : bf16 to vector<16x256xbf16>
    %16 = tpu.concatenate %15, %14, %15 in 0 : vector<16x256xbf16>, vector<320x256xbf16>, vector<16x256xbf16> -> vector<352x256xbf16>
    %17 = vector.extract_strided_slice %16 {offsets = [0, 0], sizes = [320, 256], strides = [1, 1]} : vector<352x256xbf16> to vector<320x256xbf16>
    %18 = vector.extract_strided_slice %16 {offsets = [32, 0], sizes = [320, 256], strides = [1, 1]} : vector<352x256xbf16> to vector<320x256xbf16>
    %19 = tpu.concatenate %17, %14, %18 in 1 : vector<320x256xbf16>, vector<320x256xbf16>, vector<320x256xbf16> -> vector<320x768xbf16>
    %c0_9 = arith.constant 0 : index
    %c0_10 = arith.constant 0 : index
    %20 = vector.load %arg4[%c0_9, %c0_10] : memref<768x256xbf16, #tpu.memory_space<vmem>>, vector<768x256xbf16>
    %cst_11 = arith.constant dense<0.000000e+00> : vector<320x256xf32>
    %21 = tpu.matmul %19, %20, %cst_11 {dimension_numbers = #tpu.dot_dimension_numbers<[1], [0], [0], [1], [0, 0, 1, 1], [], []>} : vector<320x768xbf16>, vector<768x256xbf16>, vector<320x256xf32> -> vector<320x256xf32>
    %c0_12 = arith.constant 0 : index
    %c0_13 = arith.constant 0 : index
    %22 = vector.load %arg5[%c0_12, %c0_13] : memref<1x256xf32, #tpu.memory_space<vmem>>, vector<1x256xf32>
    %23 = vector.broadcast %22 : vector<1x256xf32> to vector<320x256xf32>
    %24 = arith.addf %21, %23 : vector<320x256xf32>
    %25 = arith.truncf %24 : vector<320x256xf32> to vector<320x256xbf16>
    %cst_14 = arith.constant 0.000000e+00 : bf16
    %26 = vector.broadcast %cst_14 : bf16 to vector<320x256xbf16>
    %27 = arith.maximumf %25, %26 : vector<320x256xbf16>
    %28 = vector.shape_cast %27 : vector<320x256xbf16> to vector<10x32x256xbf16>
    %29 = vector.extract_strided_slice %28 {offsets = [0, 0, 0], sizes = [10, 16, 256], strides = [1, 1, 1]} : vector<10x32x256xbf16> to vector<10x16x256xbf16>
    %30 = vector.extract_strided_slice %28 {offsets = [0, 16, 0], sizes = [10, 16, 256], strides = [1, 1, 1]} : vector<10x32x256xbf16> to vector<10x16x256xbf16>
    %31 = arith.maximumf %29, %30 : vector<10x16x256xbf16>
    %32 = vector.shape_cast %31 : vector<10x16x256xbf16> to vector<160x256xbf16>
    %cst_15 = arith.constant 0.000000e+00 : bf16
    %33 = vector.broadcast %cst_15 : bf16 to vector<16x256xbf16>
    %34 = tpu.concatenate %33, %32, %33 in 0 : vector<16x256xbf16>, vector<160x256xbf16>, vector<16x256xbf16> -> vector<192x256xbf16>
    %35 = vector.extract_strided_slice %34 {offsets = [0, 0], sizes = [160, 256], strides = [1, 1]} : vector<192x256xbf16> to vector<160x256xbf16>
    %36 = vector.extract_strided_slice %34 {offsets = [32, 0], sizes = [160, 256], strides = [1, 1]} : vector<192x256xbf16> to vector<160x256xbf16>
    %37 = tpu.concatenate %35, %32, %36 in 1 : vector<160x256xbf16>, vector<160x256xbf16>, vector<160x256xbf16> -> vector<160x768xbf16>
    %c0_16 = arith.constant 0 : index
    %c0_17 = arith.constant 0 : index
    %38 = vector.load %arg6[%c0_16, %c0_17] : memref<768x256xbf16, #tpu.memory_space<vmem>>, vector<768x256xbf16>
    %cst_18 = arith.constant dense<0.000000e+00> : vector<160x256xf32>
    %39 = tpu.matmul %37, %38, %cst_18 {dimension_numbers = #tpu.dot_dimension_numbers<[1], [0], [0], [1], [0, 0, 1, 1], [], []>} : vector<160x768xbf16>, vector<768x256xbf16>, vector<160x256xf32> -> vector<160x256xf32>
    %c0_19 = arith.constant 0 : index
    %c0_20 = arith.constant 0 : index
    %40 = vector.load %arg7[%c0_19, %c0_20] : memref<1x256xf32, #tpu.memory_space<vmem>>, vector<1x256xf32>
    %41 = vector.broadcast %40 : vector<1x256xf32> to vector<160x256xf32>
    %42 = arith.addf %39, %41 : vector<160x256xf32>
    %43 = arith.truncf %42 : vector<160x256xf32> to vector<160x256xbf16>
    %cst_21 = arith.constant 0.000000e+00 : bf16
    %44 = vector.broadcast %cst_21 : bf16 to vector<160x256xbf16>
    %45 = arith.maximumf %43, %44 : vector<160x256xbf16>
    %46 = vector.shape_cast %45 : vector<160x256xbf16> to vector<5x32x256xbf16>
    %47 = vector.extract_strided_slice %46 {offsets = [0, 0, 0], sizes = [5, 16, 256], strides = [1, 1, 1]} : vector<5x32x256xbf16> to vector<5x16x256xbf16>
    %48 = vector.extract_strided_slice %46 {offsets = [0, 16, 0], sizes = [5, 16, 256], strides = [1, 1, 1]} : vector<5x32x256xbf16> to vector<5x16x256xbf16>
    %49 = arith.maximumf %47, %48 : vector<5x16x256xbf16>
    %50 = vector.shape_cast %49 : vector<5x16x256xbf16> to vector<80x256xbf16>
    %51 = vector.extract_strided_slice %50 {offsets = [0, 0], sizes = [16, 256], strides = [1, 1]} : vector<80x256xbf16> to vector<16x256xbf16>
    %52 = vector.extract_strided_slice %50 {offsets = [16, 0], sizes = [16, 256], strides = [1, 1]} : vector<80x256xbf16> to vector<16x256xbf16>
    %53 = vector.extract_strided_slice %50 {offsets = [32, 0], sizes = [16, 256], strides = [1, 1]} : vector<80x256xbf16> to vector<16x256xbf16>
    %54 = vector.extract_strided_slice %50 {offsets = [48, 0], sizes = [16, 256], strides = [1, 1]} : vector<80x256xbf16> to vector<16x256xbf16>
    %55 = vector.extract_strided_slice %50 {offsets = [64, 0], sizes = [16, 256], strides = [1, 1]} : vector<80x256xbf16> to vector<16x256xbf16>
    %56 = tpu.concatenate %51, %52, %53, %54, %55 in 1 : vector<16x256xbf16>, vector<16x256xbf16>, vector<16x256xbf16>, vector<16x256xbf16>, vector<16x256xbf16> -> vector<16x1280xbf16>
    %c0_22 = arith.constant 0 : index
    %c0_23 = arith.constant 0 : index
    %57 = vector.load %arg8[%c0_22, %c0_23] : memref<1280x256xbf16, #tpu.memory_space<vmem>>, vector<1280x256xbf16>
    %cst_24 = arith.constant dense<0.000000e+00> : vector<16x256xf32>
    %58 = tpu.matmul %56, %57, %cst_24 {dimension_numbers = #tpu.dot_dimension_numbers<[1], [0], [0], [1], [0, 0, 1, 1], [], []>} : vector<16x1280xbf16>, vector<1280x256xbf16>, vector<16x256xf32> -> vector<16x256xf32>
    %c0_25 = arith.constant 0 : index
    %c0_26 = arith.constant 0 : index
    %59 = vector.load %arg9[%c0_25, %c0_26] : memref<1x256xf32, #tpu.memory_space<vmem>>, vector<1x256xf32>
    %60 = vector.broadcast %59 : vector<1x256xf32> to vector<16x256xf32>
    %61 = arith.addf %58, %60 : vector<16x256xf32>
    %62 = arith.truncf %61 : vector<16x256xf32> to vector<16x256xbf16>
    %cst_27 = arith.constant 0.000000e+00 : bf16
    %63 = vector.broadcast %cst_27 : bf16 to vector<16x256xbf16>
    %64 = arith.maximumf %62, %63 : vector<16x256xbf16>
    %c0_28 = arith.constant 0 : index
    %c0_29 = arith.constant 0 : index
    %65 = vector.load %arg10[%c0_28, %c0_29] : memref<256x128xbf16, #tpu.memory_space<vmem>>, vector<256x128xbf16>
    %cst_30 = arith.constant dense<0.000000e+00> : vector<16x128xf32>
    %66 = tpu.matmul %64, %65, %cst_30 {dimension_numbers = #tpu.dot_dimension_numbers<[1], [0], [0], [1], [0, 0, 1, 1], [], []>} : vector<16x256xbf16>, vector<256x128xbf16>, vector<16x128xf32> -> vector<16x128xf32>
    %c0_31 = arith.constant 0 : index
    %c0_32 = arith.constant 0 : index
    %67 = vector.load %arg11[%c0_31, %c0_32] : memref<1x128xf32, #tpu.memory_space<vmem>>, vector<1x128xf32>
    %68 = vector.broadcast %67 : vector<1x128xf32> to vector<16x128xf32>
    %69 = arith.addf %66, %68 : vector<16x128xf32>
    %70 = arith.truncf %69 : vector<16x128xf32> to vector<16x128xbf16>
    %cst_33 = arith.constant 0.000000e+00 : bf16
    %71 = vector.broadcast %cst_33 : bf16 to vector<16x128xbf16>
    %72 = arith.maximumf %70, %71 : vector<16x128xbf16>
    %c0_34 = arith.constant 0 : index
    %c0_35 = arith.constant 0 : index
    %73 = vector.load %arg12[%c0_34, %c0_35] : memref<1x128xbf16, #tpu.memory_space<vmem>>, vector<1x128xbf16>
    %74 = tpu.transpose %72, [1, 0] : vector<16x128xbf16> -> vector<128x16xbf16>
    %cst_36 = arith.constant dense<0.000000e+00> : vector<1x16xf32>
    %75 = tpu.matmul %73, %74, %cst_36 {dimension_numbers = #tpu.dot_dimension_numbers<[1], [0], [0], [1], [0, 0, 1, 1], [], []>} : vector<1x128xbf16>, vector<128x16xbf16>, vector<1x16xf32> -> vector<1x16xf32>
    %c0_37 = arith.constant 0 : index
    %c0_38 = arith.constant 0 : index
    %76 = vector.load %arg13[%c0_37, %c0_38] : memref<1x1xf32, #tpu.memory_space<vmem>>, vector<1x1xf32>
    %77 = vector.broadcast %76 : vector<1x1xf32> to vector<1x16xf32>
    %78 = arith.addf %75, %77 : vector<1x16xf32>
    %79 = arith.negf %78 : vector<1x16xf32>
    %80 = math.exp %79 : vector<1x16xf32>
    %cst_39 = arith.constant 1.000000e+00 : f32
    %81 = vector.broadcast %cst_39 : f32 to vector<1x16xf32>
    %82 = arith.addf %81, %80 : vector<1x16xf32>
    %83 = arith.divf %81, %82 : vector<1x16xf32>
    %84 = vector.shape_cast %83 : vector<1x16xf32> to vector<1x1x16xf32>
    %c0_40 = arith.constant 0 : index
    %c0_41 = arith.constant 0 : index
    %c0_42 = arith.constant 0 : index
    %85 = vector.load %arg14[%c0_40, %c0_41, %c0_42] : memref<1x1x16xf32, #tpu.memory_space<vmem>>, vector<1x1x16xf32>
    tpu.vector_store %arg14[%c0_40, %c0_41, %c0_42], %84 {strides = array<i32>} : memref<1x1x16xf32, #tpu.memory_space<vmem>>, vector<1x1x16xf32>,
    return
  }
  func.func @transform_0(%arg0: i32) -> (i32, i32, i32) {
    %c0_i32 = arith.constant 0 : i32
    %c0_i32_0 = arith.constant 0 : i32
    %c0_i32_1 = arith.constant 0 : i32
    return %c0_i32, %arg0, %c0_i32_0 : i32, i32, i32
  }
  func.func @transform_1(%arg0: i32) -> (i32, i32) {
    %c0_i32 = arith.constant 0 : i32
    %c0_i32_0 = arith.constant 0 : i32
    %c0_i32_1 = arith.constant 0 : i32
    return %c0_i32, %c0_i32_0 : i32, i32
  }
  func.func @transform_2(%arg0: i32) -> (i32, i32) {
    %c0_i32 = arith.constant 0 : i32
    %c0_i32_0 = arith.constant 0 : i32
    %c0_i32_1 = arith.constant 0 : i32
    return %c0_i32, %c0_i32_0 : i32, i32
  }
  func.func @transform_3(%arg0: i32) -> (i32, i32) {
    %c0_i32 = arith.constant 0 : i32
    %c0_i32_0 = arith.constant 0 : i32
    %c0_i32_1 = arith.constant 0 : i32
    return %c0_i32, %c0_i32_0 : i32, i32
  }
  func.func @transform_4(%arg0: i32) -> (i32, i32) {
    %c0_i32 = arith.constant 0 : i32
    %c0_i32_0 = arith.constant 0 : i32
    %c0_i32_1 = arith.constant 0 : i32
    return %c0_i32, %c0_i32_0 : i32, i32
  }
  func.func @transform_5(%arg0: i32) -> (i32, i32) {
    %c0_i32 = arith.constant 0 : i32
    %c0_i32_0 = arith.constant 0 : i32
    %c0_i32_1 = arith.constant 0 : i32
    return %c0_i32, %c0_i32_0 : i32, i32
  }
  func.func @transform_6(%arg0: i32) -> (i32, i32) {
    %c0_i32 = arith.constant 0 : i32
    %c0_i32_0 = arith.constant 0 : i32
    %c0_i32_1 = arith.constant 0 : i32
    return %c0_i32, %c0_i32_0 : i32, i32
  }
  func.func @transform_7(%arg0: i32) -> (i32, i32) {
    %c0_i32 = arith.constant 0 : i32
    %c0_i32_0 = arith.constant 0 : i32
    %c0_i32_1 = arith.constant 0 : i32
    return %c0_i32, %c0_i32_0 : i32, i32
  }
  func.func @transform_8(%arg0: i32) -> (i32, i32) {
    %c0_i32 = arith.constant 0 : i32
    %c0_i32_0 = arith.constant 0 : i32
    %c0_i32_1 = arith.constant 0 : i32
    return %c0_i32, %c0_i32_0 : i32, i32
  }
  func.func @transform_9(%arg0: i32) -> (i32, i32) {
    %c0_i32 = arith.constant 0 : i32
    %c0_i32_0 = arith.constant 0 : i32
    %c0_i32_1 = arith.constant 0 : i32
    return %c0_i32, %c0_i32_0 : i32, i32
  }
  func.func @transform_10(%arg0: i32) -> (i32, i32) {
    %c0_i32 = arith.constant 0 : i32
    %c0_i32_0 = arith.constant 0 : i32
    %c0_i32_1 = arith.constant 0 : i32
    return %c0_i32, %c0_i32_0 : i32, i32
  }
  func.func @transform_11(%arg0: i32) -> (i32, i32) {
    %c0_i32 = arith.constant 0 : i32
    %c0_i32_0 = arith.constant 0 : i32
    %c0_i32_1 = arith.constant 0 : i32
    return %c0_i32, %c0_i32_0 : i32, i32
  }
  func.func @transform_12(%arg0: i32) -> (i32, i32) {
    %c0_i32 = arith.constant 0 : i32
    %c0_i32_0 = arith.constant 0 : i32
    %c0_i32_1 = arith.constant 0 : i32
    return %c0_i32, %c0_i32_0 : i32, i32
  }
  func.func @transform_13(%arg0: i32) -> (i32, i32, i32) {
    %c0_i32 = arith.constant 0 : i32
    %c0_i32_0 = arith.constant 0 : i32
    %c0_i32_1 = arith.constant 0 : i32
    return %arg0, %c0_i32, %c0_i32_0 : i32, i32, i32
  }
}

</mosaic_0001>

<bundles_post_ra>
// kernel: tpu_custom_call.1
= control target key start
LH: loop header
LB: loop body
LE: loop exit
PB: predicated region body
PF: predicated region fallthrough
CT: control target
= control target key end

     0   :  { %s7585_s0 = inlined_call_operand.hbm [shape: bf16[20,16,32], index: 0, kind: input, shape index: {}]   ;;  %s7586_s1 = inlined_call_operand.hbm [shape: bf16[96,256], index: 1, kind: input, shape index: {}]   ;;  %s7587_s2 = inlined_call_operand.vmem [shape: f32[1,256], index: 2, kind: input, shape index: {}]   ;;  %s7588_s3 = inlined_call_operand.hbm [shape: bf16[768,256], index: 3, kind: input, shape index: {}]   ;;  %s7589_s4 = inlined_call_operand.vmem [shape: f32[1,256], index: 4, kind: input, shape index: {}]   ;;  %s7590_s5 = inlined_call_operand.hbm [shape: bf16[768,256], index: 5, kind: input, shape index: {}]   ;;  %s7591_s6 = inlined_call_operand.vmem [shape: f32[1,256], index: 6, kind: input, shape index: {}]   ;;  %s7592_s7 = inlined_call_operand.hbm [shape: bf16[1280,256], index: 7, kind: input, shape index: {}]   ;;  %s7593_s8 = inlined_call_operand.vmem [shape: f32[1,256], index: 8, kind: input, shape index: {}]   ;;  %s7594_s9 = inlined_call_operand.hbm [shape: bf16[256,128], index: 9, kind: input, shape index: {}]   ;;  %s7595_s10 = inlined_call_operand.vmem [shape: f32[1,128], index: 10, kind: input, shape index: {}]   ;;  %s7596_s11 = inlined_call_operand.vmem [shape: bf16[1,128], index: 11, kind: input, shape index: {}]   ;;  %s7597_s12 = inlined_call_operand.<no memory space> [shape: f32[1,1], index: 12, kind: input, shape index: {}]   ;;  %s7598_s13 = inlined_call_operand.hbm [shape: f32[1,1,16], index: 13, kind: output, shape index: {}]  }
   0x1   :  { %v18_v0 = vstv %s7597_s12 }
   0x2   :  { %19 = vst [vmem:[#allocation2] sm:$0x1] %v18_v0 }
   0x3   :  { %20 = vsyncpa [#allocation4], 0 }
   0x4   :  { %21 = vsyncpa [#allocation7], 0 }
   0x5   :  { %22 = vsyncpa [#allocation10], 0 }
   0x6   :  { %23 = vsyncpa [#allocation13], 0 }
   0x7   :  { %24 = vsyncpa [#allocation5], 0  ;;  %s5981_s27 = smov [#allocation6]  }
   0x8   :  { %s42_s28 = sshll.u32 %s5981_s27, 4  ;;  %s43_s28 = int_to_ptr.vmem [resolvable:$true] %s42_s28 }
   0x9   :  { %s5839_s29 = scalar_lea.vmem %s43_s28, 1536  ;;  %p5844_p1 = scmp.lt.s32.totalorder %s43_s28, %s43_s28 }
   0xa   :  { %p5840_p0 = scmp.ne.s32.totalorder %s43_s28, %s5839_s29  ;;  %p5845_p2 = scmp.lt.s32.totalorder %s5839_s29, %s5839_s29 }
   0xc   :  { %p5846_p3 = por %p5845_p2, %p5844_p1 }
   0xe   :  { %p5847_p4 = pnand %p5846_p3, %p5840_p0 }
  0x10   :  { %5850 = shalt.err (!%p5847_p4)
}
  0x11   :  { %s5982_s30 = smov 128   ;;  %s5983_s14 = smov 8  }
  0x12   :  { %48 = dma.hbm_to_vmem [thread:$0]  %s7586_s1, 1536, %s43_s28, [#allocation7], %s5982_s30, %s5982_s30, %s5983_s14  }
  0x13   :  { %s5984_s16 = smov [#allocation9]   ;;  %s5985_s18 = smov [#allocation3]  }
  0x14   :  { %s70_s17 = sshll.u32 %s5984_s16, 4  ;;  %s30_s19 = sshll.u32 %s5985_s18, 4  ;;  %s71_s17 = int_to_ptr.vmem [resolvable:$true] %s70_s17  ;;  %s31_s19 = int_to_ptr.vmem [resolvable:$true] %s30_s19 }
  0x15   :  { %s5859_s20 = scalar_lea.vmem %s71_s17, 12288  ;;  %p5864_p6 = scmp.lt.s32.totalorder %s71_s17, %s71_s17 }
  0x16   :  { %p5860_p5 = scmp.ne.s32.totalorder %s71_s17, %s5859_s20  ;;  %p5865_p7 = scmp.lt.s32.totalorder %s5859_s20, %s5859_s20 }
  0x18   :  { %p5866_p8 = por %p5865_p7, %p5864_p6 }
  0x1a   :  { %p5867_p9 = pnand %p5866_p8, %p5860_p5 }
  0x1c   :  { %5870 = shalt.err (!%p5867_p9)
}
  0x1d   :  { %76 = dma.hbm_to_vmem [thread:$0]  %s7590_s5, 12288, %s71_s17, [#allocation10], %s5982_s30, %s5982_s30, %s5983_s14  }
  0x1e   :  { %s5879_s1 = scalar_lea.vmem %s31_s19, 2560  ;;  %p5884_p11 = scmp.lt.s32.totalorder %s31_s19, %s31_s19 }
  0x1f   :  { %p5880_p10 = scmp.ne.s32.totalorder %s31_s19, %s5879_s1  ;;  %p5885_p12 = scmp.lt.s32.totalorder %s5879_s1, %s5879_s1 }
  0x21   :  { %p5886_p13 = por %p5885_p12, %p5884_p11 }
  0x23   :  { %p5887_p0 = pnand %p5886_p13, %p5880_p10 }
  0x25   :  { %5890 = shalt.err (!%p5887_p0)
}
  0x26   :  { %s5986_s23 = smov 64   ;;  %s5987_s24 = smov 4  }
  0x27   :  { %36 = dma.hbm_to_vmem [thread:$0]  %s7585_s0, 2560, %s31_s19, [#allocation4], %s5986_s23, %s5986_s23, %s5987_s24  }
  0x28   :  { %s5988_s27 = smov [#allocation8]   ;;  %s5989_s5 = smov [#allocation11]  }
  0x29   :  { %s56_s28 = sshll.u32 %s5988_s27, 4  ;;  %s84_s29 = sshll.u32 %s5989_s5, 4  ;;  %s57_s28 = int_to_ptr.vmem [resolvable:$true] %s56_s28  ;;  %s85_s29 = int_to_ptr.vmem [resolvable:$true] %s84_s29 }
  0x2a   :  { %s5899_s12 = scalar_lea.vmem %s57_s28, 12288  ;;  %p5904_p2 = scmp.lt.s32.totalorder %s57_s28, %s57_s28 }
  0x2b   :  { %p5900_p1 = scmp.ne.s32.totalorder %s57_s28, %s5899_s12  ;;  %p5905_p3 = scmp.lt.s32.totalorder %s5899_s12, %s5899_s12 }
  0x2d   :  { %p5906_p4 = por %p5905_p3, %p5904_p2 }
  0x2f   :  { %p5907_p5 = pnand %p5906_p4, %p5900_p1 }
  0x31   :  { %5910 = shalt.err (!%p5907_p5)
}
  0x32   :  { %62 = dma.hbm_to_vmem [thread:$0]  %s7588_s3, 12288, %s57_s28, [#allocation7], %s5982_s30, %s5982_s30, %s5983_s14  }
  0x33   :  { %s5919_s0 = scalar_lea.vmem %s85_s29, 20480  ;;  %p5924_p7 = scmp.lt.s32.totalorder %s85_s29, %s85_s29 }
  0x34   :  { %p5920_p6 = scmp.ne.s32.totalorder %s85_s29, %s5919_s0  ;;  %p5925_p8 = scmp.lt.s32.totalorder %s5919_s0, %s5919_s0 }
  0x36   :  { %p5926_p9 = por %p5925_p8, %p5924_p7 }
  0x38   :  { %p5927_p10 = pnand %p5926_p9, %p5920_p6 }
  0x3a   :  { %5930 = shalt.err (!%p5927_p10)
}
  0x3b   :  { %90 = dma.hbm_to_vmem [thread:$0]  %s7592_s7, 20480, %s85_s29, [#allocation10], %s5982_s30, %s5982_s30, %s5983_s14  }
  0x3c   :  { %s5990_s19 = smov [#allocation12]  }
  0x3d   :  { %s98_s20 = sshll.u32 %s5990_s19, 4  ;;  %s99_s20 = int_to_ptr.vmem [resolvable:$true] %s98_s20 }
  0x3e   :  { %s5939_s21 = scalar_lea.vmem %s99_s20, 2048  ;;  %p5944_p12 = scmp.lt.s32.totalorder %s99_s20, %s99_s20 }
  0x3f   :  { %p5940_p11 = scmp.ne.s32.totalorder %s99_s20, %s5939_s21  ;;  %p5945_p13 = scmp.lt.s32.totalorder %s5939_s21, %s5939_s21 }
  0x41   :  { %p5946_p0 = por %p5945_p13, %p5944_p12 }
  0x43   :  { %p5947_p1 = pnand %p5946_p0, %p5940_p11 }
  0x45   :  { %5950 = shalt.err (!%p5947_p1)
}
  0x46   :  { %104 = dma.hbm_to_vmem [thread:$0]  %s7594_s9, 2048, %s99_s20, [#allocation13], %s5986_s23, %s5986_s23, %s5987_s24  }
  0x47   :  { %5971 = dma.done.wait [#allocation4], 2560  }
  0x48   :  { %5972 = vsyncadd [#allocation4], 4294964736 }
  0x49   :  { %5973 = dma.done.wait [#allocation7], 13824  }
  0x4a   :  { %5974 = vsyncadd [#allocation7], 4294953472 }
  0x4b   :  { %5975 = dma.done.wait [#allocation10], 32768  }
  0x4c   :  { %5976 = vsyncadd [#allocation10], 4294934528 }
  0x4d   :  { %5977 = dma.done.wait [#allocation13], 2048  }
  0x4e   :  { %5978 = vsyncadd [#allocation13], 4294965248  ;;  %v7599_v1 = vmov 0   ;;  %v6108_v2 = vld [vmem:[#allocation3] sm:$0xff]   ;;  %v6110_v3 = vld [vmem:[#allocation3 + $0x8] sm:$0xff]   ;;  %s5992_s7 = smov 32  }
  0x4f   :  { %610 = vmatprep.mubr.bf16.mxu0 %v7599_v1  ;;  %1511 = vmatprep.mubr.bf16.mxu1 %v7599_v1  ;;  %v6116_v4 = vld [vmem:[#allocation3 + $0x10] sm:$0xff]   ;;  %v5232_v5 = vld [vmem:[#allocation3 + $0x18] sm:$0xff]   ;;  %v5233_v6 = vld [vmem:[#allocation3 + $0x20] sm:$0xff]   ;;  %vm351_vm0 = vcmask 261120   ;;  %vm412_vm1 = vcmask 523264   ;;  %vm537_vm2 = vcmask 785408  }
  0x50   :  { %5228 = vset.pattern.permute.xlu0 %v7599_v1  ;;  %272 = vrot.lane.b32.xlu1 %v6110_v3, %s5992_s7  ;;  %v5234_v7 = vld [vmem:[#allocation3 + $0x28] sm:$0xff]   ;;  %v5242_v8 = vld [vmem:[#allocation6 + $0x54] ss:$8 sps:$4 sm:$0xff]   ;;  %v5244_v9 = vld [vmem:[#allocation6 + $0x50] ss:$8 sps:$4 sm:$0xff]   ;;  %vm5994_vm3 = vmmov 0  }
  0x51   :  { %270 = vrot.lane.b32.xlu0 %v6108_v2, %s5992_s7  ;;  %582 = vmatprep.subr.bf16.mxu0 %v5242_v8  ;;  %v5245_v10 = vld [vmem:[#allocation6 + $0x44] ss:$8 sps:$4 sm:$0xff]   ;;  %v5248_v11 = vld [vmem:[#allocation6 + $0x40] ss:$8 sps:$4 sm:$0xff]   ;;  %v5249_v12 = vld [vmem:[#allocation6 + $0x34] ss:$8 sps:$4 sm:$0xff]  }
  0x52   :  { %583 = vmatpush1.bf16.msra.mxu0 %v5244_v9  ;;  %v5235_v13 = vld [vmem:[#allocation3 + $0x30] sm:$0xff]   ;;  %v5252_v15 = vld [vmem:[#allocation6 + $0x24] ss:$8 sps:$4 sm:$0xff]   ;;  %v5236_v16 = vld [vmem:[#allocation3 + $0x38] sm:$0xff]   ;;  %vm4741_vm4 = vcmask 122880  }
  0x53   :  { %584 = vmatprep.subr.bf16.mxu0 %v5245_v10  ;;  %v5251_v14 = vld [vmem:[#allocation6 + $0x30] ss:$8 sps:$4 sm:$0xff]   ;;  %v5255_v17 = vld [vmem:[#allocation6 + $0x20] ss:$8 sps:$4 sm:$0xff]   ;;  %v5256_v19 = vld [vmem:[#allocation6 + $0x14] ss:$8 sps:$4 sm:$0xff]  }
  0x54   :  { %313 = vrot.lane.b32.xlu1 %v6116_v4, %s5986_s23  ;;  %v5237_v18 = vld [vmem:[#allocation3 + $0x40] sm:$0xff]   ;;  %v5258_v20 = vld [vmem:[#allocation6 + $0x10] ss:$8 sps:$4 sm:$0xff]   ;;  %v5238_v22 = vld [vmem:[#allocation3 + $0x48] sm:$0xff]  }
  0x55   :  { %311 = vrot.lane.b32.xlu0 %v6110_v3, %s5986_s23  ;;  %v5259_v21 = vld [vmem:[#allocation6 + $0x4] ss:$8 sps:$4 sm:$0xff]   ;;  %v5262_v23 = vld [vmem:[#allocation6] ss:$8 sps:$4 sm:$0xff]   ;;  %v5239_v24 = vld [vmem:[#allocation3 + $0x50] sm:$0xff]  }
  0x56   :  { %585 = vmatpush1.bf16.msra.mxu0 %v5248_v11  ;;  %v5240_v25 = vld [vmem:[#allocation3 + $0x58] sm:$0xff]   ;;  %v5241_v26 = vld [vmem:[#allocation3 + $0x60] sm:$0xff]   ;;  %v5247_v27 = vld [vmem:[#allocation3 + $0x68] sm:$0xff]  }
  0x57   :  { %586 = vmatprep.subr.bf16.mxu0 %v5249_v12  ;;  %v5254_v28 = vld [vmem:[#allocation3 + $0x70] sm:$0xff]   ;;  %v5261_v29 = vld [vmem:[#allocation3 + $0x78] sm:$0xff]   ;;  %v5263_v30 = vld [vmem:[#allocation3 + $0x80] sm:$0xff]  }
  0x58   :  { %315 = vrot.lane.b32.xlu1 %v5232_v5, %s5986_s23  ;;  %v5264_v31 = vld [vmem:[#allocation3 + $0x88] sm:$0xff]   ;;  %v5265_v32 = vld [vmem:[#allocation3 + $0x90] sm:$0xff]   ;;  %v5266_v33 = vld [vmem:[#allocation3 + $0x98] sm:$0xff]  }
  0x59   :  { %274 = vrot.lane.b32.xlu0 %v6116_v4, %s5992_s7  ;;  %v5267_v38 = vld [vmem:[#allocation8 + $0x74] ss:$8 sps:$4 sm:$0xff]   ;;  %v5269_v40 = vld [vmem:[#allocation8 + $0x70] ss:$8 sps:$4 sm:$0xff]   ;;  %v5270_v41 = vld [vmem:[#allocation8 + $0x64] ss:$8 sps:$4 sm:$0xff]  }
  0x5a   :  { %587 = vmatpush1.bf16.msra.mxu0 %v5251_v14  ;;  %1479 = vmatprep.subr.bf16.mxu1 %v5267_v38  ;;  %v5272_v42 = vld [vmem:[#allocation8 + $0x60] ss:$8 sps:$4 sm:$0xff]   ;;  %v5273_v45 = vld [vmem:[#allocation8 + $0x54] ss:$8 sps:$4 sm:$0xff]   ;;  %v5275_v48 = vld [vmem:[#allocation8 + $0x50] ss:$8 sps:$4 sm:$0xff]  }
  0x5b   :  { %588 = vmatprep.subr.bf16.mxu0 %v5252_v15  ;;  %1480 = vmatpush1.bf16.msra.mxu1 %v5269_v40  ;;  %v5276_v49 = vld [vmem:[#allocation8 + $0x44] ss:$8 sps:$4 sm:$0xff]   ;;  %v5278_v50 = vld [vmem:[#allocation8 + $0x40] ss:$8 sps:$4 sm:$0xff]   ;;  %v5279_v51 = vld [vmem:[#allocation8 + $0x170] ss:$8 sps:$4 sm:$0xff]  }
  0x5c   :  { %317 = vrot.lane.b32.xlu1 %v5233_v6, %s5986_s23  ;;  %1481 = vmatprep.subr.bf16.mxu1 %v5270_v41  ;;  %v5281_v52 = vld [vmem:[#allocation8 + $0x174] ss:$8 sps:$4 sm:$0xff]   ;;  %v5284_v58 = vld [vmem:[#allocation8 + $0x30] ss:$8 sps:$4 sm:$0xff]   ;;  %v5285_v59 = vld [vmem:[#allocation8 + $0x160] ss:$8 sps:$4 sm:$0xff]  }
  0x5d   :  { %276 = vrot.lane.b32.xlu0 %v5232_v5, %s5992_s7  ;;  %v5282_v56 = vld [vmem:[#allocation8 + $0x34] ss:$8 sps:$4 sm:$0xff]   ;;  %v5287_v60 = vld [vmem:[#allocation8 + $0x164] ss:$8 sps:$4 sm:$0xff]   ;;  %v5290_v62 = vld [vmem:[#allocation8 + $0x20] ss:$8 sps:$4 sm:$0xff]  }
  0x5e   :  { %589 = vmatpush1.bf16.msra.mxu0 %v5255_v17  ;;  %v5288_v61 = vld [vmem:[#allocation8 + $0x24] ss:$8 sps:$4 sm:$0xff]   ;;  %v5291_v63 = vld [vmem:[#allocation8 + $0x150] ss:$8 sps:$4 sm:$0xff]   ;;  %v5293_v0 = vld [vmem:[#allocation8 + $0x154] ss:$8 sps:$4 sm:$0xff]  }
  0x5f   :  { %590 = vmatprep.subr.bf16.mxu0 %v5256_v19  ;;  %1482 = vmatpush1.bf16.msra.mxu1 %v5272_v42  ;;  %v5296_v8 = vld [vmem:[#allocation8 + $0x10] ss:$8 sps:$4 sm:$0xff]   ;;  %v5297_v9 = vld [vmem:[#allocation8 + $0x140] ss:$8 sps:$4 sm:$0xff]   ;;  %v5299_v10 = vld [vmem:[#allocation8 + $0x144] ss:$8 sps:$4 sm:$0xff]  }
  0x60   :  { %319 = vrot.lane.b32.xlu1 %v5234_v7, %s5986_s23  ;;  %1483 = vmatprep.subr.bf16.mxu1 %v5273_v45  ;;  %v5300_v11 = vld [vmem:[#allocation8 + $0x4] ss:$8 sps:$4 sm:$0xff]   ;;  %v5305_v12 = vld [vmem:[#allocation8 + $0x134] ss:$8 sps:$4 sm:$0xff]   ;;  %v5303_v17 = vld [vmem:[#allocation8 + $0x130] ss:$8 sps:$4 sm:$0xff]  }
  0x61   :  { %278 = vrot.lane.b32.xlu0 %v5233_v6, %s5992_s7  ;;  %v5294_v6 = vld [vmem:[#allocation8 + $0x14] ss:$8 sps:$4 sm:$0xff]   ;;  %v5326_v38 = vld [vmem:[#allocation8 + $0xc0] ss:$8 sps:$4 sm:$0xff]   ;;  %v5327_v40 = vld [vmem:[#allocation8 + $0x1f0] ss:$8 sps:$4 sm:$0xff]  }
  0x62   :  { %591 = vmatpush1.bf16.msra.mxu0 %v5258_v20  ;;  %v5308_v20 = vld [vmem:[#allocation8 + $0xf0] ss:$8 sps:$4 sm:$0xff]   ;;  %v5817_v41 = vld [vmem:[#allocation3 + $0x28] sm:$0xff]  }
  0x63   :  { %592 = vmatprep.subr.bf16.mxu0 %v5259_v21  ;;  %1484 = vmatpush1.bf16.msra.mxu1 %v5275_v48  ;;  %v5312_v21 = vld [vmem:[#allocation8 + $0xe4] ss:$8 sps:$4 sm:$0xff]   ;;  %v5332_v45 = vld [vmem:[#allocation8 + $0xb0] ss:$8 sps:$4 sm:$0xff]   ;;  %v5333_v48 = vld [vmem:[#allocation8 + $0x1e0] ss:$8 sps:$4 sm:$0xff]  }
  0x64   :  { %321 = vrot.lane.b32.xlu1 %v5235_v13, %s5986_s23  ;;  %1485 = vmatprep.subr.bf16.mxu1 %v5276_v49  ;;  %v5341_v49 = vld [vmem:[#allocation8 + $0x1d4] ss:$8 sps:$4 sm:$0xff]  }
  0x65   :  { %280 = vrot.lane.b32.xlu0 %v5234_v7, %s5992_s7 }
  0x66   :  { %593 = vmatpush1.bf16.msra.mxu0 %v5262_v23  ;;  %v5309_v23 = vld [vmem:[#allocation8 + $0x120] ss:$8 sps:$4 sm:$0xff]  }
  0x67   :  { %1712 = vmatprep.subr.bf16.mxu0 %v5281_v52  ;;  %1486 = vmatpush1.bf16.msra.mxu1 %v5278_v50  ;;  %v5342_v52 = vld [vmem:[#allocation8 + $0x94] ss:$8 sps:$4 sm:$0xff]  }
  0x68   :  { %323 = vrot.lane.b32.xlu1 %v5236_v16, %s5986_s23  ;;  %1487 = vmatprep.subr.bf16.mxu1 %v5282_v56 }
  0x69   :  { %282 = vrot.lane.b32.xlu0 %v5235_v13, %s5992_s7  ;;  %v5815_v13 = vld [vmem:[#allocation3 + $0x18] sm:$0xff]  }
  0x6b   :  { %1488 = vmatpush1.bf16.msra.mxu1 %v5284_v58 }
  0x6c   :  { %325 = vrot.lane.b32.xlu1 %v5237_v18, %s5986_s23  ;;  %1489 = vmatprep.subr.bf16.mxu1 %v5288_v61 }
  0x6d   :  { %284 = vrot.lane.b32.xlu0 %v5236_v16, %s5992_s7  ;;  %v5306_v16 = vld [vmem:[#allocation8 + $0xf4] ss:$8 sps:$4 sm:$0xff]  }
  0x6f   :  { %1490 = vmatpush1.bf16.msra.mxu1 %v5290_v62  ;;  %v5345_v62 = vld [vmem:[#allocation8 + $0x1c0] ss:$8 sps:$4 sm:$0xff]  }
  0x70   :  { %327 = vrot.lane.b32.xlu1 %v5238_v22, %s5986_s23  ;;  %1491 = vmatprep.subr.bf16.mxu1 %v5294_v6  ;;  %v5351_v6 = vld [vmem:[#allocation8 + $0x1b0] ss:$8 sps:$4 sm:$0xff]  }
  0x71   :  { %286 = vrot.lane.b32.xlu0 %v5237_v18, %s5992_s7  ;;  %v5311_v18 = vld [vmem:[#allocation8 + $0x124] ss:$8 sps:$4 sm:$0xff]  }
  0x73   :  { %1492 = vmatpush1.bf16.msra.mxu1 %v5296_v8 }
  0x74   :  { %329 = vrot.lane.b32.xlu1 %v5239_v24, %s5986_s23  ;;  %1493 = vmatprep.subr.bf16.mxu1 %v5300_v11  ;;  %v5820_v11 = vld [vmem:[#allocation3 + $0x40] sm:$0xff]  }
  0x75   :  { %288 = vrot.lane.b32.xlu0 %v5238_v22, %s5992_s7 }
  0x78   :  { %331 = vrot.lane.b32.xlu1 %v5240_v25, %s5986_s23 }
  0x79   :  { %290 = vrot.lane.b32.xlu0 %v5239_v24, %s5992_s7  ;;  %v5317_v24 = vld [vmem:[#allocation8 + $0x114] ss:$8 sps:$4 sm:$0xff]  }
  0x7c   :  { %333 = vrot.lane.b32.xlu1 %v5241_v26, %s5986_s23 }
  0x7d   :  { %292 = vrot.lane.b32.xlu0 %v5240_v25, %s5992_s7  ;;  %v5314_v25 = vld [vmem:[#allocation8 + $0xe0] ss:$8 sps:$4 sm:$0xff]  }
  0x80   :  { %335 = vrot.lane.b32.xlu1 %v5247_v27, %s5986_s23 }
  0x81   :  { %294 = vrot.lane.b32.xlu0 %v5241_v26, %s5992_s7  ;;  %v5816_v26 = vld [vmem:[#allocation3 + $0x20] sm:$0xff]  }
  0x84   :  { %337 = vrot.lane.b32.xlu1 %v5254_v28, %s5986_s23 }
  0x85   :  { %296 = vrot.lane.b32.xlu0 %v5247_v27, %s5992_s7 }
  0x88   :  { %339 = vrot.lane.b32.xlu1 %v5261_v29, %s5986_s23 }
  0x89   :  { %298 = vrot.lane.b32.xlu0 %v5254_v28, %s5992_s7 }
  0x8c   :  { %341 = vrot.lane.b32.xlu1 %v5263_v30, %s5986_s23 }
  0x8d   :  { %300 = vrot.lane.b32.xlu0 %v5261_v29, %s5992_s7  ;;  %v5318_v29 = vld [vmem:[#allocation8 + $0xd4] ss:$8 sps:$4 sm:$0xff]  }
  0x90   :  { %343 = vrot.lane.b32.xlu1 %v5264_v31, %s5986_s23 }
  0x91   :  { %302 = vrot.lane.b32.xlu0 %v5263_v30, %s5992_s7  ;;  %v5315_v30 = vld [vmem:[#allocation8 + $0x110] ss:$8 sps:$4 sm:$0xff]  }
  0x94   :  { %345 = vrot.lane.b32.xlu1 %v5265_v32, %s5986_s23 }
  0x95   :  { %304 = vrot.lane.b32.xlu0 %v5264_v31, %s5992_s7  ;;  %v5320_v31 = vld [vmem:[#allocation8 + $0xd0] ss:$8 sps:$4 sm:$0xff]  }
  0x98   :  { %347 = vrot.lane.b32.xlu1 %v5266_v33, %s5986_s23 }
  0x99   :  { %306 = vrot.lane.b32.xlu0 %v5265_v32, %s5992_s7  ;;  %v5323_v32 = vld [vmem:[#allocation8 + $0x104] ss:$8 sps:$4 sm:$0xff]  }
  0x9c   :  { %349 = vrot.lane.b32.xlu1 %v7599_v1, %s5986_s23 }
  0x9d   :  { %308 = vrot.lane.b32.xlu0 %v5266_v33, %s5992_s7  ;;  %v5324_v33 = vld [vmem:[#allocation8 + $0xc4] ss:$8 sps:$4 sm:$0xff]  }
  0xc2   :  { %v273_v37 = vpop.permute.xlu1 %272 }
  0xc3   :  { %v271_v34 = vpop.permute.xlu0 %270  ;;  %v357_v43 = vsel %vm351_vm0, %v6108_v2, %v273_v37 }
  0xc4   :  { %v354_v35 = vsel %vm351_vm0, 0, %v271_v34 }
  0xc6   :  { %v314_v44 = vpop.permute.xlu1 %313 }
  0xc7   :  { %v312_v36 = vpop.permute.xlu0 %311  ;;  %v416_v46 = vsel %vm412_vm1, %v357_v43, %v314_v44  ;;  %v5335_v44 = vld [vmem:[#allocation8 + $0x1e4] ss:$8 sps:$4 sm:$0xff]  }
  0xc8   :  { %v414_v39 = vsel %vm412_vm1, %v354_v35, %v312_v36  ;;  %v5321_v35 = vld [vmem:[#allocation8 + $0x100] ss:$8 sps:$4 sm:$0xff]   ;;  %v5329_v36 = vld [vmem:[#allocation8 + $0x1f4] ss:$8 sps:$4 sm:$0xff]  }
  0xc9   :  { %4793 = vmatmul.mubr.msk.bf16.vlgmr.msra.gmra.mxu0 %vm537_vm2, %v414_v39  ;;  %v5330_v39 = vld [vmem:[#allocation8 + $0xb4] ss:$8 sps:$4 sm:$0xff]  }
  0xca   :  { %620 = vmatprep.mubr.bf16.mxu0 %v7599_v1  ;;  %v316_v54 = vpop.permute.xlu1 %315  ;;  %1713 = vmatpush1.bf16.msra.mxu0 %v5279_v51  ;;  %v5338_v51 = vld [vmem:[#allocation8 + $0xa0] ss:$8 sps:$4 sm:$0xff]  }
  0xcb   :  { %v275_v47 = vpop.permute.xlu0 %274  ;;  %1714 = vmatprep.subr.bf16.mxu0 %v5287_v60  ;;  %v5348_v60 = vld [vmem:[#allocation8 + $0x84] ss:$8 sps:$4 sm:$0xff]  }
  0xcc   :  { %v360_v53 = vsel %vm351_vm0, %v6110_v3, %v275_v47 }
  0xcd   :  { %v418_v55 = vsel %vm412_vm1, %v360_v53, %v316_v54  ;;  %v5339_v53 = vld [vmem:[#allocation8 + $0x1d0] ss:$8 sps:$4 sm:$0xff]  }
  0xce   :  { %v318_v3 = vpop.permute.xlu1 %317  ;;  %1715 = vmatpush1.bf16.msra.mxu0 %v5285_v59  ;;  %v5818_v54 = vld [vmem:[#allocation3 + $0x30] sm:$0xff]  }
  0xcf   :  { %v277_v57 = vpop.permute.xlu0 %276  ;;  %1716 = vmatprep.subr.bf16.mxu0 %v5293_v0  ;;  %v5344_v59 = vld [vmem:[#allocation8 + $0x90] ss:$8 sps:$4 sm:$0xff]   ;;  %v5350_v0 = vld [vmem:[#allocation8 + $0x80] ss:$8 sps:$4 sm:$0xff]  }
  0xd0   :  { %v363_v2 = vsel %vm351_vm0, %v6116_v4, %v277_v57  ;;  %v5302_v4 = vld [vmem:[#allocation8] ss:$8 sps:$4 sm:$0xff]   ;;  %v5347_v57 = vld [vmem:[#allocation8 + $0x1c4] ss:$8 sps:$4 sm:$0xff]  }
  0xd1   :  { %4794 = vmatmul.mubr.msk.bf16.gmra.mxu0 %vm537_vm2, %v416_v46  ;;  %v420_v5 = vsel %vm412_vm1, %v363_v2, %v318_v3  ;;  %1494 = vmatpush1.bf16.msra.mxu1 %v5302_v4  ;;  %v5336_v46 = vld [vmem:[#allocation8 + $0xa4] ss:$8 sps:$4 sm:$0xff]   ;;  %v5819_v2 = vld [vmem:[#allocation3 + $0x38] sm:$0xff]  }
  0xd2   :  { %630 = vmatprep.mubr.bf16.mxu0 %v7599_v1  ;;  %1717 = vmatpush1.bf16.msra.mxu0 %v5291_v63  ;;  %v320_v15 = vpop.permute.xlu1 %319  ;;  %v5353_v63 = vld [vmem:[#allocation8 + $0x1b4] ss:$8 sps:$4 sm:$0xff]  }
  0xd3   :  { %v279_v7 = vpop.permute.xlu0 %278  ;;  %1718 = vmatprep.subr.bf16.mxu0 %v5299_v10  ;;  %1495 = vmatprep.subr.bf16.mxu1 %v5306_v16  ;;  %v5354_v10 = vld [vmem:[#allocation8 + $0x1a0] ss:$8 sps:$4 sm:$0xff]  }
  0xd4   :  { %v366_v14 = vsel %vm351_vm0, %v5815_v13, %v279_v7  ;;  %v5359_v13 = vld [vmem:[#allocation8 + $0x194] ss:$8 sps:$4 sm:$0xff]  }
  0xd5   :  { %v422_v19 = vsel %vm412_vm1, %v366_v14, %v320_v15  ;;  %1496 = vmatpush2.bf16.msra.mxu1 %v5308_v20  ;;  %v5357_v15 = vld [vmem:[#allocation8 + $0x190] ss:$8 sps:$4 sm:$0xff]   ;;  %v5363_v20 = vld [vmem:[#allocation8 + $0x180] ss:$8 sps:$4 sm:$0xff]  }
  0xd6   :  { %1719 = vmatpush1.bf16.msra.mxu0 %v5297_v9  ;;  %v322_v28 = vpop.permute.xlu1 %321  ;;  %1497 = vmatprep.subr.bf16.mxu1 %v5312_v21  ;;  %v5356_v9 = vld [vmem:[#allocation8 + $0x1a4] ss:$8 sps:$4 sm:$0xff]  }
  0xd7   :  { %1720 = vmatprep.subr.bf16.mxu0 %v5305_v12  ;;  %v281_v22 = vpop.permute.xlu0 %280  ;;  %v5821_v21 = vld [vmem:[#allocation3 + $0x48] sm:$0xff]  }
  0xd8   :  { %v369_v27 = vsel %vm351_vm0, %v5816_v26, %v281_v22  ;;  %v5366_v26 = vld [vmem:[#allocation8 + $0x260] ss:$8 sps:$4 sm:$0xff]  }
  0xd9   :  { %4795 = vmatmul.mubr.msk.bf16.gmra.mxu0 %vm537_vm2, %v418_v55  ;;  %v424_v34 = vsel %vm412_vm1, %v369_v27, %v322_v28  ;;  %1498 = vmatpush2.bf16.msra.mxu1 %v5314_v25  ;;  %v5368_v27 = vld [vmem:[#allocation8 + $0x264] ss:$8 sps:$4 sm:$0xff]   ;;  %v5822_v28 = vld [vmem:[#allocation3 + $0x50] sm:$0xff]  }
  0xda   :  { %640 = vmatprep.mubr.bf16.mxu0 %v7599_v1  ;;  %1721 = vmatpush1.bf16.msra.mxu0 %v5303_v17  ;;  %v324_v43 = vpop.permute.xlu1 %323  ;;  %v5365_v17 = vld [vmem:[#allocation8 + $0x184] ss:$8 sps:$4 sm:$0xff]  }
  0xdb   :  { %1722 = vmatprep.subr.bf16.mxu0 %v5311_v18  ;;  %1499 = vmatprep.subr.bf16.mxu1 %v5318_v29  ;;  %v283_v37 = vpop.permute.xlu0 %282  ;;  %v5360_v18 = vld [vmem:[#allocation8 + $0x270] ss:$8 sps:$4 sm:$0xff]  }
  0xdc   :  { %v372_v42 = vsel %vm351_vm0, %v5817_v41, %v283_v37  ;;  %v5371_v37 = vld [vmem:[#allocation8 + $0x254] ss:$8 sps:$4 sm:$0xff]  }
  0xdd   :  { %1500 = vmatpush2.bf16.msra.mxu1 %v5320_v31  ;;  %v426_v47 = vsel %vm412_vm1, %v372_v42, %v324_v43 }
  0xde   :  { %1723 = vmatpush1.bf16.msra.mxu0 %v5309_v23  ;;  %1501 = vmatprep.subr.bf16.mxu1 %v5324_v33  ;;  %v326_v56 = vpop.permute.xlu1 %325  ;;  %v5823_v33 = vld [vmem:[#allocation3 + $0x58] sm:$0xff]  }
  0xdf   :  { %1724 = vmatprep.subr.bf16.mxu0 %v5317_v24  ;;  %v285_v50 = vpop.permute.xlu0 %284 }
  0xe0   :  { %v375_v55 = vsel %vm351_vm0, %v5818_v54, %v285_v50  ;;  %v5826_v54 = vld [vmem:[#allocation3 + $0x70] sm:$0xff]  }
  0xe1   :  { %4796 = vmatmul.mubr.msk.bf16.gmra.mxu0 %vm537_vm2, %v420_v5  ;;  %1502 = vmatpush2.bf16.msra.mxu1 %v5326_v38  ;;  %v428_v58 = vsel %vm412_vm1, %v375_v55, %v326_v56 }
  0xe2   :  { %650 = vmatprep.mubr.bf16.mxu0 %v7599_v1  ;;  %1725 = vmatpush1.bf16.msra.mxu0 %v5315_v30  ;;  %v328_v5 = vpop.permute.xlu1 %327 }
  0xe3   :  { %1726 = vmatprep.subr.bf16.mxu0 %v5323_v32  ;;  %1503 = vmatprep.subr.bf16.mxu1 %v5330_v39  ;;  %v287_v61 = vpop.permute.xlu0 %286 }
  0xe4   :  { %v378_v3 = vsel %vm351_vm0, %v5819_v2, %v287_v61  ;;  %v5827_v61 = vld [vmem:[#allocation3 + $0x78] sm:$0xff]  }
  0xe5   :  { %1504 = vmatpush2.bf16.msra.mxu1 %v5332_v45  ;;  %v430_v7 = vsel %vm412_vm1, %v378_v3, %v328_v5  ;;  %v5372_v45 = vld [vmem:[#allocation8 + $0x240] ss:$8 sps:$4 sm:$0xff]  }
  0xe6   :  { %1727 = vmatpush1.bf16.msra.mxu0 %v5321_v35  ;;  %1505 = vmatprep.subr.bf16.mxu1 %v5336_v46  ;;  %v330_v12 = vpop.permute.xlu1 %329  ;;  %v5374_v46 = vld [vmem:[#allocation8 + $0x244] ss:$8 sps:$4 sm:$0xff]  }
  0xe7   :  { %1728 = vmatprep.subr.bf16.mxu0 %v5329_v36  ;;  %v289_v8 = vpop.permute.xlu0 %288  ;;  %v5369_v36 = vld [vmem:[#allocation8 + $0x250] ss:$8 sps:$4 sm:$0xff]   ;;  %v5828_v3 = vld [vmem:[#allocation3 + $0x80] sm:$0xff]  }
  0xe8   :  { %v381_v4 = vsel %vm351_vm0, %v5820_v11, %v289_v8  ;;  %v5383_v8 = vld [vmem:[#allocation8 + $0x214] ss:$8 sps:$4 sm:$0xff]   ;;  %v5829_v11 = vld [vmem:[#allocation3 + $0x88] sm:$0xff]  }
  0xe9   :  { %4797 = vmatmul.mubr.msk.bf16.gmra.mxu0 %vm537_vm2, %v422_v19  ;;  %1506 = vmatpush2.bf16.msra.mxu1 %v5338_v51  ;;  %v432_v14 = vsel %vm412_vm1, %v381_v4, %v330_v12  ;;  %v5362_v19 = vld [vmem:[#allocation8 + $0x274] ss:$8 sps:$4 sm:$0xff]  }
  0xea   :  { %660 = vmatprep.mubr.bf16.mxu0 %v7599_v1  ;;  %1729 = vmatpush2.bf16.msra.mxu0 %v5327_v40  ;;  %v332_v23 = vpop.permute.xlu1 %331  ;;  %v5824_v40 = vld [vmem:[#allocation3 + $0x60] sm:$0xff]  }
  0xeb   :  { %1730 = vmatprep.subr.bf16.mxu0 %v5335_v44  ;;  %1507 = vmatprep.subr.bf16.mxu1 %v5342_v52  ;;  %v291_v16 = vpop.permute.xlu0 %290  ;;  %v5375_v52 = vld [vmem:[#allocation8 + $0x230] ss:$8 sps:$4 sm:$0xff]  }
  0xec   :  { %v384_v22 = vsel %vm351_vm0, %v5821_v21, %v291_v16  ;;  %v5386_v16 = vld [vmem:[#allocation8 + $0x204] ss:$8 sps:$4 sm:$0xff]   ;;  %v5387_v21 = vld [vmem:[#allocation8 + $0x2f0] ss:$8 sps:$4 sm:$0xff]  }
  0xed   :  { %1508 = vmatpush2.bf16.msra.mxu1 %v5344_v59  ;;  %v434_v24 = vsel %vm412_vm1, %v384_v22, %v332_v23  ;;  %v5378_v59 = vld [vmem:[#allocation8 + $0x220] ss:$8 sps:$4 sm:$0xff]   ;;  %v5389_v22 = vld [vmem:[#allocation8 + $0x2f4] ss:$8 sps:$4 sm:$0xff]  }
  0xee   :  { %1731 = vmatpush2.bf16.msra.mxu0 %v5333_v48  ;;  %1509 = vmatprep.subr.bf16.mxu1 %v5348_v60  ;;  %v334_v30 = vpop.permute.xlu1 %333  ;;  %v5380_v60 = vld [vmem:[#allocation8 + $0x224] ss:$8 sps:$4 sm:$0xff]   ;;  %v5390_v23 = vld [vmem:[#allocation8 + $0x2e0] ss:$8 sps:$4 sm:$0xff]  }
  0xef   :  { %1732 = vmatprep.subr.bf16.mxu0 %v5341_v49  ;;  %v293_v25 = vpop.permute.xlu0 %292 }
  0xf0   :  { %v387_v29 = vsel %vm351_vm0, %v5822_v28, %v293_v25  ;;  %v5393_v25 = vld [vmem:[#allocation8 + $0x2d0] ss:$8 sps:$4 sm:$0xff]   ;;  %v5396_v28 = vld [vmem:[#allocation8 + $0x2c0] ss:$8 sps:$4 sm:$0xff]  }
  0xf1   :  { %4798 = vmatmul.mubr.msk.bf16.gmra.mxu0 %vm537_vm2, %v424_v34  ;;  %1510 = vmatpush2.bf16.msra.mxu1 %v5350_v0  ;;  %v436_v31 = vsel %vm412_vm1, %v387_v29, %v334_v30  ;;  %v5398_v29 = vld [vmem:[#allocation8 + $0x2c4] ss:$8 sps:$4 sm:$0xff]  }
  0xf2   :  { %670 = vmatprep.mubr.bf16.mxu0 %v7599_v1  ;;  %1733 = vmatpush2.bf16.msra.mxu0 %v5339_v53  ;;  %v336_v35 = vpop.permute.xlu1 %335  ;;  %v5377_v53 = vld [vmem:[#allocation8 + $0x234] ss:$8 sps:$4 sm:$0xff]  }
  0xf3   :  { %1734 = vmatprep.subr.bf16.mxu0 %v5347_v57  ;;  %1945 = vmatprep.subr.bf16.mxu1 %v5362_v19  ;;  %v295_v32 = vpop.permute.xlu0 %294 }
  0xf4   :  { %1512 = vmatmul.mubr.bf16.vlgmr.msra.gmra.mxu1 %v7599_v1  ;;  %v390_v34 = vsel %vm351_vm0, %v5823_v33, %v295_v32  ;;  %v465_v32 = vld [vmem:[%s7587_s2] sm:$0x3] }
  0xf5   :  { %1946 = vmatpush1.bf16.msra.mxu1 %v5360_v18  ;;  %v438_v38 = vsel %vm412_vm1, %v390_v34, %v336_v35  ;;  %v5399_v35 = vld [vmem:[#allocation8 + $0x2b0] ss:$8 sps:$4 sm:$0xff]  }
  0xf6   :  { %1735 = vmatpush2.bf16.msra.mxu0 %v5345_v62  ;;  %1947 = vmatprep.subr.bf16.mxu1 %v5368_v27  ;;  %v338_v42 = vpop.permute.xlu1 %337  ;;  %v467_v27 = vlaneseq }
  0xf7   :  { %1736 = vmatprep.subr.bf16.mxu0 %v5353_v63  ;;  %v297_v39 = vpop.permute.xlu0 %296 }
  0xf8   :  { %v393_v41 = vsel %vm351_vm0, %v5824_v40, %v297_v39  ;;  %v468_v30 = vshrl.u32 %v467_v27, 7  ;;  %v5408_v27 = vld [vmem:[#allocation8 + $0x280] ss:$8 sps:$4 sm:$0xff]  }
  0xf9   :  { %4799 = vmatmul.mubr.msk.bf16.gmra.mxu0 %vm537_vm2, %v426_v47  ;;  %1948 = vmatpush1.bf16.msra.mxu1 %v5366_v26  ;;  %v440_v43 = vsel %vm412_vm1, %v393_v41, %v338_v42  ;;  %v5825_v47 = vld [vmem:[#allocation3 + $0x68] sm:$0xff]   ;;  %v5395_v26 = vld [vmem:[#allocation8 + $0x2d4] ss:$8 sps:$4 sm:$0xff]  }
  0xfa   :  { %680 = vmatprep.mubr.bf16.mxu0 %v7599_v1  ;;  %1737 = vmatpush2.bf16.msra.mxu0 %v5351_v6  ;;  %v340_v49 = vpop.permute.xlu1 %339  ;;  %v6248_v33 = vsub.s32 1, %v468_v30 }
  0xfb   :  { %1738 = vmatprep.subr.bf16.mxu0 %v5356_v9  ;;  %1949 = vmatprep.subr.bf16.mxu1 %v5371_v37  ;;  %v299_v44 = vpop.permute.xlu0 %298 }
  0xfc   :  { %v396_v48 = vsel %vm351_vm0, %v5825_v47, %v299_v44  ;;  %7606 = vst [vmem:[#allocation21_spill] sm:$0xff] %v6248_v33  ;;  %v6254_v39 = vrot.slane %v465_v32, %v6248_v33 }
  0xfd   :  { %1950 = vmatpush1.bf16.msra.mxu1 %v5369_v36  ;;  %v442_v50 = vsel %vm412_vm1, %v396_v48, %v340_v49  ;;  %v5401_v36 = vld [vmem:[#allocation8 + $0x2b4] ss:$8 sps:$4 sm:$0xff]   ;;  %v5402_v49 = vld [vmem:[#allocation8 + $0x2a0] ss:$8 sps:$4 sm:$0xff]  }
  0xfe   :  { %1739 = vmatpush2.bf16.msra.mxu0 %v5354_v10  ;;  %1951 = vmatprep.subr.bf16.mxu1 %v5374_v46  ;;  %v342_v56 = vpop.permute.xlu1 %341 }
  0xff   :  { %1740 = vmatprep.subr.bf16.mxu0 %v5359_v13  ;;  %v301_v51 = vpop.permute.xlu0 %300 }
 0x100   :  { %v399_v55 = vsel %vm351_vm0, %v5826_v54, %v301_v51 }
 0x101   :  { %4800 = vmatmul.mubr.msk.bf16.gmra.mxu0 %vm537_vm2, %v428_v58  ;;  %1952 = vmatpush1.bf16.msra.mxu1 %v5372_v45  ;;  %v444_v57 = vsel %vm412_vm1, %v399_v55, %v342_v56 }
 0x102   :  { %690 = vmatprep.mubr.bf16.mxu0 %v7599_v1  ;;  %1741 = vmatpush2.bf16.msra.mxu0 %v5357_v15  ;;  %v344_v63 = vpop.permute.xlu1 %343  ;;  %v5384_v15 = vld [vmem:[#allocation8 + $0x200] ss:$8 sps:$4 sm:$0xff]  }
 0x103   :  { %1742 = vmatprep.subr.bf16.mxu0 %v5365_v17  ;;  %1953 = vmatprep.subr.bf16.mxu1 %v5377_v53  ;;  %v303_v58 = vpop.permute.xlu0 %302  ;;  %v5830_v17 = vld [vmem:[#allocation3 + $0x90] sm:$0xff]  }
 0x104   :  { %v402_v62 = vsel %vm351_vm0, %v5827_v61, %v303_v58 }
 0x105   :  { %1954 = vmatpush1.bf16.msra.mxu1 %v5375_v52  ;;  %v446_v0 = vsel %vm412_vm1, %v402_v62, %v344_v63 }
 0x106   :  { %1743 = vmatpush2.bf16.msra.mxu0 %v5363_v20  ;;  %1955 = vmatprep.subr.bf16.mxu1 %v5380_v60  ;;  %v346_v6 = vpop.permute.xlu1 %345 }
 0x107   :  { %v305_v2 = vpop.permute.xlu0 %304 }
 0x108   :  { %v405_v5 = vsel %vm351_vm0, %v5828_v3, %v305_v2  ;;  %v5407_v2 = vld [vmem:[#allocation8 + $0x294] ss:$8 sps:$4 sm:$0xff]  }
 0x109   :  { %4801 = vmatmul.mubr.msk.bf16.gmra.mxu0 %vm537_vm2, %v430_v7  ;;  %1956 = vmatpush1.bf16.msra.mxu1 %v5378_v59  ;;  %v5381_v7 = vld [vmem:[#allocation8 + $0x210] ss:$8 sps:$4 sm:$0xff]   ;;  %v448_v9 = vsel %vm412_vm1, %v405_v5, %v346_v6 }
 0x10a   :  { %700 = vmatprep.mubr.bf16.mxu0 %v7599_v1  ;;  %1957 = vmatprep.subr.bf16.mxu1 %v5383_v8  ;;  %v348_v12 = vpop.permute.xlu1 %347  ;;  %v5405_v6 = vld [vmem:[#allocation8 + $0x290] ss:$8 sps:$4 sm:$0xff]  }
 0x10b   :  { %v307_v10 = vpop.permute.xlu0 %306 }
 0x10c   :  { %v408_v4 = vsel %vm351_vm0, %v5829_v11, %v307_v10 }
 0x10d   :  { %1958 = vmatpush1.bf16.msra.mxu1 %v5381_v7  ;;  %v450_v13 = vsel %vm412_vm1, %v408_v4, %v348_v12 }
 0x10e   :  { %1959 = vmatprep.subr.bf16.mxu1 %v5386_v16  ;;  %v350_v19 = vpop.permute.xlu1 %349 }
 0x111   :  { %4802 = vmatmul.mubr.msk.bf16.gmra.mxu0 %vm537_vm2, %v432_v14  ;;  %v309_v14 = vpop.permute.xlu0 %308  ;;  %1960 = vmatpush1.bf16.msra.mxu1 %v5384_v15 }
 0x112   :  { %710 = vmatprep.mubr.bf16.mxu0 %v7599_v1  ;;  %v411_v18 = vsel %vm351_vm0, %v5830_v17, %v309_v14  ;;  %1961 = vmatprep.subr.bf16.mxu1 %v5389_v22 }
 0x113   :  { %v452_v20 = vsel %vm412_vm1, %v411_v18, %v350_v19 }
 0x115   :  { %1962 = vmatpush2.bf16.msra.mxu1 %v5387_v21 }
 0x119   :  { %4803 = vmatmul.mubr.msk.bf16.gmra.mxu0 %vm537_vm2, %v434_v24  ;;  %v5392_v24 = vld [vmem:[#allocation8 + $0x2e4] ss:$8 sps:$4 sm:$0xff]  }
 0x11a   :  { %720 = vmatprep.mubr.bf16.mxu0 %v7599_v1  ;;  %1963 = vmatprep.subr.bf16.mxu1 %v5392_v24 }
 0x11b   :  { %1964 = vmatpush2.bf16.msra.mxu1 %v5390_v23 }
 0x11c   :  { %1965 = vmatprep.subr.bf16.mxu1 %v5395_v26 }
 0x11f   :  { %1966 = vmatpush2.bf16.msra.mxu1 %v5393_v25  ;;  %v5410_v25 = vld [vmem:[#allocation8 + $0x284] ss:$8 sps:$4 sm:$0xff]  }
 0x120   :  { %1967 = vmatprep.subr.bf16.mxu1 %v5398_v29 }
 0x121   :  { %4804 = vmatmul.mubr.msk.bf16.gmra.mxu0 %vm537_vm2, %v436_v31  ;;  %v6243_v31 = vsub.s32 0, %v468_v30 }
 0x122   :  { %730 = vmatprep.mubr.bf16.mxu0 %v7599_v1 }
 0x123   :  { %1968 = vmatpush2.bf16.msra.mxu1 %v5396_v28  ;;  %7605 = vst [vmem:[#allocation20_spill] sm:$0xff] %v6243_v31  ;;  %v6251_v37 = vrot.slane %v465_v32, %v6243_v31 }
 0x124   :  { %1969 = vmatprep.subr.bf16.mxu1 %v5401_v36 }
 0x127   :  { %1970 = vmatpush2.bf16.msra.mxu1 %v5399_v35 }
 0x129   :  { %4805 = vmatmul.mubr.msk.bf16.gmra.mxu0 %vm537_vm2, %v438_v38 }
 0x12a   :  { %740 = vmatprep.mubr.bf16.mxu0 %v7599_v1 }
 0x131   :  { %4806 = vmatmul.mubr.msk.bf16.gmra.mxu0 %vm537_vm2, %v440_v43 }
 0x132   :  { %750 = vmatprep.mubr.bf16.mxu0 %v7599_v1 }
 0x139   :  { %4807 = vmatmul.mubr.msk.bf16.gmra.mxu0 %vm537_vm2, %v442_v50  ;;  %v5404_v50 = vld [vmem:[#allocation8 + $0x2a4] ss:$8 sps:$4 sm:$0xff]  }
 0x13a   :  { %760 = vmatprep.mubr.bf16.mxu0 %v7599_v1  ;;  %1971 = vmatprep.subr.bf16.mxu1 %v5404_v50 }
 0x13b   :  { %1972 = vmatpush2.bf16.msra.mxu1 %v5402_v49 }
 0x13c   :  { %1973 = vmatprep.subr.bf16.mxu1 %v5407_v2 }
 0x13f   :  { %1974 = vmatpush2.bf16.msra.mxu1 %v5405_v6 }
 0x140   :  { %1975 = vmatprep.subr.bf16.mxu1 %v5410_v25 }
 0x141   :  { %4808 = vmatmul.mubr.msk.bf16.gmra.mxu0 %vm537_vm2, %v444_v57 }
 0x142   :  { %770 = vmatprep.mubr.bf16.mxu0 %v7599_v1 }
 0x143   :  { %1976 = vmatpush2.bf16.msra.mxu1 %v5408_v27 }
 0x149   :  { %4809 = vmatmul.mubr.msk.bf16.gmra.mxu0 %vm537_vm2, %v446_v0 }
 0x14a   :  { %780 = vmatprep.mubr.bf16.mxu0 %v7599_v1 }
 0x151   :  { %4810 = vmatmul.mubr.msk.bf16.gmra.mxu0 %vm537_vm2, %v448_v9 }
 0x152   :  { %790 = vmatprep.mubr.bf16.mxu0 %v7599_v1 }
 0x159   :  { %4811 = vmatmul.mubr.msk.bf16.gmra.mxu0 %vm537_vm2, %v450_v13 }
 0x15a   :  { %800 = vmatprep.mubr.bf16.mxu0 %v7599_v1 }
 0x161   :  { %4812 = vmatmul.mubr.msk.bf16.gmra.mxu0 %vm537_vm2, %v452_v20 }
 0x189   :  { %v612_v34 = vpop.f32.mrf.mxu0 }
 0x18a   :  { %v613_v42 = vadd.f32 %v612_v34, %v6251_v37 }
 0x18b   :  { %v614_v38 = vpop.f32.mrf.mxu0 }
 0x18c   :  { %v615_v44 = vadd.f32 %v614_v38, %v6254_v39 }
 0x18d   :  { %v616_v40 = vpop.f32.mrf.mxu0 }
 0x18e   :  { %v617_v41 = vadd.f32 %v616_v40, %v6251_v37 }
 0x18f   :  { %v618_v43 = vpop.f32.mrf.mxu0 }
 0x190   :  { %v619_v45 = vadd.f32 %v618_v43, %v6254_v39  ;;  %v811_v46 = vpack.c.bf16 %v617_v41, %v613_v42 }
 0x191   :  { %v622_v47 = vpop.f32.mrf.mxu0 }
 0x192   :  { %v812_v48 = vpack.c.bf16 %v619_v45, %v615_v44  ;;  %v851_v54 = vmax.bf16 %v7599_v1, %v811_v46  ;;  %v623_v56 = vadd.f32 %v622_v47, %v6251_v37 }
 0x193   :  { %v624_v51 = vpop.f32.mrf.mxu0 }
 0x194   :  { %v852_v52 = vmax.bf16 %v7599_v1, %v812_v48  ;;  %v625_v58 = vadd.f32 %v624_v51, %v6254_v39 }
 0x195   :  { %v626_v53 = vpop.f32.mrf.mxu0 }
 0x196   :  { %v627_v55 = vadd.f32 %v626_v53, %v6251_v37  ;;  %1521 = vmatprep.mubr.bf16.mxu1 %v852_v52  ;;  %1744 = vmatprep.mubr.bf16.mxu0 %v852_v52 }
 0x197   :  { %v628_v57 = vpop.f32.mrf.mxu0  ;;  %1522 = vmatmul.mubr.bf16.gmra.mxu1 %v851_v54  ;;  %1745 = vmatmul.mubr.bf16.vlgmr.msra.gmra.mxu0 %v851_v54 }
 0x198   :  { %v629_v59 = vadd.f32 %v628_v57, %v6254_v39  ;;  %v813_v60 = vpack.c.bf16 %v627_v55, %v623_v56 }
 0x199   :  { %v632_v61 = vpop.f32.mrf.mxu0 }
 0x19a   :  { %v814_v62 = vpack.c.bf16 %v629_v59, %v625_v58  ;;  %v6270_v5 = vmax.bf16 %v7599_v1, %v813_v60  ;;  %v633_v8 = vadd.f32 %v632_v61, %v6251_v37 }
 0x19b   :  { %v634_v63 = vpop.f32.mrf.mxu0 }
 0x19c   :  { %v6267_v0 = vmax.bf16 %v7599_v1, %v814_v62  ;;  %v635_v10 = vadd.f32 %v634_v63, %v6254_v39 }
 0x19d   :  { %v636_v3 = vpop.f32.mrf.mxu0 }
 0x19e   :  { %v637_v7 = vadd.f32 %v636_v3, %v6251_v37  ;;  %1531 = vmatprep.mubr.bf16.mxu1 %v6267_v0  ;;  %1754 = vmatprep.mubr.bf16.mxu0 %v6267_v0 }
 0x19f   :  { %v638_v9 = vpop.f32.mrf.mxu0  ;;  %1532 = vmatmul.mubr.bf16.gmra.mxu1 %v6270_v5  ;;  %1755 = vmatmul.mubr.bf16.gmra.mxu0 %v6270_v5 }
 0x1a0   :  { %v639_v11 = vadd.f32 %v638_v9, %v6254_v39  ;;  %v815_v4 = vpack.c.bf16 %v637_v7, %v633_v8 }
 0x1a1   :  { %v642_v12 = vpop.f32.mrf.mxu0 }
 0x1a2   :  { %v816_v13 = vpack.c.bf16 %v639_v11, %v635_v10  ;;  %v6284_v17 = vmax.bf16 %v7599_v1, %v815_v4  ;;  %v643_v19 = vadd.f32 %v642_v12, %v6251_v37 }
 0x1a3   :  { %v644_v14 = vpop.f32.mrf.mxu0 }
 0x1a4   :  { %v6281_v15 = vmax.bf16 %v7599_v1, %v816_v13  ;;  %v645_v21 = vadd.f32 %v644_v14, %v6254_v39 }
 0x1a5   :  { %v646_v16 = vpop.f32.mrf.mxu0 }
 0x1a6   :  { %v647_v18 = vadd.f32 %v646_v16, %v6251_v37  ;;  %1541 = vmatprep.mubr.bf16.mxu1 %v6281_v15  ;;  %1764 = vmatprep.mubr.bf16.mxu0 %v6281_v15 }
 0x1a7   :  { %v648_v20 = vpop.f32.mrf.mxu0  ;;  %1542 = vmatmul.mubr.bf16.gmra.mxu1 %v6284_v17  ;;  %1765 = vmatmul.mubr.bf16.gmra.mxu0 %v6284_v17 }
 0x1a8   :  { %v649_v22 = vadd.f32 %v648_v20, %v6254_v39  ;;  %v817_v23 = vpack.c.bf16 %v647_v18, %v643_v19 }
 0x1a9   :  { %v652_v24 = vpop.f32.mrf.mxu0 }
 0x1aa   :  { %v818_v26 = vpack.c.bf16 %v649_v22, %v645_v21  ;;  %v6298_v32 = vmax.bf16 %v7599_v1, %v817_v23  ;;  %v653_v35 = vadd.f32 %v652_v24, %v6251_v37 }
 0x1ab   :  { %v654_v28 = vpop.f32.mrf.mxu0 }
 0x1ac   :  { %v6295_v29 = vmax.bf16 %v7599_v1, %v818_v26  ;;  %v655_v38 = vadd.f32 %v654_v28, %v6254_v39 }
 0x1ad   :  { %v656_v30 = vpop.f32.mrf.mxu0 }
 0x1ae   :  { %v657_v34 = vadd.f32 %v656_v30, %v6251_v37  ;;  %1551 = vmatprep.mubr.bf16.mxu1 %v6295_v29  ;;  %1774 = vmatprep.mubr.bf16.mxu0 %v6295_v29 }
 0x1af   :  { %v658_v36 = vpop.f32.mrf.mxu0  ;;  %1552 = vmatmul.mubr.bf16.gmra.mxu1 %v6298_v32  ;;  %1775 = vmatmul.mubr.bf16.gmra.mxu0 %v6298_v32 }
 0x1b0   :  { %v659_v40 = vadd.f32 %v658_v36, %v6254_v39  ;;  %v819_v41 = vpack.c.bf16 %v657_v34, %v653_v35 }
 0x1b1   :  { %v662_v42 = vpop.f32.mrf.mxu0 }
 0x1b2   :  { %v820_v43 = vpack.c.bf16 %v659_v40, %v655_v38  ;;  %v6312_v47 = vmax.bf16 %v7599_v1, %v819_v41  ;;  %v663_v49 = vadd.f32 %v662_v42, %v6251_v37 }
 0x1b3   :  { %v664_v44 = vpop.f32.mrf.mxu0 }
 0x1b4   :  { %v6309_v45 = vmax.bf16 %v7599_v1, %v820_v43  ;;  %v665_v51 = vadd.f32 %v664_v44, %v6254_v39 }
 0x1b5   :  { %v666_v46 = vpop.f32.mrf.mxu0 }
 0x1b6   :  { %v667_v48 = vadd.f32 %v666_v46, %v6251_v37  ;;  %1561 = vmatprep.mubr.bf16.mxu1 %v6309_v45  ;;  %1784 = vmatprep.mubr.bf16.mxu0 %v6309_v45 }
 0x1b7   :  { %v668_v50 = vpop.f32.mrf.mxu0  ;;  %1562 = vmatmul.mubr.bf16.gmra.mxu1 %v6312_v47  ;;  %1785 = vmatmul.mubr.bf16.gmra.mxu0 %v6312_v47 }
 0x1b8   :  { %v669_v52 = vadd.f32 %v668_v50, %v6254_v39  ;;  %v821_v53 = vpack.c.bf16 %v667_v48, %v663_v49 }
 0x1b9   :  { %v672_v54 = vpop.f32.mrf.mxu0 }
 0x1ba   :  { %v822_v55 = vpack.c.bf16 %v669_v52, %v665_v51  ;;  %v6326_v59 = vmax.bf16 %v7599_v1, %v821_v53  ;;  %v673_v61 = vadd.f32 %v672_v54, %v6251_v37 }
 0x1bb   :  { %v674_v56 = vpop.f32.mrf.mxu0 }
 0x1bc   :  { %v6323_v57 = vmax.bf16 %v7599_v1, %v822_v55  ;;  %v675_v63 = vadd.f32 %v674_v56, %v6254_v39 }
 0x1bd   :  { %v676_v58 = vpop.f32.mrf.mxu0 }
 0x1be   :  { %v677_v60 = vadd.f32 %v676_v58, %v6251_v37  ;;  %1571 = vmatprep.mubr.bf16.mxu1 %v6323_v57  ;;  %1794 = vmatprep.mubr.bf16.mxu0 %v6323_v57 }
 0x1bf   :  { %v678_v62 = vpop.f32.mrf.mxu0  ;;  %1572 = vmatmul.mubr.bf16.gmra.mxu1 %v6326_v59  ;;  %1795 = vmatmul.mubr.bf16.gmra.mxu0 %v6326_v59 }
 0x1c0   :  { %v679_v2 = vadd.f32 %v678_v62, %v6254_v39  ;;  %v823_v3 = vpack.c.bf16 %v677_v60, %v673_v61 }
 0x1c1   :  { %v682_v6 = vpop.f32.mrf.mxu0 }
 0x1c2   :  { %v824_v7 = vpack.c.bf16 %v679_v2, %v675_v63  ;;  %v6340_v11 = vmax.bf16 %v7599_v1, %v823_v3  ;;  %v683_v12 = vadd.f32 %v682_v6, %v6251_v37 }
 0x1c3   :  { %v684_v8 = vpop.f32.mrf.mxu0 }
 0x1c4   :  { %v6337_v9 = vmax.bf16 %v7599_v1, %v824_v7  ;;  %v685_v14 = vadd.f32 %v684_v8, %v6254_v39 }
 0x1c5   :  { %v686_v10 = vpop.f32.mrf.mxu0 }
 0x1c6   :  { %v687_v4 = vadd.f32 %v686_v10, %v6251_v37  ;;  %1581 = vmatprep.mubr.bf16.mxu1 %v6337_v9  ;;  %1804 = vmatprep.mubr.bf16.mxu0 %v6337_v9 }
 0x1c7   :  { %v688_v13 = vpop.f32.mrf.mxu0  ;;  %1582 = vmatmul.mubr.bf16.gmra.mxu1 %v6340_v11  ;;  %1805 = vmatmul.mubr.bf16.gmra.mxu0 %v6340_v11 }
 0x1c8   :  { %v689_v16 = vadd.f32 %v688_v13, %v6254_v39  ;;  %v825_v18 = vpack.c.bf16 %v687_v4, %v683_v12 }
 0x1c9   :  { %v692_v19 = vpop.f32.mrf.mxu0 }
 0x1ca   :  { %v826_v20 = vpack.c.bf16 %v689_v16, %v685_v14  ;;  %v6354_v24 = vmax.bf16 %v7599_v1, %v825_v18  ;;  %v693_v26 = vadd.f32 %v692_v19, %v6251_v37 }
 0x1cb   :  { %v694_v21 = vpop.f32.mrf.mxu0 }
 0x1cc   :  { %v6351_v22 = vmax.bf16 %v7599_v1, %v826_v20  ;;  %v695_v28 = vadd.f32 %v694_v21, %v6254_v39 }
 0x1cd   :  { %v696_v23 = vpop.f32.mrf.mxu0 }
 0x1ce   :  { %v697_v25 = vadd.f32 %v696_v23, %v6251_v37  ;;  %1591 = vmatprep.mubr.bf16.mxu1 %v6351_v22  ;;  %1814 = vmatprep.mubr.bf16.mxu0 %v6351_v22 }
 0x1cf   :  { %v698_v27 = vpop.f32.mrf.mxu0  ;;  %1592 = vmatmul.mubr.bf16.gmra.mxu1 %v6354_v24  ;;  %1815 = vmatmul.mubr.bf16.gmra.mxu0 %v6354_v24 }
 0x1d0   :  { %v699_v30 = vadd.f32 %v698_v27, %v6254_v39  ;;  %v827_v34 = vpack.c.bf16 %v697_v25, %v693_v26 }
 0x1d1   :  { %v702_v35 = vpop.f32.mrf.mxu0 }
 0x1d2   :  { %v828_v36 = vpack.c.bf16 %v699_v30, %v695_v28  ;;  %v6368_v42 = vmax.bf16 %v7599_v1, %v827_v34  ;;  %v703_v44 = vadd.f32 %v702_v35, %v6251_v37 }
 0x1d3   :  { %v704_v38 = vpop.f32.mrf.mxu0 }
 0x1d4   :  { %v6365_v40 = vmax.bf16 %v7599_v1, %v828_v36  ;;  %v705_v48 = vadd.f32 %v704_v38, %v6254_v39 }
 0x1d5   :  { %v706_v41 = vpop.f32.mrf.mxu0 }
 0x1d6   :  { %v707_v43 = vadd.f32 %v706_v41, %v6251_v37  ;;  %1601 = vmatprep.mubr.bf16.mxu1 %v6365_v40  ;;  %1824 = vmatprep.mubr.bf16.mxu0 %v6365_v40 }
 0x1d7   :  { %v708_v46 = vpop.f32.mrf.mxu0  ;;  %1602 = vmatmul.mubr.bf16.gmra.mxu1 %v6368_v42  ;;  %1825 = vmatmul.mubr.bf16.gmra.mxu0 %v6368_v42 }
 0x1d8   :  { %v709_v49 = vadd.f32 %v708_v46, %v6254_v39  ;;  %v829_v50 = vpack.c.bf16 %v707_v43, %v703_v44 }
 0x1d9   :  { %v712_v51 = vpop.f32.mrf.mxu0 }
 0x1da   :  { %v830_v52 = vpack.c.bf16 %v709_v49, %v705_v48  ;;  %v6382_v56 = vmax.bf16 %v7599_v1, %v829_v50  ;;  %v713_v60 = vadd.f32 %v712_v51, %v6251_v37 }
 0x1db   :  { %v714_v53 = vpop.f32.mrf.mxu0 }
 0x1dc   :  { %v6379_v54 = vmax.bf16 %v7599_v1, %v830_v52  ;;  %v715_v62 = vadd.f32 %v714_v53, %v6254_v39 }
 0x1dd   :  { %v716_v55 = vpop.f32.mrf.mxu0 }
 0x1de   :  { %v717_v58 = vadd.f32 %v716_v55, %v6251_v37  ;;  %1611 = vmatprep.mubr.bf16.mxu1 %v6379_v54  ;;  %1834 = vmatprep.mubr.bf16.mxu0 %v6379_v54 }
 0x1df   :  { %v718_v61 = vpop.f32.mrf.mxu0  ;;  %1612 = vmatmul.mubr.bf16.gmra.mxu1 %v6382_v56  ;;  %1835 = vmatmul.mubr.bf16.gmra.mxu0 %v6382_v56 }
 0x1e0   :  { %v719_v63 = vadd.f32 %v718_v61, %v6254_v39  ;;  %v831_v2 = vpack.c.bf16 %v717_v58, %v713_v60 }
 0x1e1   :  { %v722_v3 = vpop.f32.mrf.mxu0 }
 0x1e2   :  { %v832_v6 = vpack.c.bf16 %v719_v63, %v715_v62  ;;  %v6396_v4 = vmax.bf16 %v7599_v1, %v831_v2  ;;  %v723_v13 = vadd.f32 %v722_v3, %v6251_v37 }
 0x1e3   :  { %v724_v7 = vpop.f32.mrf.mxu0 }
 0x1e4   :  { %v6393_v8 = vmax.bf16 %v7599_v1, %v832_v6  ;;  %v725_v16 = vadd.f32 %v724_v7, %v6254_v39 }
 0x1e5   :  { %v726_v10 = vpop.f32.mrf.mxu0 }
 0x1e6   :  { %v727_v12 = vadd.f32 %v726_v10, %v6251_v37  ;;  %1621 = vmatprep.mubr.bf16.mxu1 %v6393_v8  ;;  %1844 = vmatprep.mubr.bf16.mxu0 %v6393_v8 }
 0x1e7   :  { %v728_v14 = vpop.f32.mrf.mxu0  ;;  %1622 = vmatmul.mubr.bf16.gmra.mxu1 %v6396_v4  ;;  %1845 = vmatmul.mubr.bf16.gmra.mxu0 %v6396_v4 }
 0x1e8   :  { %v729_v18 = vadd.f32 %v728_v14, %v6254_v39  ;;  %v833_v19 = vpack.c.bf16 %v727_v12, %v723_v13 }
 0x1e9   :  { %v732_v20 = vpop.f32.mrf.mxu0 }
 0x1ea   :  { %v834_v21 = vpack.c.bf16 %v729_v18, %v725_v16  ;;  %v6410_v27 = vmax.bf16 %v7599_v1, %v833_v19  ;;  %v733_v30 = vadd.f32 %v732_v20, %v6251_v37 }
 0x1eb   :  { %v734_v23 = vpop.f32.mrf.mxu0 }
 0x1ec   :  { %v6407_v25 = vmax.bf16 %v7599_v1, %v834_v21  ;;  %v735_v35 = vadd.f32 %v734_v23, %v6254_v39 }
 0x1ed   :  { %v736_v26 = vpop.f32.mrf.mxu0 }
 0x1ee   :  { %v737_v28 = vadd.f32 %v736_v26, %v6251_v37  ;;  %1631 = vmatprep.mubr.bf16.mxu1 %v6407_v25  ;;  %1854 = vmatprep.mubr.bf16.mxu0 %v6407_v25 }
 0x1ef   :  { %v738_v34 = vpop.f32.mrf.mxu0  ;;  %1632 = vmatmul.mubr.bf16.gmra.mxu1 %v6410_v27  ;;  %1855 = vmatmul.mubr.bf16.gmra.mxu0 %v6410_v27 }
 0x1f0   :  { %v739_v36 = vadd.f32 %v738_v34, %v6254_v39  ;;  %v835_v38 = vpack.c.bf16 %v737_v28, %v733_v30 }
 0x1f1   :  { %v742_v41 = vpop.f32.mrf.mxu0 }
 0x1f2   :  { %v836_v43 = vpack.c.bf16 %v739_v36, %v735_v35  ;;  %v6424_v49 = vmax.bf16 %v7599_v1, %v835_v38  ;;  %v743_v51 = vadd.f32 %v742_v41, %v6251_v37 }
 0x1f3   :  { %v744_v44 = vpop.f32.mrf.mxu0 }
 0x1f4   :  { %v6421_v46 = vmax.bf16 %v7599_v1, %v836_v43  ;;  %v745_v53 = vadd.f32 %v744_v44, %v6254_v39 }
 0x1f5   :  { %v746_v48 = vpop.f32.mrf.mxu0 }
 0x1f6   :  { %v747_v50 = vadd.f32 %v746_v48, %v6251_v37  ;;  %1641 = vmatprep.mubr.bf16.mxu1 %v6421_v46  ;;  %1864 = vmatprep.mubr.bf16.mxu0 %v6421_v46 }
 0x1f7   :  { %v748_v52 = vpop.f32.mrf.mxu0  ;;  %1642 = vmatmul.mubr.bf16.gmra.mxu1 %v6424_v49  ;;  %1865 = vmatmul.mubr.bf16.gmra.mxu0 %v6424_v49 }
 0x1f8   :  { %v749_v55 = vadd.f32 %v748_v52, %v6254_v39  ;;  %v837_v58 = vpack.c.bf16 %v747_v50, %v743_v51 }
 0x1f9   :  { %v752_v60 = vpop.f32.mrf.mxu0 }
 0x1fa   :  { %v838_v61 = vpack.c.bf16 %v749_v55, %v745_v53  ;;  %v6438_v3 = vmax.bf16 %v7599_v1, %v837_v58  ;;  %v753_v7 = vadd.f32 %v752_v60, %v6251_v37 }
 0x1fb   :  { %v754_v62 = vpop.f32.mrf.mxu0 }
 0x1fc   :  { %v6435_v63 = vmax.bf16 %v7599_v1, %v838_v61  ;;  %v755_v12 = vadd.f32 %v754_v62, %v6254_v39 }
 0x1fd   :  { %v756_v2 = vpop.f32.mrf.mxu0 }
 0x1fe   :  { %v757_v6 = vadd.f32 %v756_v2, %v6251_v37  ;;  %1651 = vmatprep.mubr.bf16.mxu1 %v6435_v63  ;;  %1874 = vmatprep.mubr.bf16.mxu0 %v6435_v63 }
 0x1ff   :  { %v758_v10 = vpop.f32.mrf.mxu0  ;;  %1652 = vmatmul.mubr.bf16.gmra.mxu1 %v6438_v3  ;;  %1875 = vmatmul.mubr.bf16.gmra.mxu0 %v6438_v3 }
 0x200   :  { %v759_v13 = vadd.f32 %v758_v10, %v6254_v39  ;;  %v839_v14 = vpack.c.bf16 %v757_v6, %v753_v7 }
 0x201   :  { %v762_v16 = vpop.f32.mrf.mxu0 }
 0x202   :  { %v840_v18 = vpack.c.bf16 %v759_v13, %v755_v12  ;;  %v6452_v23 = vmax.bf16 %v7599_v1, %v839_v14  ;;  %v763_v28 = vadd.f32 %v762_v16, %v6251_v37 }
 0x203   :  { %v764_v19 = vpop.f32.mrf.mxu0 }
 0x204   :  { %v6449_v20 = vmax.bf16 %v7599_v1, %v840_v18  ;;  %v765_v34 = vadd.f32 %v764_v19, %v6254_v39 }
 0x205   :  { %v766_v21 = vpop.f32.mrf.mxu0 }
 0x206   :  { %v767_v26 = vadd.f32 %v766_v21, %v6251_v37  ;;  %1661 = vmatprep.mubr.bf16.mxu1 %v6449_v20  ;;  %1884 = vmatprep.mubr.bf16.mxu0 %v6449_v20 }
 0x207   :  { %v768_v30 = vpop.f32.mrf.mxu0  ;;  %1662 = vmatmul.mubr.bf16.gmra.mxu1 %v6452_v23  ;;  %1885 = vmatmul.mubr.bf16.gmra.mxu0 %v6452_v23 }
 0x208   :  { %v769_v35 = vadd.f32 %v768_v30, %v6254_v39  ;;  %v841_v36 = vpack.c.bf16 %v767_v26, %v763_v28 }
 0x209   :  { %v772_v38 = vpop.f32.mrf.mxu0 }
 0x20a   :  { %v842_v41 = vpack.c.bf16 %v769_v35, %v765_v34  ;;  %v6466_v50 = vmax.bf16 %v7599_v1, %v841_v36  ;;  %v773_v52 = vadd.f32 %v772_v38, %v6251_v37 }
 0x20b   :  { %v774_v43 = vpop.f32.mrf.mxu0 }
 0x20c   :  { %v6463_v44 = vmax.bf16 %v7599_v1, %v842_v41  ;;  %v775_v55 = vadd.f32 %v774_v43, %v6254_v39 }
 0x20d   :  { %v776_v48 = vpop.f32.mrf.mxu0 }
 0x20e   :  { %v777_v51 = vadd.f32 %v776_v48, %v6251_v37  ;;  %1671 = vmatprep.mubr.bf16.mxu1 %v6463_v44  ;;  %1894 = vmatprep.mubr.bf16.mxu0 %v6463_v44 }
 0x20f   :  { %v778_v53 = vpop.f32.mrf.mxu0  ;;  %1672 = vmatmul.mubr.bf16.gmra.mxu1 %v6466_v50  ;;  %1895 = vmatmul.mubr.bf16.gmra.mxu0 %v6466_v50 }
 0x210   :  { %v779_v58 = vadd.f32 %v778_v53, %v6254_v39  ;;  %v843_v60 = vpack.c.bf16 %v777_v51, %v773_v52  ;;  %v5411_v51 = vld [vmem:[#allocation9 + $0x70] ss:$8 sps:$4 sm:$0xff]   ;;  %v5413_v52 = vld [vmem:[#allocation9 + $0x74] ss:$8 sps:$4 sm:$0xff]  }
 0x211   :  { %v782_v61 = vpop.f32.mrf.mxu0  ;;  %2866 = vmatprep.subr.bf16.mxu0 %v5413_v52  ;;  %v5435_v52 = vld [vmem:[#allocation9 + $0x20] ss:$8 sps:$4 sm:$0xff]  }
 0x212   :  { %v844_v62 = vpack.c.bf16 %v779_v58, %v775_v55  ;;  %v6480_v10 = vmax.bf16 %v7599_v1, %v843_v60  ;;  %v783_v13 = vadd.f32 %v782_v61, %v6251_v37  ;;  %2867 = vmatpush1.bf16.msra.mxu0 %v5411_v51  ;;  %v5440_v51 = vld [vmem:[#allocation9 + $0x144] ss:$8 sps:$4 sm:$0xff]  }
 0x213   :  { %v784_v2 = vpop.f32.mrf.mxu0 }
 0x214   :  { %v6477_v6 = vmax.bf16 %v7599_v1, %v844_v62  ;;  %v785_v16 = vadd.f32 %v784_v2, %v6254_v39 }
 0x215   :  { %v786_v7 = vpop.f32.mrf.mxu0 }
 0x216   :  { %v787_v12 = vadd.f32 %v786_v7, %v6251_v37  ;;  %1681 = vmatprep.mubr.bf16.mxu1 %v6477_v6  ;;  %1904 = vmatprep.mubr.bf16.mxu0 %v6477_v6 }
 0x217   :  { %v788_v14 = vpop.f32.mrf.mxu0  ;;  %1682 = vmatmul.mubr.bf16.gmra.mxu1 %v6480_v10  ;;  %1905 = vmatmul.mubr.bf16.gmra.mxu0 %v6480_v10 }
 0x218   :  { %v789_v18 = vadd.f32 %v788_v14, %v6254_v39  ;;  %v845_v19 = vpack.c.bf16 %v787_v12, %v783_v13 }
 0x219   :  { %v792_v21 = vpop.f32.mrf.mxu0 }
 0x21a   :  { %v846_v26 = vpack.c.bf16 %v789_v18, %v785_v16  ;;  %v6494_v35 = vmax.bf16 %v7599_v1, %v845_v19  ;;  %v793_v38 = vadd.f32 %v792_v21, %v6251_v37  ;;  %v5414_v21 = vld [vmem:[#allocation9 + $0x60] ss:$8 sps:$4 sm:$0xff]  }
 0x21b   :  { %v794_v28 = vpop.f32.mrf.mxu0 }
 0x21c   :  { %v6491_v30 = vmax.bf16 %v7599_v1, %v846_v26  ;;  %v795_v43 = vadd.f32 %v794_v28, %v6254_v39  ;;  %v5416_v26 = vld [vmem:[#allocation9 + $0x64] ss:$8 sps:$4 sm:$0xff]  }
 0x21d   :  { %v796_v34 = vpop.f32.mrf.mxu0  ;;  %2868 = vmatprep.subr.bf16.mxu0 %v5416_v26 }
 0x21e   :  { %v797_v36 = vadd.f32 %v796_v34, %v6251_v37  ;;  %1691 = vmatprep.mubr.bf16.mxu1 %v6491_v30  ;;  %1914 = vmatprep.mubr.bf16.mxu0 %v6491_v30  ;;  %v5420_v34 = vld [vmem:[#allocation9 + $0x40] ss:$8 sps:$4 sm:$0xff]  }
 0x21f   :  { %v798_v41 = vpop.f32.mrf.mxu0  ;;  %1692 = vmatmul.mubr.bf16.gmra.mxu1 %v6494_v35  ;;  %1915 = vmatmul.mubr.bf16.gmra.mxu0 %v6494_v35 }
 0x220   :  { %v799_v48 = vadd.f32 %v798_v41, %v6254_v39  ;;  %v847_v53 = vpack.c.bf16 %v797_v36, %v793_v38  ;;  %2869 = vmatpush1.bf16.msra.mxu0 %v5414_v21  ;;  %v5422_v36 = vld [vmem:[#allocation9 + $0x44] ss:$8 sps:$4 sm:$0xff]   ;;  %v5423_v38 = vld [vmem:[#allocation9 + $0x30] ss:$8 sps:$4 sm:$0xff]   ;;  %v6536_v41 = vpop.f32.mrf.mxu1 }
 0x221   :  { %v802_v55 = vpop.f32.mrf.mxu0 }
 0x222   :  { %v848_v58 = vpack.c.bf16 %v799_v48, %v795_v43  ;;  %v803_v61 = vadd.f32 %v802_v55, %v6251_v37  ;;  %v6509_v7 = vmax.bf16 %v7599_v1, %v847_v53  ;;  %v5429_v43 = vld [vmem:[#allocation9 + $0x160] ss:$8 sps:$4 sm:$0xff]   ;;  %v5432_v48 = vld [vmem:[#allocation9 + $0x150] ss:$8 sps:$4 sm:$0xff]  }
 0x223   :  { %v804_v60 = vpop.f32.mrf.mxu0  ;;  %v5438_v53 = vld [vmem:[#allocation9 + $0x140] ss:$8 sps:$4 sm:$0xff]  }
 0x224   :  { %v6506_v62 = vmax.bf16 %v7599_v1, %v848_v58  ;;  %v805_v12 = vadd.f32 %v804_v60, %v6254_v39  ;;  %v5443_v58 = vld [vmem:[#allocation9 + $0x14] ss:$8 sps:$4 sm:$0xff]  }
 0x225   :  { %v806_v2 = vpop.f32.mrf.mxu0  ;;  %v5446_v60 = vld [vmem:[#allocation9 + $0x134] ss:$8 sps:$4 sm:$0xff]  }
 0x226   :  { %v807_v13 = vadd.f32 %v806_v2, %v6251_v37  ;;  %1701 = vmatprep.mubr.bf16.mxu1 %v6506_v62  ;;  %1924 = vmatprep.mubr.bf16.mxu0 %v6506_v62 }
 0x227   :  { %v808_v14 = vpop.f32.mrf.mxu0  ;;  %1702 = vmatmul.mubr.bf16.gmra.mxu1 %v6509_v7  ;;  %1925 = vmatmul.mubr.bf16.gmra.mxu0 %v6509_v7 }
 0x228   :  { %v849_v16 = vpack.c.bf16 %v807_v13, %v803_v61  ;;  %v809_v18 = vadd.f32 %v808_v14, %v6254_v39  ;;  %1977 = vmatprep.mubr.bf16.mxu1 %v6267_v0  ;;  %v5417_v39 = vld [vmem:[#allocation9 + $0x50] ss:$8 sps:$4 sm:$0xff]   ;;  %v5419_v0 = vld [vmem:[#allocation9 + $0x54] ss:$8 sps:$4 sm:$0xff]   ;;  %v5449_v14 = vld [vmem:[#allocation9 + $0x4] ss:$8 sps:$4 sm:$0xff]  }
 0x229   :  { %2870 = vmatprep.subr.bf16.mxu0 %v5419_v0  ;;  %v5441_v61 = vld [vmem:[#allocation9 + $0x10] ss:$8 sps:$4 sm:$0xff]   ;;  %v5458_v0 = vld [vmem:[#allocation9 + $0x114] ss:$8 sps:$4 sm:$0xff]  }
 0x22a   :  { %v850_v19 = vpack.c.bf16 %v809_v18, %v805_v12  ;;  %v6520_v28 = vmax.bf16 %v7599_v1, %v849_v16  ;;  %2871 = vmatpush1.bf16.msra.mxu0 %v5417_v39  ;;  %v5452_v16 = vld [vmem:[#allocation9 + $0x124] ss:$8 sps:$4 sm:$0xff]   ;;  %v5447_v18 = vld [vmem:[#allocation9] ss:$8 sps:$4 sm:$0xff]   ;;  %v5455_v39 = vld [vmem:[#allocation9 + $0xf4] ss:$8 sps:$4 sm:$0xff]  }
 0x22b   :  { %2872 = vmatprep.subr.bf16.mxu0 %v5422_v36  ;;  %v5456_v36 = vld [vmem:[#allocation9 + $0x110] ss:$8 sps:$4 sm:$0xff]  }
 0x22c   :  { %v6523_v37 = vmax.bf16 %v7599_v1, %v850_v19  ;;  %v5450_v19 = vld [vmem:[#allocation9 + $0x120] ss:$8 sps:$4 sm:$0xff]  }
 0x22e   :  { %1934 = vmatprep.mubr.bf16.mxu0 %v6523_v37  ;;  %2873 = vmatpush1.bf16.msra.mxu0 %v5420_v34  ;;  %v5453_v34 = vld [vmem:[#allocation9 + $0xf0] ss:$8 sps:$4 sm:$0xff]  }
 0x22f   :  { %1935 = vmatmul.mubr.bf16.gmra.mxu0 %v6520_v28  ;;  %1978 = vmatmul.mubr.bf16.vlgmr.msra.gmra.mxu1 %v6270_v5  ;;  %v5428_v5 = vld [vmem:[#allocation9 + $0x174] ss:$8 sps:$4 sm:$0xff]  }
 0x230   :  { %1987 = vmatprep.mubr.bf16.mxu1 %v6281_v15  ;;  %2898 = vmatprep.mubr.bf16.mxu0 %v7599_v1  ;;  %v5426_v15 = vld [vmem:[#allocation9 + $0x170] ss:$8 sps:$4 sm:$0xff]  }
 0x231   :  { %2999 = vmatprep.subr.bf16.mxu1 %v5428_v5 }
 0x232   :  { %3000 = vmatpush1.bf16.msra.mxu1 %v5426_v15 }
 0x237   :  { %1988 = vmatmul.mubr.bf16.gmra.mxu1 %v6284_v17  ;;  %v5425_v17 = vld [vmem:[#allocation9 + $0x34] ss:$8 sps:$4 sm:$0xff]  }
 0x238   :  { %1997 = vmatprep.mubr.bf16.mxu1 %v6295_v29  ;;  %v5431_v29 = vld [vmem:[#allocation9 + $0x164] ss:$8 sps:$4 sm:$0xff]   ;;  %2874 = vmatprep.subr.bf16.mxu0 %v5425_v17 }
 0x239   :  { %2875 = vmatpush1.bf16.msra.mxu0 %v5423_v38  ;;  %3001 = vmatprep.subr.bf16.mxu1 %v5431_v29  ;;  %v5461_v29 = vld [vmem:[#allocation9 + $0xe4] ss:$8 sps:$4 sm:$0xff]  }
 0x23a   :  { %3002 = vmatpush1.bf16.msra.mxu1 %v5429_v43  ;;  %v5464_v43 = vld [vmem:[#allocation9 + $0x104] ss:$8 sps:$4 sm:$0xff]  }
 0x23f   :  { %1998 = vmatmul.mubr.bf16.gmra.mxu1 %v6298_v32  ;;  %v6538_v32 = vpop.f32.mrf.mxu1 }
 0x240   :  { %2007 = vmatprep.mubr.bf16.mxu1 %v6309_v45  ;;  %v5434_v45 = vld [vmem:[#allocation9 + $0x154] ss:$8 sps:$4 sm:$0xff]  }
 0x241   :  { %3003 = vmatprep.subr.bf16.mxu1 %v5434_v45  ;;  %v5459_v45 = vld [vmem:[#allocation9 + $0xe0] ss:$8 sps:$4 sm:$0xff]  }
 0x242   :  { %3004 = vmatpush1.bf16.msra.mxu1 %v5432_v48  ;;  %v5462_v48 = vld [vmem:[#allocation9 + $0x100] ss:$8 sps:$4 sm:$0xff]  }
 0x243   :  { %3005 = vmatprep.subr.bf16.mxu1 %v5440_v51 }
 0x246   :  { %3006 = vmatpush1.bf16.msra.mxu1 %v5438_v53  ;;  %v5465_v53 = vld [vmem:[#allocation9 + $0xd0] ss:$8 sps:$4 sm:$0xff]  }
 0x247   :  { %2008 = vmatmul.mubr.bf16.gmra.mxu1 %v6312_v47  ;;  %v6542_v47 = vpop.f32.mrf.mxu1  ;;  %3007 = vmatprep.subr.bf16.mxu1 %v5446_v60 }
 0x248   :  { %2017 = vmatprep.mubr.bf16.mxu1 %v6323_v57  ;;  %v5437_v57 = vld [vmem:[#allocation9 + $0x24] ss:$8 sps:$4 sm:$0xff]  }
 0x249   :  { %2876 = vmatprep.subr.bf16.mxu0 %v5437_v57  ;;  %v6544_v55 = vpop.f32.mrf.mxu1 }
 0x24a   :  { %2877 = vmatpush1.bf16.msra.mxu0 %v5435_v52  ;;  %v5470_v52 = vld [vmem:[#allocation9 + $0x1f4] ss:$8 sps:$4 sm:$0xff]  }
 0x24b   :  { %2878 = vmatprep.subr.bf16.mxu0 %v5443_v58  ;;  %v5468_v58 = vld [vmem:[#allocation9 + $0x1f0] ss:$8 sps:$4 sm:$0xff]  }
 0x24e   :  { %2879 = vmatpush1.bf16.msra.mxu0 %v5441_v61 }
 0x24f   :  { %2018 = vmatmul.mubr.bf16.gmra.mxu1 %v6326_v59  ;;  %v5444_v59 = vld [vmem:[#allocation9 + $0x130] ss:$8 sps:$4 sm:$0xff]   ;;  %2880 = vmatprep.subr.bf16.mxu0 %v5449_v14  ;;  %v5473_v14 = vld [vmem:[#allocation9 + $0xc4] ss:$8 sps:$4 sm:$0xff]  }
 0x250   :  { %2027 = vmatprep.mubr.bf16.mxu1 %v6337_v9  ;;  %3008 = vmatpush1.bf16.msra.mxu1 %v5444_v59 }
 0x251   :  { %3009 = vmatprep.subr.bf16.mxu1 %v5452_v16  ;;  %v5476_v16 = vld [vmem:[#allocation9 + $0x1e4] ss:$8 sps:$4 sm:$0xff]  }
 0x252   :  { %2881 = vmatpush1.bf16.msra.mxu0 %v5447_v18  ;;  %v5471_v18 = vld [vmem:[#allocation9 + $0xc0] ss:$8 sps:$4 sm:$0xff]  }
 0x253   :  { %2882 = vmatprep.subr.bf16.mxu0 %v5455_v39 }
 0x254   :  { %3010 = vmatpush1.bf16.msra.mxu1 %v5450_v19  ;;  %v5474_v19 = vld [vmem:[#allocation9 + $0x1e0] ss:$8 sps:$4 sm:$0xff]  }
 0x255   :  { %3011 = vmatprep.subr.bf16.mxu1 %v5458_v0 }
 0x256   :  { %2883 = vmatpush2.bf16.msra.mxu0 %v5453_v34  ;;  %v5482_v34 = vld [vmem:[#allocation9 + $0x1d4] ss:$8 sps:$4 sm:$0xff]  }
 0x257   :  { %v6546_v2 = vpop.f32.mrf.mxu1  ;;  %v6548_v9 = vpop.f32.mrf.mxu0  ;;  %2028 = vmatmul.mubr.bf16.gmra.mxu1 %v6340_v11  ;;  %2884 = vmatprep.subr.bf16.mxu0 %v5461_v29  ;;  %v5480_v29 = vld [vmem:[#allocation9 + $0x1d0] ss:$8 sps:$4 sm:$0xff]  }
 0x258   :  { %2037 = vmatprep.mubr.bf16.mxu1 %v6351_v22  ;;  %3012 = vmatpush1.bf16.msra.mxu1 %v5456_v36  ;;  %v5477_v36 = vld [vmem:[#allocation9 + $0xb0] ss:$8 sps:$4 sm:$0xff]  }
 0x259   :  { %v6552_v12 = vpop.f32.mrf.mxu1  ;;  %v6554_v13 = vpop.f32.mrf.mxu0  ;;  %3013 = vmatprep.subr.bf16.mxu1 %v5464_v43 }
 0x25a   :  { %2885 = vmatpush2.bf16.msra.mxu0 %v5459_v45 }
 0x25b   :  { %v6556_v21 = vpop.f32.mrf.mxu1  ;;  %v6558_v26 = vpop.f32.mrf.mxu0 }
 0x25c   :  { %3014 = vmatpush1.bf16.msra.mxu1 %v5462_v48 }
 0x25d   :  { %v6560_v11 = vpop.f32.mrf.mxu1  ;;  %v6562_v22 = vpop.f32.mrf.mxu0  ;;  %3015 = vmatprep.subr.bf16.mxu1 %v5470_v52  ;;  %v5488_v52 = vld [vmem:[#allocation9 + $0x1c4] ss:$8 sps:$4 sm:$0xff]  }
 0x25f   :  { %v6564_v5 = vpop.f32.mrf.mxu1  ;;  %v6566_v15 = vpop.f32.mrf.mxu0  ;;  %2038 = vmatmul.mubr.bf16.gmra.mxu1 %v6354_v24 }
 0x260   :  { %2047 = vmatprep.mubr.bf16.mxu1 %v6365_v40  ;;  %v5467_v40 = vld [vmem:[#allocation9 + $0xd4] ss:$8 sps:$4 sm:$0xff]   ;;  %3016 = vmatpush2.bf16.msra.mxu1 %v5468_v58  ;;  %v5486_v58 = vld [vmem:[#allocation9 + $0x1c0] ss:$8 sps:$4 sm:$0xff]  }
 0x261   :  { %v6570_v38 = vpop.f32.mrf.mxu1  ;;  %v6572_v17 = vpop.f32.mrf.mxu0  ;;  %2886 = vmatprep.subr.bf16.mxu0 %v5467_v40  ;;  %3017 = vmatprep.subr.bf16.mxu1 %v5476_v16  ;;  %v5485_v40 = vld [vmem:[#allocation9 + $0xa4] ss:$8 sps:$4 sm:$0xff]  }
 0x262   :  { %2887 = vmatpush2.bf16.msra.mxu0 %v5465_v53  ;;  %v5483_v53 = vld [vmem:[#allocation9 + $0xa0] ss:$8 sps:$4 sm:$0xff]  }
 0x263   :  { %v6574_v57 = vpop.f32.mrf.mxu1  ;;  %v6576_v51 = vpop.f32.mrf.mxu0  ;;  %2888 = vmatprep.subr.bf16.mxu0 %v5473_v14 }
 0x264   :  { %3018 = vmatpush2.bf16.msra.mxu1 %v5474_v19  ;;  %v5489_v19 = vld [vmem:[#allocation9 + $0x90] ss:$8 sps:$4 sm:$0xff]  }
 0x265   :  { %v6578_v24 = vpop.f32.mrf.mxu1  ;;  %v6584_v61 = vpop.f32.mrf.mxu0  ;;  %3019 = vmatprep.subr.bf16.mxu1 %v5482_v34 }
 0x266   :  { %2889 = vmatpush2.bf16.msra.mxu0 %v5471_v18  ;;  %v5494_v18 = vld [vmem:[#allocation9 + $0x1b4] ss:$8 sps:$4 sm:$0xff]  }
 0x267   :  { %v6580_v60 = vpop.f32.mrf.mxu1  ;;  %2048 = vmatmul.mubr.bf16.gmra.mxu1 %v6368_v42  ;;  %v6590_v0 = vpop.f32.mrf.mxu0 }
 0x268   :  { %2057 = vmatprep.mubr.bf16.mxu1 %v6379_v54  ;;  %v5479_v54 = vld [vmem:[#allocation9 + $0xb4] ss:$8 sps:$4 sm:$0xff]   ;;  %3020 = vmatpush2.bf16.msra.mxu1 %v5480_v29 }
 0x269   :  { %v6586_v59 = vpop.f32.mrf.mxu1  ;;  %2890 = vmatprep.subr.bf16.mxu0 %v5479_v54  ;;  %v6598_v45 = vpop.f32.mrf.mxu0  ;;  %3021 = vmatprep.subr.bf16.mxu1 %v5488_v52  ;;  %v5492_v54 = vld [vmem:[#allocation9 + $0x1b0] ss:$8 sps:$4 sm:$0xff]   ;;  %v5500_v52 = vld [vmem:[#allocation9 + $0x1a4] ss:$8 sps:$4 sm:$0xff]  }
 0x26a   :  { %2891 = vmatpush2.bf16.msra.mxu0 %v5477_v36 }
 0x26b   :  { %v6588_v39 = vpop.f32.mrf.mxu1  ;;  %2892 = vmatprep.subr.bf16.mxu0 %v5485_v40  ;;  %v6604_v16 = vpop.f32.mrf.mxu0  ;;  %v5497_v40 = vld [vmem:[#allocation9 + $0x84] ss:$8 sps:$4 sm:$0xff]  }
 0x26c   :  { %3022 = vmatpush2.bf16.msra.mxu1 %v5486_v58  ;;  %v5498_v58 = vld [vmem:[#allocation9 + $0x1a0] ss:$8 sps:$4 sm:$0xff]  }
 0x26d   :  { %v6592_v42 = vpop.f32.mrf.mxu1  ;;  %3023 = vmatprep.subr.bf16.mxu1 %v5494_v18  ;;  %v6612_v36 = vpop.f32.mrf.mxu0 }
 0x26e   :  { %2893 = vmatpush2.bf16.msra.mxu0 %v5483_v53  ;;  %v5495_v53 = vld [vmem:[#allocation9 + $0x80] ss:$8 sps:$4 sm:$0xff]  }
 0x26f   :  { %v6594_v43 = vpop.f32.mrf.mxu1  ;;  %2058 = vmatmul.mubr.bf16.gmra.mxu1 %v6382_v56 }
 0x270   :  { %2067 = vmatprep.mubr.bf16.mxu1 %v6393_v8  ;;  %v5491_v8 = vld [vmem:[#allocation9 + $0x94] ss:$8 sps:$4 sm:$0xff]   ;;  %3024 = vmatpush2.bf16.msra.mxu1 %v5492_v54 }
 0x271   :  { %v6600_v48 = vpop.f32.mrf.mxu1  ;;  %2894 = vmatprep.subr.bf16.mxu0 %v5491_v8  ;;  %3025 = vmatprep.subr.bf16.mxu1 %v5500_v52  ;;  %v5501_v8 = vld [vmem:[#allocation9 + $0x190] ss:$8 sps:$4 sm:$0xff]   ;;  %v5506_v52 = vld [vmem:[#allocation9 + $0x184] ss:$8 sps:$4 sm:$0xff]  }
 0x272   :  { %2895 = vmatpush2.bf16.msra.mxu0 %v5489_v19  ;;  %v7610_v19 = vmov 0  }
 0x273   :  { %v6602_v14 = vpop.f32.mrf.mxu1  ;;  %2896 = vmatprep.subr.bf16.mxu0 %v5497_v40 }
 0x274   :  { %3026 = vmatpush2.bf16.msra.mxu1 %v5498_v58 }
 0x275   :  { %v6606_v56 = vpop.f32.mrf.mxu1 }
 0x276   :  { %2897 = vmatpush2.bf16.msra.mxu0 %v5495_v53 }
 0x277   :  { %v6608_v34 = vpop.f32.mrf.mxu1  ;;  %2068 = vmatmul.mubr.bf16.gmra.mxu1 %v6396_v4 }
 0x278   :  { %7607 = vst [vmem:[#allocation22_spill] sm:$0xff] %v6608_v34  ;;  %2077 = vmatprep.mubr.bf16.mxu1 %v6407_v25  ;;  %v6618_v34 = vpop.f32.mrf.mxu0  ;;  %v5503_v25 = vld [vmem:[#allocation9 + $0x194] ss:$8 sps:$4 sm:$0xff]  }
 0x279   :  { %v6614_v29 = vpop.f32.mrf.mxu1  ;;  %3027 = vmatprep.subr.bf16.mxu1 %v5503_v25  ;;  %2899 = vmatmul.mubr.bf16.vlgmr.msra.gmra.mxu0 %v7610_v19 }
 0x27a   :  { %v6627_v54 = vpop.f32.mrf.mxu0  ;;  %3028 = vmatpush2.bf16.msra.mxu1 %v5501_v8 }
 0x27b   :  { %v6616_v1 = vpop.f32.mrf.mxu1  ;;  %3029 = vmatprep.subr.bf16.mxu1 %v5506_v52 }
 0x27c   :  { %v6633_v58 = vpop.f32.mrf.mxu0 }
 0x27d   :  { %v6620_v4 = vpop.f32.mrf.mxu1 }
 0x27e   :  { %7608 = vst [vmem:[#allocation23_spill] sm:$0xff] %v6620_v4  ;;  %v5504_v4 = vld [vmem:[#allocation9 + $0x180] ss:$8 sps:$4 sm:$0xff]  }
 0x27f   :  { %v6622_v18 = vpop.f32.mrf.mxu1  ;;  %2078 = vmatmul.mubr.bf16.gmra.mxu1 %v6410_v27 }
 0x280   :  { %7609 = vst [vmem:[#allocation24_spill] sm:$0xff] %v6622_v18  ;;  %2087 = vmatprep.mubr.bf16.mxu1 %v6421_v46  ;;  %3030 = vmatpush2.bf16.msra.mxu1 %v5504_v4  ;;  %v6641_v46 = vpop.f32.mrf.mxu0 }
 0x281   :  { %v6629_v40 = vpop.f32.mrf.mxu1 }
 0x282   :  { %7611 = vst [vmem:[#allocation25_spill] sm:$0xff] %v6629_v40  ;;  %v6647_v40 = vpop.f32.mrf.mxu0 }
 0x283   :  { %v6631_v53 = vpop.f32.mrf.mxu1 }
 0x284   :  { %7612 = vst [vmem:[#allocation26_spill] sm:$0xff] %v6631_v53  ;;  %v6655_v4 = vpop.f32.mrf.mxu0 }
 0x285   :  { %v6635_v18 = vpop.f32.mrf.mxu1 }
 0x286   :  { %7613 = vst [vmem:[#allocation27_spill] sm:$0xff] %v6635_v18  ;;  %v5537_v18 = vld [vmem:[#allocation9 + $0x2d0] ss:$8 sps:$4 sm:$0xff]  }
 0x287   :  { %v6637_v27 = vpop.f32.mrf.mxu1  ;;  %2088 = vmatmul.mubr.bf16.gmra.mxu1 %v6424_v49 }
 0x288   :  { %7614 = vst [vmem:[#allocation28_spill] sm:$0xff] %v6637_v27  ;;  %2097 = vmatprep.mubr.bf16.mxu1 %v6435_v63  ;;  %v6661_v27 = vpop.f32.mrf.mxu0 }
 0x289   :  { %v6643_v25 = vpop.f32.mrf.mxu1 }
 0x28a   :  { %7615 = vst [vmem:[#allocation29_spill] sm:$0xff] %v6643_v25 }
 0x28b   :  { %v6645_v8 = vpop.f32.mrf.mxu1 }
 0x28c   :  { %7616 = vst [vmem:[#allocation30_spill] sm:$0xff] %v6645_v8 }
 0x28d   :  { %v6649_v52 = vpop.f32.mrf.mxu1 }
 0x28e   :  { %7617 = vst [vmem:[#allocation31_spill] sm:$0xff] %v6649_v52 }
 0x28f   :  { %v6651_v53 = vpop.f32.mrf.mxu1  ;;  %2098 = vmatmul.mubr.bf16.gmra.mxu1 %v6438_v3 }
 0x290   :  { %7618 = vst [vmem:[#allocation32_spill] sm:$0xff] %v6651_v53  ;;  %2107 = vmatprep.mubr.bf16.mxu1 %v6449_v20  ;;  %v6669_v53 = vpop.f32.mrf.mxu0 }
 0x291   :  { %v6657_v49 = vpop.f32.mrf.mxu1 }
 0x292   :  { %7619 = vst [vmem:[#allocation33_spill] sm:$0xff] %v6657_v49  ;;  %v6675_v52 = vpop.f32.mrf.mxu0 }
 0x293   :  { %v6659_v63 = vpop.f32.mrf.mxu1 }
 0x294   :  { %7620 = vst [vmem:[#allocation34_spill] sm:$0xff] %v6659_v63 }
 0x295   :  { %v6663_v25 = vpop.f32.mrf.mxu1 }
 0x296   :  { %7621 = vst [vmem:[#allocation35_spill] sm:$0xff] %v6663_v25 }
 0x297   :  { %v6665_v8 = vpop.f32.mrf.mxu1  ;;  %2108 = vmatmul.mubr.bf16.gmra.mxu1 %v6452_v23 }
 0x298   :  { %7622 = vst [vmem:[#allocation36_spill] sm:$0xff] %v6665_v8  ;;  %2117 = vmatprep.mubr.bf16.mxu1 %v6463_v44  ;;  %v6683_v8 = vpop.f32.mrf.mxu0 }
 0x299   :  { %v6671_v3 = vpop.f32.mrf.mxu1 }
 0x29a   :  { %7623 = vst [vmem:[#allocation37_spill] sm:$0xff] %v6671_v3  ;;  %v6689_v25 = vpop.f32.mrf.mxu0 }
 0x29b   :  { %v6673_v20 = vpop.f32.mrf.mxu1 }
 0x29c   :  { %7624 = vst [vmem:[#allocation38_spill] sm:$0xff] %v6673_v20 }
 0x29d   :  { %v6677_v49 = vpop.f32.mrf.mxu1 }
 0x29e   :  { %7625 = vst [vmem:[#allocation39_spill] sm:$0xff] %v6677_v49 }
 0x29f   :  { %v6679_v63 = vpop.f32.mrf.mxu1  ;;  %2118 = vmatmul.mubr.bf16.gmra.mxu1 %v6466_v50 }
 0x2a0   :  { %7626 = vst [vmem:[#allocation40_spill] sm:$0xff] %v6679_v63  ;;  %2127 = vmatprep.mubr.bf16.mxu1 %v6477_v6  ;;  %v6697_v63 = vpop.f32.mrf.mxu0 }
 0x2a1   :  { %v6685_v23 = vpop.f32.mrf.mxu1 }
 0x2a2   :  { %7627 = vst [vmem:[#allocation41_spill] sm:$0xff] %v6685_v23  ;;  %v6703_v49 = vpop.f32.mrf.mxu0 }
 0x2a3   :  { %v6687_v44 = vpop.f32.mrf.mxu1  ;;  %7633 = vst [vmem:[#allocation47_spill] sm:$0xff] %v6703_v49 }
 0x2a4   :  { %7628 = vst [vmem:[#allocation42_spill] sm:$0xff] %v6687_v44 }
 0x2a5   :  { %v6691_v3 = vpop.f32.mrf.mxu1 }
 0x2a6   :  { %7629 = vst [vmem:[#allocation43_spill] sm:$0xff] %v6691_v3 }
 0x2a7   :  { %v6693_v20 = vpop.f32.mrf.mxu1  ;;  %2128 = vmatmul.mubr.bf16.gmra.mxu1 %v6480_v10 }
 0x2a8   :  { %7630 = vst [vmem:[#allocation44_spill] sm:$0xff] %v6693_v20  ;;  %2137 = vmatprep.mubr.bf16.mxu1 %v6491_v30  ;;  %v6711_v20 = vpop.f32.mrf.mxu0 }
 0x2a9   :  { %v6699_v50 = vpop.f32.mrf.mxu1  ;;  %7636 = vst [vmem:[#allocation50_spill] sm:$0xff] %v6711_v20 }
 0x2aa   :  { %7631 = vst [vmem:[#allocation45_spill] sm:$0xff] %v6699_v50  ;;  %v6717_v3 = vpop.f32.mrf.mxu0 }
 0x2ab   :  { %v6701_v6 = vpop.f32.mrf.mxu1  ;;  %7639 = vst [vmem:[#allocation53_spill] sm:$0xff] %v6717_v3  ;;  %v5530_v3 = vld [vmem:[#allocation9 + $0x204] ss:$8 sps:$4 sm:$0xff]  }
 0x2ac   :  { %7632 = vst [vmem:[#allocation46_spill] sm:$0xff] %v6701_v6 }
 0x2ad   :  { %v6705_v23 = vpop.f32.mrf.mxu1 }
 0x2ae   :  { %7634 = vst [vmem:[#allocation48_spill] sm:$0xff] %v6705_v23 }
 0x2af   :  { %v6707_v44 = vpop.f32.mrf.mxu1  ;;  %2138 = vmatmul.mubr.bf16.gmra.mxu1 %v6494_v35 }
 0x2b0   :  { %7635 = vst [vmem:[#allocation49_spill] sm:$0xff] %v6707_v44  ;;  %2147 = vmatprep.mubr.bf16.mxu1 %v6506_v62  ;;  %v6725_v44 = vpop.f32.mrf.mxu0 }
 0x2b1   :  { %v6713_v10 = vpop.f32.mrf.mxu1  ;;  %7642 = vst [vmem:[#allocation56_spill] sm:$0xff] %v6725_v44 }
 0x2b2   :  { %7637 = vst [vmem:[#allocation51_spill] sm:$0xff] %v6713_v10  ;;  %v6731_v23 = vpop.f32.mrf.mxu0 }
 0x2b3   :  { %v6715_v30 = vpop.f32.mrf.mxu1  ;;  %7645 = vst [vmem:[#allocation59_spill] sm:$0xff] %v6731_v23 }
 0x2b4   :  { %7638 = vst [vmem:[#allocation52_spill] sm:$0xff] %v6715_v30 }
 0x2b5   :  { %v6719_v50 = vpop.f32.mrf.mxu1 }
 0x2b6   :  { %7640 = vst [vmem:[#allocation54_spill] sm:$0xff] %v6719_v50  ;;  %v5509_v50 = vld [vmem:[#allocation9 + $0x274] ss:$8 sps:$4 sm:$0xff]  }
 0x2b7   :  { %v6721_v6 = vpop.f32.mrf.mxu1  ;;  %2148 = vmatmul.mubr.bf16.gmra.mxu1 %v6509_v7  ;;  %3132 = vmatprep.subr.bf16.mxu0 %v5509_v50  ;;  %v5513_v50 = vld [vmem:[#allocation9 + $0x250] ss:$8 sps:$4 sm:$0xff]  }
 0x2b8   :  { %7641 = vst [vmem:[#allocation55_spill] sm:$0xff] %v6721_v6  ;;  %2157 = vmatprep.mubr.bf16.mxu1 %v6523_v37  ;;  %v6739_v6 = vpop.f32.mrf.mxu0  ;;  %v5507_v37 = vld [vmem:[#allocation9 + $0x270] ss:$8 sps:$4 sm:$0xff]  }
 0x2b9   :  { %v6727_v35 = vpop.f32.mrf.mxu1  ;;  %7648 = vst [vmem:[#allocation62_spill] sm:$0xff] %v6739_v6  ;;  %3133 = vmatpush1.bf16.msra.mxu0 %v5507_v37 }
 0x2ba   :  { %7643 = vst [vmem:[#allocation57_spill] sm:$0xff] %v6727_v35  ;;  %v6745_v35 = vpop.f32.mrf.mxu0 }
 0x2bb   :  { %v6729_v62 = vpop.f32.mrf.mxu1  ;;  %7651 = vst [vmem:[#allocation65_spill] sm:$0xff] %v6745_v35 }
 0x2bc   :  { %7644 = vst [vmem:[#allocation58_spill] sm:$0xff] %v6729_v62  ;;  %v6752_v23 = vpop.f32.mrf.mxu0 }
 0x2bd   :  { %v6733_v10 = vpop.f32.mrf.mxu1  ;;  %7654 = vst [vmem:[#allocation68_spill] sm:$0xff] %v6752_v23  ;;  %v5516_v23 = vld [vmem:[#allocation9 + $0x240] ss:$8 sps:$4 sm:$0xff]  }
 0x2be   :  { %7646 = vst [vmem:[#allocation60_spill] sm:$0xff] %v6733_v10 }
 0x2bf   :  { %v6735_v30 = vpop.f32.mrf.mxu1  ;;  %2158 = vmatmul.mubr.bf16.gmra.mxu1 %v6520_v28  ;;  %v5510_v28 = vld [vmem:[#allocation9 + $0x260] ss:$8 sps:$4 sm:$0xff]  }
 0x2c0   :  { %7647 = vst [vmem:[#allocation61_spill] sm:$0xff] %v6735_v30  ;;  %2167 = vmatprep.mubr.bf16.mxu1 %v7610_v19  ;;  %v5512_v30 = vld [vmem:[#allocation9 + $0x264] ss:$8 sps:$4 sm:$0xff]  }
 0x2c1   :  { %v6741_v7 = vpop.f32.mrf.mxu1  ;;  %3134 = vmatprep.subr.bf16.mxu0 %v5512_v30 }
 0x2c2   :  { %7649 = vst [vmem:[#allocation63_spill] sm:$0xff] %v6741_v7  ;;  %v5515_v7 = vld [vmem:[#allocation9 + $0x254] ss:$8 sps:$4 sm:$0xff]   ;;  %3135 = vmatpush1.bf16.msra.mxu0 %v5510_v28 }
 0x2c3   :  { %v6743_v44 = vpop.f32.mrf.mxu1  ;;  %3136 = vmatprep.subr.bf16.mxu0 %v5515_v7 }
 0x2c4   :  { %7650 = vst [vmem:[#allocation64_spill] sm:$0xff] %v6743_v44  ;;  %v6758_v44 = vpop.f32.mrf.mxu0 }
 0x2c5   :  { %v6747_v62 = vpop.f32.mrf.mxu1  ;;  %7657 = vst [vmem:[#allocation71_spill] sm:$0xff] %v6758_v44  ;;  %v5521_v44 = vld [vmem:[#allocation9 + $0x234] ss:$8 sps:$4 sm:$0xff]  }
 0x2c6   :  { %7652 = vst [vmem:[#allocation66_spill] sm:$0xff] %v6747_v62  ;;  %3137 = vmatpush1.bf16.msra.mxu0 %v5513_v50  ;;  %v6764_v62 = vpop.f32.mrf.mxu0 }
 0x2c7   :  { %v6749_v10 = vpop.f32.mrf.mxu1  ;;  %2168 = vmatmul.mubr.bf16.gmra.mxu1 %v7610_v19  ;;  %7660 = vst [vmem:[#allocation74_spill] sm:$0xff] %v6764_v62 }
 0x2c8   :  { %7653 = vst [vmem:[#allocation67_spill] sm:$0xff] %v6749_v10 }
 0x2c9   :  { %v6754_v6 = vpop.f32.mrf.mxu1 }
 0x2ca   :  { %7655 = vst [vmem:[#allocation69_spill] sm:$0xff] %v6754_v6  ;;  %v5518_v6 = vld [vmem:[#allocation9 + $0x244] ss:$8 sps:$4 sm:$0xff]  }
 0x2cb   :  { %v6756_v20 = vpop.f32.mrf.mxu1  ;;  %3138 = vmatprep.subr.bf16.mxu0 %v5518_v6 }
 0x2cc   :  { %7656 = vst [vmem:[#allocation70_spill] sm:$0xff] %v6756_v20  ;;  %v6770_v20 = vpop.f32.mrf.mxu0  ;;  %3139 = vmatpush1.bf16.msra.mxu0 %v5516_v23 }
 0x2cd   :  { %v6760_v37 = vpop.f32.mrf.mxu1  ;;  %7663 = vst [vmem:[#allocation77_spill] sm:$0xff] %v6770_v20  ;;  %3140 = vmatprep.subr.bf16.mxu0 %v5521_v44 }
 0x2ce   :  { %7658 = vst [vmem:[#allocation72_spill] sm:$0xff] %v6760_v37  ;;  %v5519_v37 = vld [vmem:[#allocation9 + $0x230] ss:$8 sps:$4 sm:$0xff]  }
 0x2cf   :  { %v6762_v10 = vpop.f32.mrf.mxu1 }
 0x2d0   :  { %7659 = vst [vmem:[#allocation73_spill] sm:$0xff] %v6762_v10  ;;  %v6776_v10 = vpop.f32.mrf.mxu0  ;;  %3141 = vmatpush1.bf16.msra.mxu0 %v5519_v37 }
 0x2d1   :  { %v6766_v35 = vpop.f32.mrf.mxu1  ;;  %7666 = vst [vmem:[#allocation80_spill] sm:$0xff] %v6776_v10  ;;  %v5525_v10 = vld [vmem:[#allocation9 + $0x210] ss:$8 sps:$4 sm:$0xff]  }
 0x2d2   :  { %7661 = vst [vmem:[#allocation75_spill] sm:$0xff] %v6766_v35  ;;  %v5524_v35 = vld [vmem:[#allocation9 + $0x224] ss:$8 sps:$4 sm:$0xff]   ;;  %v6782_v6 = vpop.f32.mrf.mxu0 }
 0x2d3   :  { %v6768_v30 = vpop.f32.mrf.mxu1  ;;  %3142 = vmatprep.subr.bf16.mxu0 %v5524_v35  ;;  %7669 = vst [vmem:[#allocation83_spill] sm:$0xff] %v6782_v6 }
 0x2d4   :  { %7662 = vst [vmem:[#allocation76_spill] sm:$0xff] %v6768_v30  ;;  %v5522_v30 = vld [vmem:[#allocation9 + $0x220] ss:$8 sps:$4 sm:$0xff]  }
 0x2d5   :  { %v6772_v28 = vpop.f32.mrf.mxu1  ;;  %3143 = vmatpush1.bf16.msra.mxu0 %v5522_v30  ;;  %v987_v30 = vld [vmem:[%s7589_s4] sm:$0x3] }
 0x2d6   :  { %7664 = vst [vmem:[#allocation78_spill] sm:$0xff] %v6772_v28 }
 0x2d7   :  { %v6774_v7 = vpop.f32.mrf.mxu1 }
 0x2d8   :  { %7665 = vst [vmem:[#allocation79_spill] sm:$0xff] %v6774_v7  ;;  %v6788_v7 = vpop.f32.mrf.mxu0 }
 0x2d9   :  { %v6778_v50 = vpop.f32.mrf.mxu1  ;;  %7672 = vst [vmem:[#allocation86_spill] sm:$0xff] %v6788_v7 }
 0x2da   :  { %7667 = vst [vmem:[#allocation81_spill] sm:$0xff] %v6778_v50  ;;  %v5527_v50 = vld [vmem:[#allocation9 + $0x214] ss:$8 sps:$4 sm:$0xff]   ;;  %v6794_v37 = vpop.f32.mrf.mxu0 }
 0x2db   :  { %v6780_v62 = vpop.f32.mrf.mxu1  ;;  %3144 = vmatprep.subr.bf16.mxu0 %v5527_v50  ;;  %7675 = vst [vmem:[#allocation89_spill] sm:$0xff] %v6794_v37  ;;  %v5533_v50 = vld [vmem:[#allocation9 + $0x2f4] ss:$8 sps:$4 sm:$0xff]  }
 0x2dc   :  { %7668 = vst [vmem:[#allocation82_spill] sm:$0xff] %v6780_v62  ;;  %3145 = vmatpush1.bf16.msra.mxu0 %v5525_v10  ;;  %v5528_v62 = vld [vmem:[#allocation9 + $0x200] ss:$8 sps:$4 sm:$0xff]  }
 0x2dd   :  { %v6784_v20 = vpop.f32.mrf.mxu1  ;;  %3146 = vmatprep.subr.bf16.mxu0 %v5530_v3 }
 0x2de   :  { %7670 = vst [vmem:[#allocation84_spill] sm:$0xff] %v6784_v20 }
 0x2df   :  { %v6786_v23 = vpop.f32.mrf.mxu1 }
 0x2e0   :  { %7671 = vst [vmem:[#allocation85_spill] sm:$0xff] %v6786_v23  ;;  %3147 = vmatpush1.bf16.msra.mxu0 %v5528_v62 }
 0x2e1   :  { %v6790_v28 = vpop.f32.mrf.mxu1  ;;  %3148 = vmatprep.subr.bf16.mxu0 %v5533_v50 }
 0x2e2   :  { %7673 = vst [vmem:[#allocation87_spill] sm:$0xff] %v6790_v28  ;;  %v6803_v28 = vpop.f32.mrf.mxu0 }
 0x2e3   :  { %v6792_v44 = vpop.f32.mrf.mxu1  ;;  %7678 = vst [vmem:[#allocation92_spill] sm:$0xff] %v6803_v28 }
 0x2e4   :  { %7674 = vst [vmem:[#allocation88_spill] sm:$0xff] %v6792_v44  ;;  %v5531_v44 = vld [vmem:[#allocation9 + $0x2f0] ss:$8 sps:$4 sm:$0xff]   ;;  %v6812_v3 = vpop.f32.mrf.mxu0 }
 0x2e5   :  { %v6796_v35 = vpop.f32.mrf.mxu1  ;;  %7681 = vst [vmem:[#allocation95_spill] sm:$0xff] %v6812_v3  ;;  %3149 = vmatpush2.bf16.msra.mxu0 %v5531_v44  ;;  %v5539_v44 = vld [vmem:[#allocation9 + $0x2d4] ss:$8 sps:$4 sm:$0xff]  }
 0x2e6   :  { %7676 = vst [vmem:[#allocation90_spill] sm:$0xff] %v6796_v35  ;;  %v6810_v35 = vrot.slane %v987_v30, %v6243_v31  ;;  %v6823_v31 = vrot.slane %v987_v30, %v6248_v33 }
 0x2e7   :  { %v6798_v20 = vpop.f32.mrf.mxu1 }
 0x2e8   :  { %7677 = vst [vmem:[#allocation91_spill] sm:$0xff] %v6798_v20  ;;  %v1514_v28 = vadd.f32 %v6536_v41, %v6810_v35  ;;  %v1518_v62 = vadd.f32 %v6542_v47, %v6810_v35  ;;  %v1520_v30 = vadd.f32 %v6544_v55, %v6823_v31 }
 0x2e9   :  { %v6805_v23 = vpop.f32.mrf.mxu1 }
 0x2ea   :  { %7679 = vst [vmem:[#allocation93_spill] sm:$0xff] %v6805_v23  ;;  %v6820_v23 = vpop.f32.mrf.mxu0  ;;  %v1747_v50 = vadd.f32 %v6548_v9, %v1514_v28  ;;  %v1751_v3 = vadd.f32 %v6558_v26, %v1518_v62  ;;  %v1516_v9 = vadd.f32 %v6538_v32, %v6823_v31  ;;  %v1524_v28 = vadd.f32 %v6546_v2, %v6810_v35 }
 0x2eb   :  { %v6807_v7 = vpop.f32.mrf.mxu1  ;;  %7683 = vst [vmem:[#allocation97_spill] sm:$0xff] %v6820_v23  ;;  %v1530_v32 = vadd.f32 %v6560_v11, %v6823_v31  ;;  %v5545_v11 = vld [vmem:[#allocation9 + $0x2b4] ss:$8 sps:$4 sm:$0xff]  }
 0x2ec   :  { %7680 = vst [vmem:[#allocation94_spill] sm:$0xff] %v6807_v7  ;;  %v5536_v7 = vld [vmem:[#allocation9 + $0x2e4] ss:$8 sps:$4 sm:$0xff]   ;;  %v6827_v47 = vpop.f32.mrf.mxu0  ;;  %v1757_v2 = vadd.f32 %v6566_v15, %v1524_v28 }
 0x2ed   :  { %v6814_v10 = vpop.f32.mrf.mxu1  ;;  %3150 = vmatprep.subr.bf16.mxu0 %v5536_v7  ;;  %v1753_v7 = vadd.f32 %v6562_v22, %v1520_v30 }
 0x2ee   :  { %7682 = vst [vmem:[#allocation96_spill] sm:$0xff] %v6814_v10  ;;  %v5534_v10 = vld [vmem:[#allocation9 + $0x2e0] ss:$8 sps:$4 sm:$0xff]   ;;  %v6841_v55 = vpop.f32.mrf.mxu0 }
 0x2ef   :  { %v1979_v20 = vpop.f32.mrf.mxu1  ;;  %3151 = vmatpush2.bf16.msra.mxu0 %v5534_v10  ;;  %7684 = vst [vmem:[#allocation98_spill] sm:$0xff] %v6841_v55  ;;  %v5542_v10 = vld [vmem:[#allocation9 + $0x2c4] ss:$8 sps:$4 sm:$0xff]  }
 0x2f0   :  { %v1980_v49 = vadd.f32 %v1979_v20, %v1747_v50  ;;  %3152 = vmatprep.subr.bf16.mxu0 %v5539_v44  ;;  %v1528_v20 = vadd.f32 %v6556_v21, %v6810_v35  ;;  %v5540_v50 = vld [vmem:[#allocation9 + $0x2c0] ss:$8 sps:$4 sm:$0xff]   ;;  %v6849_v30 = vpop.f32.mrf.mxu0 }
 0x2f1   :  { %v1981_v37 = vpop.f32.mrf.mxu1 }
 0x2f2   :  { %v1761_v62 = vadd.f32 %v6576_v51, %v1528_v20 }
 0x2f3   :  { %v1983_v6 = vpop.f32.mrf.mxu1  ;;  %3153 = vmatpush2.bf16.msra.mxu0 %v5537_v18 }
 0x2f4   :  { %v1984_v41 = vadd.f32 %v1983_v6, %v1751_v3  ;;  %v1526_v6 = vadd.f32 %v6552_v12, %v6823_v31  ;;  %v1749_v3 = vadd.f32 %v6554_v13, %v1516_v9  ;;  %3154 = vmatprep.subr.bf16.mxu0 %v5542_v10  ;;  %v1763_v12 = vadd.f32 %v6584_v61, %v1530_v32  ;;  %v5548_v32 = vld [vmem:[#allocation9 + $0x2a4] ss:$8 sps:$4 sm:$0xff]  }
 0x2f5   :  { %v1985_v23 = vpop.f32.mrf.mxu1  ;;  %v1538_v61 = vadd.f32 %v6574_v57, %v6810_v35 }
 0x2f6   :  { %v2178_v33 = vpack.c.bf16 %v1984_v41, %v1980_v49  ;;  %v1986_v21 = vadd.f32 %v1985_v23, %v1753_v7  ;;  %v1759_v22 = vadd.f32 %v6572_v17, %v1526_v6  ;;  %v1982_v13 = vadd.f32 %v1981_v37, %v1749_v3  ;;  %v5543_v23 = vld [vmem:[#allocation9 + $0x2b0] ss:$8 sps:$4 sm:$0xff]  }
 0x2f7   :  { %v1989_v26 = vpop.f32.mrf.mxu1  ;;  %3155 = vmatpush2.bf16.msra.mxu0 %v5540_v50  ;;  %v1534_v17 = vadd.f32 %v6564_v5, %v6810_v35  ;;  %v1536_v6 = vadd.f32 %v6570_v38, %v6823_v31  ;;  %v1540_v3 = vadd.f32 %v6578_v24, %v6823_v31  ;;  %v6862_v5 = vpop.f32.mrf.mxu0  ;;  %v1771_v57 = vadd.f32 %v6604_v16, %v1538_v61  ;;  %v5551_v16 = vld [vmem:[#allocation9 + $0x294] ss:$8 sps:$4 sm:$0xff]  }
 0x2f8   :  { %v1990_v44 = vadd.f32 %v1989_v26, %v1757_v2  ;;  %v2179_v55 = vpack.c.bf16 %v1986_v21, %v1982_v13  ;;  %3156 = vmatprep.subr.bf16.mxu0 %v5545_v11  ;;  %v2218_v37 = vmax.bf16 %v7610_v19, %v2178_v33  ;;  %v5546_v21 = vld [vmem:[#allocation9 + $0x2a0] ss:$8 sps:$4 sm:$0xff]  }
 0x2f9   :  { %v1991_v49 = vpop.f32.mrf.mxu1  ;;  %v1769_v50 = vadd.f32 %v6598_v45, %v1536_v6  ;;  %v1773_v24 = vadd.f32 %v6612_v36, %v1540_v3  ;;  %v1544_v45 = vadd.f32 %v6580_v60, %v6810_v35  ;;  %v1548_v36 = vadd.f32 %v6588_v39, %v6810_v35 }
 0x2fa   :  { %v1992_v15 = vadd.f32 %v1991_v49, %v1759_v22  ;;  %v1767_v49 = vadd.f32 %v6590_v0, %v1534_v17  ;;  %v2219_v33 = vmax.bf16 %v7610_v19, %v2179_v55  ;;  %v1546_v17 = vadd.f32 %v6586_v59, %v6823_v31 }
 0x2fb   :  { %v1993_v18 = vpop.f32.mrf.mxu1  ;;  %3157 = vmatpush2.bf16.msra.mxu0 %v5543_v23  ;;  %v5554_v23 = vld [vmem:[#allocation9 + $0x284] ss:$8 sps:$4 sm:$0xff]   ;;  %v1777_v61 = vadd.f32 %v6618_v34, %v1544_v45  ;;  %v1781_v60 = vadd.f32 %v6633_v58, %v1548_v36  ;;  %v1554_v34 = vadd.f32 %v6594_v43, %v6810_v35 }
 0x2fc   :  { %v1994_v41 = vadd.f32 %v1993_v18, %v1761_v62  ;;  %3158 = vmatprep.subr.bf16.mxu0 %v5548_v32  ;;  %v1779_v39 = vadd.f32 %v6627_v54, %v1546_v17 }
 0x2fd   :  { %v1995_v9 = vpop.f32.mrf.mxu1 }
 0x2fe   :  { %v2180_v28 = vpack.c.bf16 %v1994_v41, %v1990_v44  ;;  %v1996_v51 = vadd.f32 %v1995_v9, %v1763_v12  ;;  %v6869_v12 = vpop.f32.mrf.mxu0  ;;  %v5549_v9 = vld [vmem:[#allocation9 + $0x290] ss:$8 sps:$4 sm:$0xff]  }
 0x2ff   :  { %v1999_v20 = vpop.f32.mrf.mxu1  ;;  %3159 = vmatpush2.bf16.msra.mxu0 %v5546_v21  ;;  %v1787_v21 = vadd.f32 %v6647_v40, %v1554_v34 }
 0x300   :  { %v2220_v26 = vmax.bf16 %v7610_v19, %v2180_v28  ;;  %v2181_v7 = vpack.c.bf16 %v1996_v51, %v1992_v15  ;;  %v2000_v22 = vadd.f32 %v1999_v20, %v1767_v49  ;;  %3160 = vmatprep.subr.bf16.mxu0 %v5551_v16  ;;  %v6875_v28 = vpop.f32.mrf.mxu0  ;;  %v1550_v20 = vadd.f32 %v6592_v42, %v6823_v31 }
 0x301   :  { %v2001_v10 = vpop.f32.mrf.mxu1 }
 0x302   :  { %v2258_v2 = vmax.bf16 %v2220_v26, %v2218_v37  ;;  %v2221_v62 = vmax.bf16 %v7610_v19, %v2181_v7  ;;  %v2002_v44 = vadd.f32 %v2001_v10, %v1769_v50  ;;  %v5552_v37 = vld [vmem:[#allocation9 + $0x280] ss:$8 sps:$4 sm:$0xff]   ;;  %v1783_v7 = vadd.f32 %v6641_v46, %v1550_v20  ;;  %v6885_v49 = vpop.f32.mrf.mxu0 }
 0x303   :  { %v2003_v38 = vpop.f32.mrf.mxu1  ;;  %3161 = vmatpush2.bf16.msra.mxu0 %v5549_v9 }
 0x304   :  { %v2004_v0 = vadd.f32 %v2003_v38, %v1771_v57  ;;  %v2259_v18 = vmax.bf16 %v2221_v62, %v2219_v33  ;;  %3162 = vmatprep.subr.bf16.mxu0 %v5554_v23  ;;  %v1558_v57 = vadd.f32 %v6602_v14, %v6810_v35  ;;  %v1560_v62 = vadd.f32 %v6606_v56, %v6823_v31  ;;  %v6898_v50 = vpop.f32.mrf.mxu0  ;;  %v7686_v23 = vld [vmem:[#allocation23_spill] sm:$0xff] }
 0x305   :  { %v2005_v13 = vpop.f32.mrf.mxu1  ;;  %v1570_v17 = vadd.f32 %v7686_v23, %v6823_v31 }
 0x306   :  { %v2182_v55 = vpack.c.bf16 %v2004_v0, %v2000_v22  ;;  %v2006_v41 = vadd.f32 %v2005_v13, %v1773_v24  ;;  %2908 = vmatprep.mubr.bf16.mxu0 %v2259_v18  ;;  %3031 = vmatprep.mubr.bf16.mxu1 %v2259_v18  ;;  %v1791_v38 = vadd.f32 %v6661_v27, %v1558_v57  ;;  %v6909_v40 = vpop.f32.mrf.mxu0 }
 0x307   :  { %v2009_v11 = vpop.f32.mrf.mxu1  ;;  %2909 = vmatmul.mubr.bf16.gmra.mxu0 %v2258_v2  ;;  %3032 = vmatmul.mubr.bf16.vlgmr.msra.gmra.mxu1 %v2258_v2  ;;  %v1556_v2 = vadd.f32 %v6600_v48, %v6823_v31  ;;  %v1793_v48 = vadd.f32 %v6669_v53, %v1560_v62  ;;  %v7685_v53 = vld [vmem:[#allocation22_spill] sm:$0xff] }
 0x308   :  { %v2183_v15 = vpack.c.bf16 %v2006_v41, %v2002_v44  ;;  %v2010_v6 = vadd.f32 %v2009_v11, %v1777_v61  ;;  %3163 = vmatpush2.bf16.msra.mxu0 %v5552_v37  ;;  %v2222_v54 = vmax.bf16 %v7610_v19, %v2182_v55  ;;  %v1568_v11 = vadd.f32 %v6616_v1, %v6810_v35  ;;  %v6919_v36 = vpop.f32.mrf.mxu0 }
 0x309   :  { %v2011_v51 = vpop.f32.mrf.mxu1  ;;  %v1789_v0 = vadd.f32 %v6655_v4, %v1556_v2  ;;  %v1564_v4 = vadd.f32 %v7685_v53, %v6810_v35 }
 0x30a   :  { %v2012_v59 = vadd.f32 %v2011_v51, %v1779_v39  ;;  %v2223_v14 = vmax.bf16 %v7610_v19, %v2183_v15  ;;  %v1566_v51 = vadd.f32 %v6614_v29, %v6823_v31  ;;  %v1801_v61 = vadd.f32 %v6689_v25, %v1568_v11 }
 0x30b   :  { %v2013_v26 = vpop.f32.mrf.mxu1  ;;  %v1797_v20 = vadd.f32 %v6675_v52, %v1564_v4  ;;  %v7688_v52 = vld [vmem:[#allocation26_spill] sm:$0xff] }
 0x30c   :  { %v2014_v3 = vadd.f32 %v2013_v26, %v1781_v60  ;;  %v1799_v37 = vadd.f32 %v6683_v8, %v1566_v51  ;;  %v1803_v26 = vadd.f32 %v6697_v63, %v1570_v17  ;;  %v1578_v25 = vadd.f32 %v7688_v52, %v6810_v35  ;;  %v7695_v51 = vld [vmem:[#allocation28_spill] sm:$0xff]  ;;  %v7696_v17 = vld [vmem:[#allocation30_spill] sm:$0xff] }
 0x30d   :  { %v2015_v10 = vpop.f32.mrf.mxu1  ;;  %v1584_v23 = vadd.f32 %v7695_v51, %v6810_v35 }
 0x30e   :  { %v2184_v32 = vpack.c.bf16 %v2014_v3, %v2010_v6  ;;  %v2016_v42 = vadd.f32 %v2015_v10, %v1783_v7  ;;  %v6929_v7 = vpop.f32.mrf.mxu0 }
 0x30f   :  { %v2019_v58 = vpop.f32.mrf.mxu1 }
 0x310   :  { %v2224_v46 = vmax.bf16 %v7610_v19, %v2184_v32  ;;  %v2185_v33 = vpack.c.bf16 %v2016_v42, %v2012_v59  ;;  %v2020_v13 = vadd.f32 %v2019_v58, %v1787_v21  ;;  %v7687_v59 = vld [vmem:[#allocation24_spill] sm:$0xff]  ;;  %v7689_v58 = vld [vmem:[#allocation25_spill] sm:$0xff]  ;;  %v6942_v62 = vpop.f32.mrf.mxu0 }
 0x311   :  { %v2021_v43 = vpop.f32.mrf.mxu1  ;;  %v1574_v32 = vadd.f32 %v7687_v59, %v6810_v35  ;;  %v1576_v57 = vadd.f32 %v7689_v58, %v6823_v31 }
 0x312   :  { %v6902_v24 = vmax.bf16 %v2224_v46, %v2222_v54  ;;  %v2225_v22 = vmax.bf16 %v7610_v19, %v2185_v33  ;;  %v2022_v55 = vadd.f32 %v2021_v43, %v1789_v0  ;;  %v7690_v54 = vld [vmem:[#allocation27_spill] sm:$0xff]  ;;  %v7692_v43 = vld [vmem:[#allocation53_spill] sm:$0xff] }
 0x313   :  { %v2023_v18 = vpop.f32.mrf.mxu1  ;;  %v1580_v46 = vadd.f32 %v7690_v54, %v6823_v31  ;;  %v7691_v33 = vld [vmem:[#allocation47_spill] sm:$0xff] }
 0x314   :  { %v2024_v56 = vadd.f32 %v2023_v18, %v1791_v38  ;;  %v6907_v16 = vmax.bf16 %v2225_v22, %v2223_v14  ;;  %v1807_v2 = vadd.f32 %v7691_v33, %v1574_v32  ;;  %v1811_v38 = vadd.f32 %v7692_v43, %v1578_v25  ;;  %v7693_v18 = vld [vmem:[#allocation50_spill] sm:$0xff]  ;;  %v7702_v25 = vld [vmem:[#allocation68_spill] sm:$0xff] }
 0x315   :  { %v2025_v44 = vpop.f32.mrf.mxu1 }
 0x316   :  { %v2186_v27 = vpack.c.bf16 %v2024_v56, %v2020_v13  ;;  %v2026_v41 = vadd.f32 %v2025_v44, %v1793_v48  ;;  %2918 = vmatprep.mubr.bf16.mxu0 %v6907_v16  ;;  %3041 = vmatprep.mubr.bf16.mxu1 %v6907_v16  ;;  %v1809_v48 = vadd.f32 %v7693_v18, %v1576_v57  ;;  %v7694_v56 = vld [vmem:[#allocation56_spill] sm:$0xff] }
 0x317   :  { %v2029_v9 = vpop.f32.mrf.mxu1  ;;  %2919 = vmatmul.mubr.bf16.gmra.mxu0 %v6902_v24  ;;  %3042 = vmatmul.mubr.bf16.gmra.mxu1 %v6902_v24  ;;  %v1813_v44 = vadd.f32 %v7694_v56, %v1580_v46 }
 0x318   :  { %v2187_v45 = vpack.c.bf16 %v2026_v41, %v2022_v55  ;;  %v2030_v1 = vadd.f32 %v2029_v9, %v1797_v20  ;;  %v2226_v34 = vmax.bf16 %v7610_v19, %v2186_v27  ;;  %v6953_v9 = vpop.f32.mrf.mxu0  ;;  %v1588_v20 = vadd.f32 %v7696_v17, %v6810_v35 }
 0x319   :  { %v2031_v15 = vpop.f32.mrf.mxu1 }
 0x31a   :  { %v2032_v3 = vadd.f32 %v2031_v15, %v1799_v37  ;;  %v2227_v14 = vmax.bf16 %v7610_v19, %v2187_v45 }
 0x31b   :  { %v2033_v60 = vpop.f32.mrf.mxu1 }
 0x31c   :  { %v2034_v39 = vadd.f32 %v2033_v60, %v1801_v61  ;;  %v6963_v60 = vpop.f32.mrf.mxu0 }
 0x31d   :  { %v2035_v6 = vpop.f32.mrf.mxu1 }
 0x31e   :  { %v2188_v10 = vpack.c.bf16 %v2034_v39, %v2030_v1  ;;  %v2036_v29 = vadd.f32 %v2035_v6, %v1803_v26  ;;  %v7697_v26 = vld [vmem:[#allocation29_spill] sm:$0xff]  ;;  %v7698_v39 = vld [vmem:[#allocation31_spill] sm:$0xff]  ;;  %v6973_v58 = vpop.f32.mrf.mxu0 }
 0x31f   :  { %v2039_v42 = vpop.f32.mrf.mxu1  ;;  %v1586_v1 = vadd.f32 %v7697_v26, %v6823_v31  ;;  %v1590_v6 = vadd.f32 %v7698_v39, %v6823_v31 }
 0x320   :  { %v2228_v8 = vmax.bf16 %v7610_v19, %v2188_v10  ;;  %v2189_v63 = vpack.c.bf16 %v2036_v29, %v2032_v3  ;;  %v2040_v55 = vadd.f32 %v2039_v42, %v1807_v2  ;;  %v7699_v3 = vld [vmem:[#allocation59_spill] sm:$0xff]  ;;  %v7700_v29 = vld [vmem:[#allocation65_spill] sm:$0xff]  ;;  %v7701_v42 = vld [vmem:[#allocation62_spill] sm:$0xff] }
 0x321   :  { %v2041_v21 = vpop.f32.mrf.mxu1  ;;  %v1817_v10 = vadd.f32 %v7699_v3, %v1584_v23  ;;  %v1821_v59 = vadd.f32 %v7700_v29, %v1588_v20  ;;  %v1819_v52 = vadd.f32 %v7701_v42, %v1586_v1  ;;  %v7703_v2 = vld [vmem:[#allocation32_spill] sm:$0xff]  ;;  %v7709_v20 = vld [vmem:[#allocation74_spill] sm:$0xff] }
 0x322   :  { %v6946_v22 = vmax.bf16 %v2228_v8, %v2226_v34  ;;  %v2229_v0 = vmax.bf16 %v7610_v19, %v2189_v63  ;;  %v2042_v4 = vadd.f32 %v2041_v21, %v1809_v48  ;;  %v1823_v34 = vadd.f32 %v7702_v25, %v1590_v6  ;;  %v7710_v1 = vld [vmem:[#allocation80_spill] sm:$0xff] }
 0x323   :  { %v2043_v13 = vpop.f32.mrf.mxu1  ;;  %v1594_v21 = vadd.f32 %v7703_v2, %v6810_v35  ;;  %v7711_v25 = vld [vmem:[#allocation36_spill] sm:$0xff] }
 0x324   :  { %v2044_v27 = vadd.f32 %v2043_v13, %v1811_v38  ;;  %v6951_v41 = vmax.bf16 %v2229_v0, %v2227_v14  ;;  %v7704_v38 = vld [vmem:[#allocation34_spill] sm:$0xff]  ;;  %v7705_v13 = vld [vmem:[#allocation33_spill] sm:$0xff] }
 0x325   :  { %v2045_v53 = vpop.f32.mrf.mxu1  ;;  %v1598_v14 = vadd.f32 %v7704_v38, %v6810_v35  ;;  %v1596_v56 = vadd.f32 %v7705_v13, %v6823_v31  ;;  %v7715_v38 = vld [vmem:[#allocation83_spill] sm:$0xff]  ;;  %v7717_v13 = vld [vmem:[#allocation86_spill] sm:$0xff] }
 0x326   :  { %v2190_v11 = vpack.c.bf16 %v2044_v27, %v2040_v55  ;;  %v2046_v15 = vadd.f32 %v2045_v53, %v1813_v44  ;;  %2928 = vmatprep.mubr.bf16.mxu0 %v6951_v41  ;;  %3051 = vmatprep.mubr.bf16.mxu1 %v6951_v41  ;;  %v7706_v44 = vld [vmem:[#allocation35_spill] sm:$0xff] }
 0x327   :  { %v2049_v45 = vpop.f32.mrf.mxu1  ;;  %2929 = vmatmul.mubr.bf16.gmra.mxu0 %v6946_v22  ;;  %3052 = vmatmul.mubr.bf16.gmra.mxu1 %v6946_v22  ;;  %v1600_v55 = vadd.f32 %v7706_v44, %v6823_v31  ;;  %v7707_v27 = vld [vmem:[#allocation71_spill] sm:$0xff]  ;;  %v7718_v44 = vld [vmem:[#allocation92_spill] sm:$0xff] }
 0x328   :  { %v2191_v61 = vpack.c.bf16 %v2046_v15, %v2042_v4  ;;  %v2050_v8 = vadd.f32 %v2049_v45, %v1817_v10  ;;  %v2230_v0 = vmax.bf16 %v7610_v19, %v2190_v11  ;;  %v1827_v53 = vadd.f32 %v7707_v27, %v1594_v21  ;;  %v6986_v4 = vpop.f32.mrf.mxu0  ;;  %v7708_v45 = vld [vmem:[#allocation77_spill] sm:$0xff]  ;;  %v7714_v21 = vld [vmem:[#allocation39_spill] sm:$0xff] }
 0x329   :  { %v2051_v37 = vpop.f32.mrf.mxu1  ;;  %v1831_v51 = vadd.f32 %v7708_v45, %v1598_v14  ;;  %v1833_v39 = vadd.f32 %v7710_v1, %v1600_v55  ;;  %v7720_v1 = vld [vmem:[#allocation42_spill] sm:$0xff] }
 0x32a   :  { %v2052_v54 = vadd.f32 %v2051_v37, %v1819_v52  ;;  %v2231_v23 = vmax.bf16 %v7610_v19, %v2191_v61  ;;  %v1829_v37 = vadd.f32 %v7709_v20, %v1596_v56  ;;  %v6997_v29 = vpop.f32.mrf.mxu0  ;;  %v7719_v20 = vld [vmem:[#allocation40_spill] sm:$0xff] }
 0x32b   :  { %v2053_v32 = vpop.f32.mrf.mxu1 }
 0x32c   :  { %v2054_v63 = vadd.f32 %v2053_v32, %v1821_v59 }
 0x32d   :  { %v2055_v57 = vpop.f32.mrf.mxu1 }
 0x32e   :  { %v2192_v46 = vpack.c.bf16 %v2054_v63, %v2050_v8  ;;  %v2056_v33 = vadd.f32 %v2055_v57, %v1823_v34  ;;  %v1604_v34 = vadd.f32 %v7711_v25, %v6810_v35  ;;  %v7712_v8 = vld [vmem:[#allocation38_spill] sm:$0xff] }
 0x32f   :  { %v2059_v43 = vpop.f32.mrf.mxu1  ;;  %v1608_v63 = vadd.f32 %v7712_v8, %v6810_v35 }
 0x330   :  { %v2232_v18 = vmax.bf16 %v7610_v19, %v2192_v46  ;;  %v2193_v48 = vpack.c.bf16 %v2056_v33, %v2052_v54  ;;  %v2060_v6 = vadd.f32 %v2059_v43, %v1827_v53  ;;  %v7007_v54 = vpop.f32.mrf.mxu0  ;;  %v7713_v33 = vld [vmem:[#allocation37_spill] sm:$0xff]  ;;  %v1610_v43 = vadd.f32 %v7714_v21, %v6823_v31 }
 0x331   :  { %v2061_v15 = vpop.f32.mrf.mxu1  ;;  %v1606_v2 = vadd.f32 %v7713_v33, %v6823_v31  ;;  %v1837_v14 = vadd.f32 %v7715_v38, %v1604_v34  ;;  %v7723_v34 = vld [vmem:[#allocation95_spill] sm:$0xff] }
 0x332   :  { %v6990_v17 = vmax.bf16 %v2232_v18, %v2230_v0  ;;  %v2233_v11 = vmax.bf16 %v7610_v19, %v2193_v48  ;;  %v2062_v32 = vadd.f32 %v2061_v15, %v1829_v37  ;;  %v7716_v0 = vld [vmem:[#allocation89_spill] sm:$0xff]  ;;  %v1843_v55 = vadd.f32 %v7718_v44, %v1610_v43  ;;  %v7017_v15 = vpop.f32.mrf.mxu0 }
 0x333   :  { %v2063_v26 = vpop.f32.mrf.mxu1  ;;  %v1841_v18 = vadd.f32 %v7716_v0, %v1608_v63  ;;  %v1839_v56 = vadd.f32 %v7717_v13, %v1606_v2  ;;  %v1614_v37 = vadd.f32 %v7719_v20, %v6810_v35  ;;  %v7724_v43 = vld [vmem:[#allocation97_spill] sm:$0xff]  ;;  %v7725_v0 = vld [vmem:[#allocation98_spill] sm:$0xff] }
 0x334   :  { %v2064_v3 = vadd.f32 %v2063_v26, %v1831_v51  ;;  %v6995_v10 = vmax.bf16 %v2233_v11, %v2231_v23  ;;  %v7030_v63 = vpop.f32.mrf.mxu0 }
 0x335   :  { %v2065_v59 = vpop.f32.mrf.mxu1  ;;  %v1847_v8 = vadd.f32 %v7723_v34, %v1614_v37 }
 0x336   :  { %v2194_v42 = vpack.c.bf16 %v2064_v3, %v2060_v6  ;;  %v2066_v52 = vadd.f32 %v2065_v59, %v1833_v39  ;;  %2938 = vmatprep.mubr.bf16.mxu0 %v6995_v10  ;;  %3061 = vmatprep.mubr.bf16.mxu1 %v6995_v10  ;;  %v1618_v39 = vadd.f32 %v7720_v1, %v6810_v35  ;;  %v7041_v44 = vpop.f32.mrf.mxu0  ;;  %v7728_v1 = vld [vmem:[#allocation45_spill] sm:$0xff] }
 0x337   :  { %v2069_v61 = vpop.f32.mrf.mxu1  ;;  %2939 = vmatmul.mubr.bf16.gmra.mxu0 %v6990_v17  ;;  %3062 = vmatmul.mubr.bf16.gmra.mxu1 %v6990_v17 }
 0x338   :  { %v2195_v57 = vpack.c.bf16 %v2066_v52, %v2062_v32  ;;  %v2070_v27 = vadd.f32 %v2069_v61, %v1837_v14  ;;  %v2234_v6 = vmax.bf16 %v7610_v19, %v2194_v42  ;;  %v7721_v32 = vld [vmem:[#allocation41_spill] sm:$0xff]  ;;  %v7722_v61 = vld [vmem:[#allocation43_spill] sm:$0xff]  ;;  %v1851_v33 = vadd.f32 %v6827_v47, %v1618_v39  ;;  %v7051_v37 = vpop.f32.mrf.mxu0 }
 0x339   :  { %v2071_v46 = vpop.f32.mrf.mxu1  ;;  %v1616_v52 = vadd.f32 %v7721_v32, %v6823_v31  ;;  %v1620_v25 = vadd.f32 %v7722_v61, %v6823_v31  ;;  %v1626_v39 = vadd.f32 %v7728_v1, %v6823_v31 }
 0x33a   :  { %v2072_v51 = vadd.f32 %v2071_v46, %v1839_v56  ;;  %v2235_v2 = vmax.bf16 %v7610_v19, %v2195_v57 }
 0x33b   :  { %v2073_v48 = vpop.f32.mrf.mxu1  ;;  %v1849_v38 = vadd.f32 %v7724_v43, %v1616_v52  ;;  %v1859_v61 = vadd.f32 %v6862_v5, %v1626_v39 }
 0x33c   :  { %v2074_v53 = vadd.f32 %v2073_v48, %v1841_v18  ;;  %v1853_v18 = vadd.f32 %v7725_v0, %v1620_v25 }
 0x33d   :  { %v2075_v45 = vpop.f32.mrf.mxu1 }
 0x33e   :  { %v2196_v23 = vpack.c.bf16 %v2074_v53, %v2070_v27  ;;  %v2076_v11 = vadd.f32 %v2075_v45, %v1843_v55  ;;  %v7726_v45 = vld [vmem:[#allocation44_spill] sm:$0xff] }
 0x33f   :  { %v2079_v26 = vpop.f32.mrf.mxu1 }
 0x340   :  { %v2236_v3 = vmax.bf16 %v7610_v19, %v2196_v23  ;;  %v2197_v59 = vpack.c.bf16 %v2076_v11, %v2072_v51  ;;  %v2080_v48 = vadd.f32 %v2079_v26, %v1847_v8  ;;  %v1624_v51 = vadd.f32 %v7726_v45, %v6810_v35  ;;  %v7727_v23 = vld [vmem:[#allocation46_spill] sm:$0xff] }
 0x341   :  { %v2081_v46 = vpop.f32.mrf.mxu1  ;;  %v1628_v11 = vadd.f32 %v7727_v23, %v6810_v35 }
 0x342   :  { %v7034_v21 = vmax.bf16 %v2236_v3, %v2234_v6  ;;  %v2237_v42 = vmax.bf16 %v7610_v19, %v2197_v59  ;;  %v2082_v27 = vadd.f32 %v2081_v46, %v1849_v38  ;;  %v7729_v6 = vld [vmem:[#allocation48_spill] sm:$0xff]  ;;  %v1857_v59 = vadd.f32 %v6849_v30, %v1624_v51  ;;  %v7061_v46 = vpop.f32.mrf.mxu0  ;;  %v7730_v38 = vld [vmem:[#allocation49_spill] sm:$0xff] }
 0x343   :  { %v2083_v14 = vpop.f32.mrf.mxu1  ;;  %v1630_v3 = vadd.f32 %v7729_v6, %v6823_v31  ;;  %v1861_v32 = vadd.f32 %v6869_v12, %v1628_v11  ;;  %v7731_v30 = vld [vmem:[#allocation52_spill] sm:$0xff] }
 0x344   :  { %v2084_v13 = vadd.f32 %v2083_v14, %v1851_v33  ;;  %v7039_v56 = vmax.bf16 %v2237_v42, %v2235_v2  ;;  %v1634_v14 = vadd.f32 %v7730_v38, %v6810_v35  ;;  %v1638_v12 = vadd.f32 %v7731_v30, %v6810_v35 }
 0x345   :  { %v2085_v55 = vpop.f32.mrf.mxu1  ;;  %v1863_v25 = vadd.f32 %v6875_v28, %v1630_v3 }
 0x346   :  { %v2198_v47 = vpack.c.bf16 %v2084_v13, %v2080_v48  ;;  %v2086_v53 = vadd.f32 %v2085_v55, %v1853_v18  ;;  %2948 = vmatprep.mubr.bf16.mxu0 %v7039_v56  ;;  %3071 = vmatprep.mubr.bf16.mxu1 %v7039_v56  ;;  %v1867_v48 = vadd.f32 %v6885_v49, %v1634_v14  ;;  %v7070_v13 = vpop.f32.mrf.mxu0  ;;  %v7732_v49 = vld [vmem:[#allocation54_spill] sm:$0xff] }
 0x347   :  { %v2089_v57 = vpop.f32.mrf.mxu1  ;;  %2949 = vmatmul.mubr.bf16.gmra.mxu0 %v7034_v21  ;;  %3072 = vmatmul.mubr.bf16.gmra.mxu1 %v7034_v21  ;;  %v1640_v39 = vadd.f32 %v7732_v49, %v6823_v31 }
 0x348   :  { %v2199_v20 = vpack.c.bf16 %v2086_v53, %v2082_v27  ;;  %v2090_v34 = vadd.f32 %v2089_v57, %v1857_v59  ;;  %v2238_v18 = vmax.bf16 %v7610_v19, %v2198_v47  ;;  %v1871_v27 = vadd.f32 %v6909_v40, %v1638_v12  ;;  %v7733_v40 = vld [vmem:[#allocation51_spill] sm:$0xff] }
 0x349   :  { %v2091_v26 = vpop.f32.mrf.mxu1  ;;  %v7734_v59 = vld [vmem:[#allocation55_spill] sm:$0xff] }
 0x34a   :  { %v2092_v2 = vadd.f32 %v2091_v26, %v1859_v61  ;;  %v2239_v53 = vmax.bf16 %v7610_v19, %v2199_v20  ;;  %v7079_v26 = vpop.f32.mrf.mxu0  ;;  %v1636_v20 = vadd.f32 %v7733_v40, %v6823_v31 }
 0x34b   :  { %v2093_v52 = vpop.f32.mrf.mxu1 }
 0x34c   :  { %v2094_v8 = vadd.f32 %v2093_v52, %v1861_v32  ;;  %v1644_v32 = vadd.f32 %v7734_v59, %v6810_v35  ;;  %v7735_v52 = vld [vmem:[#allocation58_spill] sm:$0xff] }
 0x34d   :  { %v2095_v33 = vpop.f32.mrf.mxu1  ;;  %v1648_v61 = vadd.f32 %v7735_v52, %v6810_v35 }
 0x34e   :  { %v2200_v42 = vpack.c.bf16 %v2094_v8, %v2090_v34  ;;  %v2096_v43 = vadd.f32 %v2095_v33, %v1863_v25  ;;  %v1873_v25 = vadd.f32 %v6919_v36, %v1640_v39  ;;  %v7736_v34 = vld [vmem:[#allocation57_spill] sm:$0xff]  ;;  %v1869_v33 = vadd.f32 %v6898_v50, %v1636_v20 }
 0x34f   :  { %v2099_v0 = vpop.f32.mrf.mxu1  ;;  %v1646_v8 = vadd.f32 %v7736_v34, %v6823_v31  ;;  %v1877_v14 = vadd.f32 %v6929_v7, %v1644_v32  ;;  %v7738_v7 = vld [vmem:[#allocation61_spill] sm:$0xff] }
 0x350   :  { %v2240_v5 = vmax.bf16 %v7610_v19, %v2200_v42  ;;  %v2201_v28 = vpack.c.bf16 %v2096_v43, %v2092_v2  ;;  %v2100_v23 = vadd.f32 %v2099_v0, %v1867_v48  ;;  %v7097_v2 = vpop.f32.mrf.mxu0  ;;  %v7737_v43 = vld [vmem:[#allocation60_spill] sm:$0xff]  ;;  %v1881_v0 = vadd.f32 %v6953_v9, %v1648_v61 }
 0x351   :  { %v2101_v55 = vpop.f32.mrf.mxu1  ;;  %v1650_v38 = vadd.f32 %v7737_v43, %v6823_v31  ;;  %v1879_v12 = vadd.f32 %v6942_v62, %v1646_v8 }
 0x352   :  { %v7074_v57 = vmax.bf16 %v2240_v5, %v2238_v18  ;;  %v2241_v45 = vmax.bf16 %v7610_v19, %v2201_v28  ;;  %v2102_v5 = vadd.f32 %v2101_v55, %v1869_v33  ;;  %v7105_v50 = vpop.f32.mrf.mxu0 }
 0x353   :  { %v2103_v51 = vpop.f32.mrf.mxu1  ;;  %v1883_v36 = vadd.f32 %v6963_v60, %v1650_v38 }
 0x354   :  { %v2104_v11 = vadd.f32 %v2103_v51, %v1871_v27  ;;  %v7077_v47 = vmax.bf16 %v2241_v45, %v2239_v53  ;;  %v7114_v40 = vpop.f32.mrf.mxu0 }
 0x355   :  { %v2105_v1 = vpop.f32.mrf.mxu1 }
 0x356   :  { %v2202_v6 = vpack.c.bf16 %v2104_v11, %v2100_v23  ;;  %2958 = vmatprep.mubr.bf16.mxu0 %v7077_v47  ;;  %3081 = vmatprep.mubr.bf16.mxu1 %v7077_v47  ;;  %v2106_v30 = vadd.f32 %v2105_v1, %v1873_v25  ;;  %v1654_v11 = vadd.f32 %v7738_v7, %v6810_v35  ;;  %v7739_v1 = vld [vmem:[#allocation64_spill] sm:$0xff]  ;;  %v7123_v8 = vpop.f32.mrf.mxu0 }
 0x357   :  { %v2109_v3 = vpop.f32.mrf.mxu1  ;;  %2959 = vmatmul.mubr.bf16.gmra.mxu0 %v7074_v57  ;;  %3082 = vmatmul.mubr.bf16.gmra.mxu1 %v7074_v57  ;;  %v1658_v62 = vadd.f32 %v7739_v1, %v6810_v35 }
 0x358   :  { %v2110_v28 = vadd.f32 %v2109_v3, %v1877_v14  ;;  %v2203_v53 = vpack.c.bf16 %v2106_v30, %v2102_v5  ;;  %v2242_v49 = vmax.bf16 %v7610_v19, %v2202_v6  ;;  %v1887_v39 = vadd.f32 %v6973_v58, %v1654_v11  ;;  %v7740_v58 = vld [vmem:[#allocation66_spill] sm:$0xff]  ;;  %v7744_v5 = vld [vmem:[#allocation69_spill] sm:$0xff] }
 0x359   :  { %v2111_v42 = vpop.f32.mrf.mxu1  ;;  %v1891_v3 = vadd.f32 %v6997_v29, %v1658_v62  ;;  %v7741_v29 = vld [vmem:[#allocation63_spill] sm:$0xff] }
 0x35a   :  { %v2112_v45 = vadd.f32 %v2111_v42, %v1879_v12  ;;  %v2243_v59 = vmax.bf16 %v7610_v19, %v2203_v53  ;;  %v1660_v42 = vadd.f32 %v7740_v58, %v6823_v31  ;;  %v1656_v38 = vadd.f32 %v7741_v29, %v6823_v31  ;;  %v7743_v12 = vld [vmem:[#allocation70_spill] sm:$0xff] }
 0x35b   :  { %v2113_v18 = vpop.f32.mrf.mxu1 }
 0x35c   :  { %v2114_v48 = vadd.f32 %v2113_v18, %v1881_v0  ;;  %v7742_v0 = vld [vmem:[#allocation67_spill] sm:$0xff]  ;;  %v1668_v18 = vadd.f32 %v7743_v12, %v6810_v35 }
 0x35d   :  { %v2115_v27 = vpop.f32.mrf.mxu1  ;;  %v1664_v30 = vadd.f32 %v7742_v0, %v6810_v35 }
 0x35e   :  { %v2204_v51 = vpack.c.bf16 %v2114_v48, %v2110_v28  ;;  %v2116_v23 = vadd.f32 %v2115_v27, %v1883_v36  ;;  %v1893_v36 = vadd.f32 %v7007_v54, %v1660_v42  ;;  %v1666_v28 = vadd.f32 %v7744_v5, %v6823_v31  ;;  %v1922_v27 = vpop.f32.mrf.mxu0 }
 0x35f   :  { %v2119_v9 = vpop.f32.mrf.mxu1  ;;  %v1889_v48 = vadd.f32 %v6986_v4, %v1656_v38  ;;  %v1901_v7 = vadd.f32 %v7041_v44, %v1668_v18  ;;  %v7747_v44 = vld [vmem:[#allocation76_spill] sm:$0xff] }
 0x360   :  { %v2244_v60 = vmax.bf16 %v7610_v19, %v2204_v51  ;;  %v2205_v55 = vpack.c.bf16 %v2116_v23, %v2112_v45  ;;  %v2120_v25 = vadd.f32 %v2119_v9, %v1887_v39  ;;  %v7745_v45 = vld [vmem:[#allocation72_spill] sm:$0xff]  ;;  %v1897_v23 = vadd.f32 %v7017_v15, %v1664_v30 }
 0x361   :  { %v2121_v20 = vpop.f32.mrf.mxu1  ;;  %v1670_v51 = vadd.f32 %v7745_v45, %v6823_v31  ;;  %v1899_v9 = vadd.f32 %v7030_v63, %v1666_v28 }
 0x362   :  { %v7118_v32 = vmax.bf16 %v2244_v60, %v2242_v49  ;;  %v2245_v52 = vmax.bf16 %v7610_v19, %v2205_v55  ;;  %v2122_v62 = vadd.f32 %v2121_v20, %v1889_v48  ;;  %v1926_v55 = vpop.f32.mrf.mxu0 }
 0x363   :  { %v2123_v61 = vpop.f32.mrf.mxu1  ;;  %v1903_v54 = vadd.f32 %v7051_v37, %v1670_v51  ;;  %v7750_v51 = vld [vmem:[#allocation79_spill] sm:$0xff] }
 0x364   :  { %v2124_v34 = vadd.f32 %v2123_v61, %v1891_v3  ;;  %v7121_v6 = vmax.bf16 %v2245_v52, %v2243_v59  ;;  %v7746_v61 = vld [vmem:[#allocation73_spill] sm:$0xff]  ;;  %v7154_v58 = vpop.f32.mrf.mxu0 }
 0x365   :  { %v2125_v33 = vpop.f32.mrf.mxu1  ;;  %v1674_v15 = vadd.f32 %v7746_v61, %v6810_v35 }
 0x366   :  { %v2206_v43 = vpack.c.bf16 %v2124_v34, %v2120_v25  ;;  %2968 = vmatprep.mubr.bf16.mxu0 %v7121_v6  ;;  %3091 = vmatprep.mubr.bf16.mxu1 %v7121_v6  ;;  %v2126_v11 = vadd.f32 %v2125_v33, %v1893_v36  ;;  %v1678_v34 = vadd.f32 %v7747_v44, %v6810_v35  ;;  %v1930_v36 = vpop.f32.mrf.mxu0 }
 0x367   :  { %v2129_v14 = vpop.f32.mrf.mxu1  ;;  %2969 = vmatmul.mubr.bf16.gmra.mxu0 %v7118_v32  ;;  %3092 = vmatmul.mubr.bf16.gmra.mxu1 %v7118_v32  ;;  %v1907_v33 = vadd.f32 %v7061_v46, %v1674_v15  ;;  %v7748_v46 = vld [vmem:[#allocation78_spill] sm:$0xff] }
 0x368   :  { %v2130_v49 = vadd.f32 %v2129_v14, %v1897_v23  ;;  %v2207_v39 = vpack.c.bf16 %v2126_v11, %v2122_v62  ;;  %v2246_v63 = vmax.bf16 %v7610_v19, %v2206_v43  ;;  %v1911_v29 = vadd.f32 %v7079_v26, %v1678_v34  ;;  %v7749_v26 = vld [vmem:[#allocation75_spill] sm:$0xff] }
 0x369   :  { %v2131_v53 = vpop.f32.mrf.mxu1  ;;  %v1680_v28 = vadd.f32 %v7748_v46, %v6823_v31  ;;  %v1684_v23 = vadd.f32 %v7750_v51, %v6810_v35 }
 0x36a   :  { %v2132_v3 = vadd.f32 %v2131_v53, %v1899_v9  ;;  %v2247_v38 = vmax.bf16 %v7610_v19, %v2207_v39  ;;  %v1676_v53 = vadd.f32 %v7749_v26, %v6823_v31 }
 0x36b   :  { %v2133_v1 = vpop.f32.mrf.mxu1  ;;  %v1913_v9 = vadd.f32 %v7097_v2, %v1680_v28 }
 0x36c   :  { %v2134_v60 = vadd.f32 %v2133_v1, %v1901_v7  ;;  %v7751_v7 = vld [vmem:[#allocation82_spill] sm:$0xff]  ;;  %v7752_v1 = vld [vmem:[#allocation81_spill] sm:$0xff]  ;;  %v1909_v62 = vadd.f32 %v7070_v13, %v1676_v53 }
 0x36d   :  { %v2135_v4 = vpop.f32.mrf.mxu1  ;;  %v1688_v11 = vadd.f32 %v7751_v7, %v6810_v35 }
 0x36e   :  { %v2208_v59 = vpack.c.bf16 %v2134_v60, %v2130_v49  ;;  %v2136_v52 = vadd.f32 %v2135_v4, %v1903_v54  ;;  %v1686_v54 = vadd.f32 %v7752_v1, %v6823_v31  ;;  %v1932_v49 = vpop.f32.mrf.mxu0  ;;  %v7753_v4 = vld [vmem:[#allocation84_spill] sm:$0xff] }
 0x36f   :  { %v2139_v25 = vpop.f32.mrf.mxu1  ;;  %v1690_v39 = vadd.f32 %v7753_v4, %v6823_v31 }
 0x370   :  { %v2248_v37 = vmax.bf16 %v7610_v19, %v2208_v59  ;;  %v2209_v20 = vpack.c.bf16 %v2136_v52, %v2132_v3  ;;  %v2140_v12 = vadd.f32 %v2139_v25, %v1907_v33  ;;  %v1917_v3 = vadd.f32 %v7105_v50, %v1684_v23 }
 0x371   :  { %v2141_v42 = vpop.f32.mrf.mxu1  ;;  %v1921_v59 = vadd.f32 %v7123_v8, %v1688_v11  ;;  %v1919_v61 = vadd.f32 %v7114_v40, %v1686_v54  ;;  %v1923_v25 = vadd.f32 %v1922_v27, %v1690_v39  ;;  %v7755_v8 = vld [vmem:[#allocation88_spill] sm:$0xff]  ;;  %v7759_v39 = vld [vmem:[#allocation94_spill] sm:$0xff] }
 0x372   :  { %v7158_v14 = vmax.bf16 %v2248_v37, %v2246_v63  ;;  %v2249_v0 = vmax.bf16 %v7610_v19, %v2209_v20  ;;  %v2142_v2 = vadd.f32 %v2141_v42, %v1909_v62  ;;  %v1936_v63 = vpop.f32.mrf.mxu0 }
 0x373   :  { %v2143_v30 = vpop.f32.mrf.mxu1 }
 0x374   :  { %v2144_v18 = vadd.f32 %v2143_v30, %v1911_v29  ;;  %v7161_v43 = vmax.bf16 %v2249_v0, %v2247_v38  ;;  %v7754_v38 = vld [vmem:[#allocation85_spill] sm:$0xff]  ;;  %v1698_v30 = vadd.f32 %v7755_v8, %v6810_v35 }
 0x375   :  { %v2145_v5 = vpop.f32.mrf.mxu1  ;;  %v1694_v0 = vadd.f32 %v7754_v38, %v6810_v35 }
 0x376   :  { %v2210_v48 = vpack.c.bf16 %v2144_v18, %v2140_v12  ;;  %2978 = vmatprep.mubr.bf16.mxu0 %v7161_v43  ;;  %3101 = vmatprep.mubr.bf16.mxu1 %v7161_v43  ;;  %v2146_v52 = vadd.f32 %v2145_v5, %v1913_v9  ;;  %v1938_v18 = vpop.f32.mrf.mxu0  ;;  %v1931_v46 = vadd.f32 %v1930_v36, %v1698_v30  ;;  %v7756_v9 = vld [vmem:[#allocation90_spill] sm:$0xff]  ;;  %v7757_v36 = vld [vmem:[#allocation87_spill] sm:$0xff] }
 0x377   :  { %v2149_v45 = vpop.f32.mrf.mxu1  ;;  %2979 = vmatmul.mubr.bf16.gmra.mxu0 %v7158_v14  ;;  %3102 = vmatmul.mubr.bf16.gmra.mxu1 %v7158_v14  ;;  %v1927_v12 = vadd.f32 %v1926_v55, %v1694_v0  ;;  %v1700_v1 = vadd.f32 %v7756_v9, %v6823_v31  ;;  %v1696_v54 = vadd.f32 %v7757_v36, %v6823_v31  ;;  %v5579_v9 = vld [vmem:[#allocation11] ss:$8 sps:$4 sm:$0xff]   ;;  %v5588_v36 = vld [vmem:[#allocation11 + $0xf0] ss:$8 sps:$4 sm:$0xff]  }
 0x378   :  { %v2150_v44 = vadd.f32 %v2149_v45, %v1917_v3  ;;  %v2211_v13 = vpack.c.bf16 %v2146_v52, %v2142_v2  ;;  %v2250_v40 = vmax.bf16 %v7610_v19, %v2210_v48  ;;  %v1940_v11 = vpop.f32.mrf.mxu0  ;;  %v1708_v3 = vadd.f32 %v7759_v39, %v6810_v35  ;;  %v7760_v52 = vld [vmem:[#allocation93_spill] sm:$0xff] }
 0x379   :  { %v2151_v60 = vpop.f32.mrf.mxu1  ;;  %v5597_v39 = vld [vmem:[#allocation11 + $0x130] ss:$8 sps:$4 sm:$0xff]  }
 0x37a   :  { %v2152_v20 = vadd.f32 %v2151_v60, %v1919_v61  ;;  %v2251_v28 = vmax.bf16 %v7610_v19, %v2211_v13  ;;  %v7758_v60 = vld [vmem:[#allocation91_spill] sm:$0xff]  ;;  %v1706_v61 = vadd.f32 %v7760_v52, %v6823_v31  ;;  %v1941_v13 = vadd.f32 %v1940_v11, %v1708_v3 }
 0x37b   :  { %v2153_v15 = vpop.f32.mrf.mxu1  ;;  %v1704_v4 = vadd.f32 %v7758_v60, %v6810_v35  ;;  %v5576_v11 = vld [vmem:[#allocation11 + $0x170] ss:$8 sps:$4 sm:$0xff]   ;;  %v5594_v60 = vld [vmem:[#allocation11 + $0xe0] ss:$8 sps:$4 sm:$0xff]   ;;  %v5602_v52 = vld [vmem:[#allocation11 + $0xd4] ss:$8 sps:$4 sm:$0xff]  }
 0x37c   :  { %v2154_v34 = vadd.f32 %v2153_v15, %v1921_v59  ;;  %v1933_v59 = vadd.f32 %v1932_v49, %v1700_v1  ;;  %v1929_v15 = vadd.f32 %v7154_v58, %v1696_v54  ;;  %v5581_v1 = vld [vmem:[#allocation11 + $0x4] ss:$8 sps:$4 sm:$0xff]   ;;  %v5590_v54 = vld [vmem:[#allocation11 + $0xf4] ss:$8 sps:$4 sm:$0xff]  }
 0x37d   :  { %v2155_v37 = vpop.f32.mrf.mxu1 }
 0x37e   :  { %v2212_v33 = vpack.c.bf16 %v2154_v34, %v2150_v44  ;;  %v2156_v29 = vadd.f32 %v2155_v37, %v1923_v25  ;;  %v1942_v25 = vpop.f32.mrf.mxu0  ;;  %v7761_v44 = vld [vmem:[#allocation96_spill] sm:$0xff]  ;;  %v1937_v37 = vadd.f32 %v1936_v63, %v1704_v4  ;;  %v5599_v4 = vld [vmem:[#allocation11 + $0x134] ss:$8 sps:$4 sm:$0xff]  }
 0x37f   :  { %v2159_v50 = vpop.f32.mrf.mxu1  ;;  %v1710_v34 = vadd.f32 %v7761_v44, %v6823_v31  ;;  %v5608_v44 = vld [vmem:[#allocation11 + $0xc4] ss:$8 sps:$4 sm:$0xff]  }
 0x380   :  { %v2252_v27 = vmax.bf16 %v7610_v19, %v2212_v33  ;;  %v2213_v42 = vpack.c.bf16 %v2156_v29, %v2152_v20  ;;  %v2160_v51 = vadd.f32 %v2159_v50, %v1927_v12  ;;  %v1939_v33 = vadd.f32 %v1938_v18, %v1706_v61  ;;  %v7238_v3 = vpop.f32.mrf.mxu0 }
 0x381   :  { %v2161_v5 = vpop.f32.mrf.mxu1  ;;  %v1943_v38 = vadd.f32 %v1942_v25, %v1710_v34  ;;  %v5609_v25 = vld [vmem:[#allocation11 + $0x110] ss:$8 sps:$4 sm:$0xff]  }
 0x382   :  { %v7191_v26 = vmax.bf16 %v2252_v27, %v2250_v40  ;;  %v2253_v53 = vmax.bf16 %v7610_v19, %v2213_v42  ;;  %v2162_v35 = vadd.f32 %v2161_v5, %v1929_v15  ;;  %v5557_v5 = vld [vmem:[#allocation11 + $0x74] ss:$8 sps:$4 sm:$0xff]   ;;  %v7242_v61 = vpop.f32.mrf.mxu0 }
 0x383   :  { %v2163_v45 = vpop.f32.mrf.mxu1  ;;  %4287 = vmatprep.subr.bf16.mxu1 %v5557_v5  ;;  %v5611_v15 = vld [vmem:[#allocation11 + $0x114] ss:$8 sps:$4 sm:$0xff]   ;;  %v5633_v5 = vld [vmem:[#allocation11 + $0x80] ss:$8 sps:$4 sm:$0xff]  }
 0x384   :  { %v2164_v23 = vadd.f32 %v2163_v45, %v1931_v46  ;;  %v7194_v7 = vmax.bf16 %v2253_v53, %v2251_v28  ;;  %v5560_v46 = vld [vmem:[#allocation11 + $0x64] ss:$8 sps:$4 sm:$0xff]   ;;  %v5563_v28 = vld [vmem:[#allocation11 + $0x54] ss:$8 sps:$4 sm:$0xff]   ;;  %v5561_v53 = vld [vmem:[#allocation11 + $0x50] ss:$8 sps:$4 sm:$0xff]   ;;  %v7244_v34 = vpop.f32.mrf.mxu0 }
 0x385   :  { %v2165_v48 = vpop.f32.mrf.mxu1  ;;  %v5566_v45 = vld [vmem:[#allocation11 + $0x44] ss:$8 sps:$4 sm:$0xff]  }
 0x386   :  { %v2214_v55 = vpack.c.bf16 %v2164_v23, %v2160_v51  ;;  %2988 = vmatprep.mubr.bf16.mxu0 %v7194_v7  ;;  %3111 = vmatprep.mubr.bf16.mxu1 %v7194_v7  ;;  %v2166_v20 = vadd.f32 %v2165_v48, %v1933_v59  ;;  %v5569_v51 = vld [vmem:[#allocation11 + $0x34] ss:$8 sps:$4 sm:$0xff]   ;;  %v5572_v23 = vld [vmem:[#allocation11 + $0x24] ss:$8 sps:$4 sm:$0xff]   ;;  %v5600_v59 = vld [vmem:[#allocation11 + $0xd0] ss:$8 sps:$4 sm:$0xff]  }
 0x387   :  { %v2169_v62 = vpop.f32.mrf.mxu1  ;;  %2989 = vmatmul.mubr.bf16.gmra.mxu0 %v7191_v26  ;;  %3112 = vmatmul.mubr.bf16.gmra.mxu1 %v7191_v26  ;;  %v5575_v48 = vld [vmem:[#allocation11 + $0x14] ss:$8 sps:$4 sm:$0xff]  }
 0x388   :  { %3164 = vmatprep.mubr.bf16.mxu0 %v6907_v16  ;;  %v2170_v49 = vadd.f32 %v2169_v62, %v1937_v37  ;;  %v2215_v50 = vpack.c.bf16 %v2166_v20, %v2162_v35  ;;  %v2254_v58 = vmax.bf16 %v7610_v19, %v2214_v55  ;;  %v5585_v55 = vld [vmem:[#allocation11 + $0x150] ss:$8 sps:$4 sm:$0xff]   ;;  %v5593_v62 = vld [vmem:[#allocation11 + $0x144] ss:$8 sps:$4 sm:$0xff]   ;;  %v5612_v37 = vld [vmem:[#allocation11 + $0x100] ss:$8 sps:$4 sm:$0xff]  }
 0x389   :  { %v2171_v2 = vpop.f32.mrf.mxu1  ;;  %v5617_v20 = vld [vmem:[#allocation11 + $0xb4] ss:$8 sps:$4 sm:$0xff]  }
 0x38a   :  { %v2172_v8 = vadd.f32 %v2171_v2, %v1939_v33  ;;  %v2255_v27 = vmax.bf16 %v7610_v19, %v2215_v50  ;;  %v5606_v2 = vld [vmem:[#allocation11 + $0xc0] ss:$8 sps:$4 sm:$0xff]   ;;  %v5620_v33 = vld [vmem:[#allocation11 + $0x1f4] ss:$8 sps:$4 sm:$0xff]  }
 0x38b   :  { %v2173_v29 = vpop.f32.mrf.mxu1  ;;  %v5621_v50 = vld [vmem:[#allocation11 + $0xa0] ss:$8 sps:$4 sm:$0xff]  }
 0x38c   :  { %v2174_v0 = vadd.f32 %v2173_v29, %v1941_v13  ;;  %v7248_v13 = vpop.f32.mrf.mxu0  ;;  %v5615_v29 = vld [vmem:[#allocation11 + $0xb0] ss:$8 sps:$4 sm:$0xff]  }
 0x38d   :  { %v2175_v16 = vpop.f32.mrf.mxu1 }
 0x38e   :  { %v2216_v30 = vpack.c.bf16 %v2174_v0, %v2170_v49  ;;  %v2176_v40 = vadd.f32 %v2175_v16, %v1943_v38  ;;  %v5618_v38 = vld [vmem:[#allocation11 + $0x1f0] ss:$8 sps:$4 sm:$0xff]   ;;  %v5623_v0 = vld [vmem:[#allocation11 + $0xa4] ss:$8 sps:$4 sm:$0xff]  }
 0x38f   :  { %3165 = vmatmul.mubr.bf16.vlgmr.msra.gmra.mxu0 %v6902_v24  ;;  %v5555_v24 = vld [vmem:[#allocation11 + $0x70] ss:$8 sps:$4 sm:$0xff]   ;;  %v5626_v16 = vld [vmem:[#allocation11 + $0x1e4] ss:$8 sps:$4 sm:$0xff]  }
 0x390   :  { %v2256_v31 = vmax.bf16 %v7610_v19, %v2216_v30  ;;  %v2217_v63 = vpack.c.bf16 %v2176_v40, %v2172_v8  ;;  %3174 = vmatprep.mubr.bf16.mxu0 %v6951_v41  ;;  %4288 = vmatpush1.bf16.msra.mxu1 %v5555_v24  ;;  %v5558_v41 = vld [vmem:[#allocation11 + $0x60] ss:$8 sps:$4 sm:$0xff]   ;;  %v5638_v24 = vld [vmem:[#allocation11 + $0x1c4] ss:$8 sps:$4 sm:$0xff]  }
 0x391   :  { %4289 = vmatprep.subr.bf16.mxu1 %v5560_v46  ;;  %v5624_v8 = vld [vmem:[#allocation11 + $0x1e0] ss:$8 sps:$4 sm:$0xff]  }
 0x392   :  { %v7219_v42 = vmax.bf16 %v2256_v31, %v2254_v58  ;;  %v2257_v12 = vmax.bf16 %v7610_v19, %v2217_v63  ;;  %v5629_v58 = vld [vmem:[#allocation11 + $0x94] ss:$8 sps:$4 sm:$0xff]   ;;  %v5627_v63 = vld [vmem:[#allocation11 + $0x90] ss:$8 sps:$4 sm:$0xff]  }
 0x393   :  { %v5632_v31 = vld [vmem:[#allocation11 + $0x1d4] ss:$8 sps:$4 sm:$0xff]  }
 0x394   :  { %v7222_v18 = vmax.bf16 %v2257_v12, %v2255_v27  ;;  %4290 = vmatpush1.bf16.msra.mxu1 %v5558_v41  ;;  %v5630_v27 = vld [vmem:[#allocation11 + $0x1d0] ss:$8 sps:$4 sm:$0xff]   ;;  %v5636_v41 = vld [vmem:[#allocation11 + $0x1c0] ss:$8 sps:$4 sm:$0xff]  }
 0x395   :  { %4291 = vmatprep.subr.bf16.mxu1 %v5563_v28 }
 0x396   :  { %3121 = vmatprep.mubr.bf16.mxu1 %v7222_v18 }
 0x397   :  { %3122 = vmatmul.mubr.bf16.gmra.mxu1 %v7219_v42  ;;  %3175 = vmatmul.mubr.bf16.gmra.mxu0 %v6946_v22  ;;  %v5564_v22 = vld [vmem:[#allocation11 + $0x40] ss:$8 sps:$4 sm:$0xff]  }
 0x398   :  { %3184 = vmatprep.mubr.bf16.mxu0 %v6995_v10  ;;  %4292 = vmatpush1.bf16.msra.mxu1 %v5561_v53  ;;  %v5567_v10 = vld [vmem:[#allocation11 + $0x30] ss:$8 sps:$4 sm:$0xff]   ;;  %v5641_v53 = vld [vmem:[#allocation11 + $0x1b4] ss:$8 sps:$4 sm:$0xff]  }
 0x399   :  { %4293 = vmatprep.subr.bf16.mxu1 %v5566_v45  ;;  %v5644_v45 = vld [vmem:[#allocation11 + $0x274] ss:$8 sps:$4 sm:$0xff]  }
 0x39c   :  { %4294 = vmatpush1.bf16.msra.mxu1 %v5564_v22 }
 0x39d   :  { %4295 = vmatprep.subr.bf16.mxu1 %v5569_v51  ;;  %v5639_v51 = vld [vmem:[#allocation11 + $0x1b0] ss:$8 sps:$4 sm:$0xff]  }
 0x39f   :  { %3185 = vmatmul.mubr.bf16.gmra.mxu0 %v6990_v17  ;;  %v5570_v17 = vld [vmem:[#allocation11 + $0x20] ss:$8 sps:$4 sm:$0xff]  }
 0x3a0   :  { %3194 = vmatprep.mubr.bf16.mxu0 %v7039_v56  ;;  %4296 = vmatpush1.bf16.msra.mxu1 %v5567_v10  ;;  %v5578_v56 = vld [vmem:[#allocation11 + $0x174] ss:$8 sps:$4 sm:$0xff]  }
 0x3a1   :  { %4297 = vmatprep.subr.bf16.mxu1 %v5572_v23  ;;  %4330 = vmatprep.subr.bf16.mxu0 %v5578_v56  ;;  %v5645_v56 = vld [vmem:[#allocation11 + $0x1a0] ss:$8 sps:$4 sm:$0xff]  }
 0x3a2   :  { %4331 = vmatpush1.bf16.msra.mxu0 %v5576_v11  ;;  %v5647_v11 = vld [vmem:[#allocation11 + $0x1a4] ss:$8 sps:$4 sm:$0xff]  }
 0x3a4   :  { %4298 = vmatpush1.bf16.msra.mxu1 %v5570_v17 }
 0x3a5   :  { %4299 = vmatprep.subr.bf16.mxu1 %v5575_v48 }
 0x3a7   :  { %3195 = vmatmul.mubr.bf16.gmra.mxu0 %v7034_v21  ;;  %v5573_v21 = vld [vmem:[#allocation11 + $0x10] ss:$8 sps:$4 sm:$0xff]  }
 0x3a8   :  { %3204 = vmatprep.mubr.bf16.mxu0 %v7077_v47  ;;  %4300 = vmatpush1.bf16.msra.mxu1 %v5573_v21  ;;  %v5584_v47 = vld [vmem:[#allocation11 + $0x164] ss:$8 sps:$4 sm:$0xff]  }
 0x3a9   :  { %4332 = vmatprep.subr.bf16.mxu0 %v5584_v47  ;;  %4301 = vmatprep.subr.bf16.mxu1 %v5581_v1  ;;  %v5653_v47 = vld [vmem:[#allocation11 + $0x194] ss:$8 sps:$4 sm:$0xff]  }
 0x3ac   :  { %4302 = vmatpush1.bf16.msra.mxu1 %v5579_v9 }
 0x3ad   :  { %4303 = vmatprep.subr.bf16.mxu1 %v5590_v54 }
 0x3af   :  { %3205 = vmatmul.mubr.bf16.gmra.mxu0 %v7074_v57  ;;  %v5582_v57 = vld [vmem:[#allocation11 + $0x160] ss:$8 sps:$4 sm:$0xff]  }
 0x3b0   :  { %3214 = vmatprep.mubr.bf16.mxu0 %v7121_v6  ;;  %4333 = vmatpush1.bf16.msra.mxu0 %v5582_v57  ;;  %v5587_v6 = vld [vmem:[#allocation11 + $0x154] ss:$8 sps:$4 sm:$0xff]   ;;  %v5651_v57 = vld [vmem:[#allocation11 + $0x190] ss:$8 sps:$4 sm:$0xff]  }
 0x3b1   :  { %4334 = vmatprep.subr.bf16.mxu0 %v5587_v6  ;;  %4304 = vmatpush2.bf16.msra.mxu1 %v5588_v36  ;;  %v5659_v6 = vld [vmem:[#allocation11 + $0x184] ss:$8 sps:$4 sm:$0xff]  }
 0x3b4   :  { %4335 = vmatpush1.bf16.msra.mxu0 %v5585_v55  ;;  %v5657_v55 = vld [vmem:[#allocation11 + $0x180] ss:$8 sps:$4 sm:$0xff]  }
 0x3b5   :  { %4336 = vmatprep.subr.bf16.mxu0 %v5593_v62  ;;  %v5668_v62 = vld [vmem:[#allocation11 + $0x374] ss:$8 sps:$4 sm:$0xff]  }
 0x3b7   :  { %3215 = vmatmul.mubr.bf16.gmra.mxu0 %v7118_v32  ;;  %v5596_v32 = vld [vmem:[#allocation11 + $0xe4] ss:$8 sps:$4 sm:$0xff]  }
 0x3b8   :  { %3224 = vmatprep.mubr.bf16.mxu0 %v7161_v43  ;;  %v5591_v43 = vld [vmem:[#allocation11 + $0x140] ss:$8 sps:$4 sm:$0xff]   ;;  %4305 = vmatprep.subr.bf16.mxu1 %v5596_v32 }
 0x3b9   :  { %4337 = vmatpush1.bf16.msra.mxu0 %v5591_v43  ;;  %4306 = vmatpush2.bf16.msra.mxu1 %v5594_v60 }
 0x3ba   :  { %4338 = vmatprep.subr.bf16.mxu0 %v5599_v4  ;;  %4307 = vmatprep.subr.bf16.mxu1 %v5602_v52 }
 0x3bd   :  { %4339 = vmatpush1.bf16.msra.mxu0 %v5597_v39  ;;  %4308 = vmatpush2.bf16.msra.mxu1 %v5600_v59 }
 0x3be   :  { %4309 = vmatprep.subr.bf16.mxu1 %v5608_v44 }
 0x3bf   :  { %3225 = vmatmul.mubr.bf16.gmra.mxu0 %v7158_v14  ;;  %v5605_v14 = vld [vmem:[#allocation11 + $0x124] ss:$8 sps:$4 sm:$0xff]  }
 0x3c0   :  { %3234 = vmatprep.mubr.bf16.mxu0 %v7194_v7  ;;  %v5603_v7 = vld [vmem:[#allocation11 + $0x120] ss:$8 sps:$4 sm:$0xff]   ;;  %4340 = vmatprep.subr.bf16.mxu0 %v5605_v14 }
 0x3c1   :  { %4341 = vmatpush1.bf16.msra.mxu0 %v5603_v7  ;;  %4310 = vmatpush2.bf16.msra.mxu1 %v5606_v2 }
 0x3c2   :  { %4342 = vmatprep.subr.bf16.mxu0 %v5611_v15  ;;  %4311 = vmatprep.subr.bf16.mxu1 %v5617_v20 }
 0x3c5   :  { %4343 = vmatpush1.bf16.msra.mxu0 %v5609_v25  ;;  %4312 = vmatpush2.bf16.msra.mxu1 %v5615_v29 }
 0x3c6   :  { %4313 = vmatprep.subr.bf16.mxu1 %v5623_v0 }
 0x3c7   :  { %3235 = vmatmul.mubr.bf16.gmra.mxu0 %v7191_v26  ;;  %v5614_v26 = vld [vmem:[#allocation11 + $0x104] ss:$8 sps:$4 sm:$0xff]   ;;  %v7250_v35 = vpop.f32.mrf.mxu0  ;;  %v7252_v49 = vpop.f32.mrf.mxu1 }
 0x3c8   :  { %3244 = vmatprep.mubr.bf16.mxu0 %v7222_v18  ;;  %4344 = vmatprep.subr.bf16.mxu0 %v5614_v26  ;;  %v5635_v18 = vld [vmem:[#allocation11 + $0x84] ss:$8 sps:$4 sm:$0xff]  }
 0x3c9   :  { %4345 = vmatpush1.bf16.msra.mxu0 %v5612_v37  ;;  %v7255_v30 = vpop.f32.mrf.mxu0  ;;  %v7257_v40 = vpop.f32.mrf.mxu1  ;;  %4314 = vmatpush2.bf16.msra.mxu1 %v5621_v50 }
 0x3ca   :  { %4346 = vmatprep.subr.bf16.mxu0 %v5620_v33  ;;  %4315 = vmatprep.subr.bf16.mxu1 %v5629_v58 }
 0x3cb   :  { %v7261_v12 = vpop.f32.mrf.mxu1 }
 0x3cd   :  { %4347 = vmatpush2.bf16.msra.mxu0 %v5618_v38  ;;  %4316 = vmatpush2.bf16.msra.mxu1 %v5627_v63  ;;  %v7265_v28 = vpop.f32.mrf.mxu1 }
 0x3ce   :  { %4348 = vmatprep.subr.bf16.mxu0 %v5626_v16  ;;  %4317 = vmatprep.subr.bf16.mxu1 %v5635_v18 }
 0x3cf   :  { %3245 = vmatmul.mubr.bf16.gmra.mxu0 %v7219_v42  ;;  %v7259_v42 = vpop.f32.mrf.mxu0 }
 0x3d0   :  { %3254 = vmatprep.mubr.bf16.mxu0 %v7610_v19 }
 0x3d1   :  { %4349 = vmatpush2.bf16.msra.mxu0 %v5624_v8  ;;  %v7263_v46 = vpop.f32.mrf.mxu0  ;;  %4318 = vmatpush2.bf16.msra.mxu1 %v5633_v5 }
 0x3d2   :  { %4350 = vmatprep.subr.bf16.mxu0 %v5632_v31  ;;  %4373 = vmatprep.subr.bf16.mxu1 %v5644_v45 }
 0x3d5   :  { %4351 = vmatpush2.bf16.msra.mxu0 %v5630_v27 }
 0x3d6   :  { %4352 = vmatprep.subr.bf16.mxu0 %v5638_v24 }
 0x3d7   :  { %3255 = vmatmul.mubr.bf16.gmra.mxu0 %v7610_v19  ;;  %v7267_v22 = vpop.f32.mrf.mxu0  ;;  %v7269_v10 = vpop.f32.mrf.mxu1 }
 0x3d9   :  { %4353 = vmatpush2.bf16.msra.mxu0 %v5636_v41  ;;  %v7271_v23 = vpop.f32.mrf.mxu0  ;;  %v7273_v17 = vpop.f32.mrf.mxu1 }
 0x3da   :  { %4354 = vmatprep.subr.bf16.mxu0 %v5641_v53 }
 0x3db   :  { %v7275_v48 = vpop.f32.mrf.mxu0  ;;  %v7277_v21 = vpop.f32.mrf.mxu1 }
 0x3dd   :  { %4355 = vmatpush2.bf16.msra.mxu0 %v5639_v51  ;;  %v7279_v9 = vpop.f32.mrf.mxu0  ;;  %v7281_v1 = vpop.f32.mrf.mxu1 }
 0x3de   :  { %4356 = vmatprep.subr.bf16.mxu0 %v5647_v11 }
 0x3e1   :  { %4357 = vmatpush2.bf16.msra.mxu0 %v5645_v56 }
 0x3e2   :  { %4358 = vmatprep.subr.bf16.mxu0 %v5653_v47 }
 0x3e5   :  { %4359 = vmatpush2.bf16.msra.mxu0 %v5651_v57 }
 0x3e6   :  { %4360 = vmatprep.subr.bf16.mxu0 %v5659_v6 }
 0x3e7   :  { %v7283_v36 = vpop.f32.mrf.mxu0  ;;  %v7285_v54 = vpop.f32.mrf.mxu1 }
 0x3e9   :  { %4361 = vmatpush2.bf16.msra.mxu0 %v5657_v55  ;;  %v7287_v32 = vpop.f32.mrf.mxu0  ;;  %v7289_v43 = vpop.f32.mrf.mxu1 }
 0x3ea   :  { %4416 = vmatprep.subr.bf16.mxu0 %v5668_v62 }
 0x3eb   :  { %v7291_v60 = vpop.f32.mrf.mxu0  ;;  %v7293_v4 = vpop.f32.mrf.mxu1 }
 0x3ed   :  { %v7295_v39 = vpop.f32.mrf.mxu0  ;;  %v7297_v14 = vpop.f32.mrf.mxu1 }
 0x3f7   :  { %v7299_v7 = vpop.f32.mrf.mxu0  ;;  %v7301_v59 = vpop.f32.mrf.mxu1 }
 0x3f9   :  { %v7303_v52 = vpop.f32.mrf.mxu0  ;;  %v7305_v15 = vpop.f32.mrf.mxu1 }
 0x3fb   :  { %v7307_v25 = vpop.f32.mrf.mxu0  ;;  %v7309_v2 = vpop.f32.mrf.mxu1 }
 0x3fd   :  { %v7311_v44 = vpop.f32.mrf.mxu0  ;;  %v7313_v26 = vpop.f32.mrf.mxu1 }
 0x407   :  { %v7315_v37 = vpop.f32.mrf.mxu0  ;;  %v7317_v20 = vpop.f32.mrf.mxu1 }
 0x409   :  { %v7319_v33 = vpop.f32.mrf.mxu0  ;;  %v7321_v29 = vpop.f32.mrf.mxu1 }
 0x40b   :  { %v7323_v38 = vpop.f32.mrf.mxu0  ;;  %v7325_v0 = vpop.f32.mrf.mxu1 }
 0x40d   :  { %v7327_v16 = vpop.f32.mrf.mxu0  ;;  %v7329_v50 = vpop.f32.mrf.mxu1 }
 0x417   :  { %v7331_v8 = vpop.f32.mrf.mxu0  ;;  %v7333_v58 = vpop.f32.mrf.mxu1 }
 0x418   :  { %7762 = vst [vmem:[#allocation22_spill] sm:$0xff] %v7331_v8  ;;  %7763 = vst [vmem:[#allocation23_spill] sm:$0xff] %v7333_v58 }
 0x419   :  { %v7335_v31 = vpop.f32.mrf.mxu0  ;;  %v7337_v63 = vpop.f32.mrf.mxu1 }
 0x41a   :  { %7764 = vst [vmem:[#allocation24_spill] sm:$0xff] %v7335_v31  ;;  %7765 = vst [vmem:[#allocation26_spill] sm:$0xff] %v7337_v63 }
 0x41b   :  { %v7339_v27 = vpop.f32.mrf.mxu0  ;;  %v7341_v18 = vpop.f32.mrf.mxu1 }
 0x41c   :  { %7766 = vst [vmem:[#allocation25_spill] sm:$0xff] %v7339_v27  ;;  %7767 = vst [vmem:[#allocation27_spill] sm:$0xff] %v7341_v18 }
 0x41d   :  { %v7343_v24 = vpop.f32.mrf.mxu0  ;;  %v7345_v5 = vpop.f32.mrf.mxu1 }
 0x41e   :  { %7768 = vst [vmem:[#allocation47_spill] sm:$0xff] %v7343_v24  ;;  %7769 = vst [vmem:[#allocation53_spill] sm:$0xff] %v7345_v5 }
 0x427   :  { %v7347_v41 = vpop.f32.mrf.mxu0  ;;  %v7349_v53 = vpop.f32.mrf.mxu1 }
 0x428   :  { %7770 = vst [vmem:[#allocation50_spill] sm:$0xff] %v7347_v41  ;;  %7771 = vst [vmem:[#allocation56_spill] sm:$0xff] %v7349_v53 }
 0x429   :  { %v7351_v45 = vpop.f32.mrf.mxu0  ;;  %v7353_v51 = vpop.f32.mrf.mxu1 }
 0x42a   :  { %7772 = vst [vmem:[#allocation28_spill] sm:$0xff] %v7351_v45  ;;  %7773 = vst [vmem:[#allocation30_spill] sm:$0xff] %v7353_v51  ;;  %v2374_v45 = vld [vmem:[%s7591_s6] sm:$0x3] }
 0x42b   :  { %v7355_v11 = vpop.f32.mrf.mxu0  ;;  %v7357_v56 = vpop.f32.mrf.mxu1 }
 0x42c   :  { %7774 = vst [vmem:[#allocation29_spill] sm:$0xff] %v7355_v11  ;;  %7775 = vst [vmem:[#allocation31_spill] sm:$0xff] %v7357_v56  ;;  %v7782_v11 = vld [vmem:[#allocation20_spill] sm:$0xff] }
 0x42d   :  { %v7359_v47 = vpop.f32.mrf.mxu0  ;;  %v7361_v57 = vpop.f32.mrf.mxu1  ;;  %v7375_v56 = vrot.slane %v2374_v45, %v7782_v11 }
 0x42e   :  { %7776 = vst [vmem:[#allocation59_spill] sm:$0xff] %v7359_v47  ;;  %7777 = vst [vmem:[#allocation65_spill] sm:$0xff] %v7361_v57 }
 0x437   :  { %v2980_v6 = vpop.f32.mrf.mxu0  ;;  %v7363_v55 = vpop.f32.mrf.mxu1 }
 0x438   :  { %7778 = vst [vmem:[#allocation62_spill] sm:$0xff] %v7363_v55  ;;  %v2981_v55 = vadd.f32 %v2980_v6, %v7375_v56  ;;  %v2905_v6 = vadd.f32 %v7244_v34, %v7375_v56 }
 0x439   :  { %v7365_v62 = vpop.f32.mrf.mxu0  ;;  %v7367_v41 = vpop.f32.mrf.mxu1 }
 0x43a   :  { %7779 = vst [vmem:[#allocation68_spill] sm:$0xff] %v7365_v62  ;;  %7780 = vst [vmem:[#allocation32_spill] sm:$0xff] %v7367_v41 }
 0x43b   :  { %v2984_v51 = vpop.f32.mrf.mxu0  ;;  %v7372_v53 = vpop.f32.mrf.mxu1 }
 0x43c   :  { %7781 = vst [vmem:[#allocation34_spill] sm:$0xff] %v7372_v53  ;;  %v2985_v8 = vadd.f32 %v2984_v51, %v7375_v56  ;;  %v3038_v51 = vadd.f32 %v7261_v12, %v2905_v6  ;;  %v2915_v12 = vadd.f32 %v7259_v42, %v7375_v56 }
 0x43d   :  { %v7377_v47 = vpop.f32.mrf.mxu0  ;;  %v7379_v57 = vpop.f32.mrf.mxu1 }
 0x43e   :  { %7783 = vst [vmem:[#allocation33_spill] sm:$0xff] %v7377_v47  ;;  %7784 = vst [vmem:[#allocation35_spill] sm:$0xff] %v7379_v57  ;;  %v2901_v47 = vadd.f32 %v7238_v3, %v7375_v56  ;;  %v3048_v6 = vadd.f32 %v7277_v21, %v2915_v12  ;;  %v2921_v21 = vadd.f32 %v7267_v22, %v7375_v56 }
 0x447   :  { %v2990_v24 = vpop.f32.mrf.mxu0  ;;  %v3113_v62 = vpop.f32.mrf.mxu1 }
 0x448   :  { %v7382_v31 = vadd.f32 %v3113_v62, %v2981_v55  ;;  %v7790_v62 = vld [vmem:[#allocation21_spill] sm:$0xff] }
 0x449   :  { %v7384_v41 = vpop.f32.mrf.mxu0  ;;  %v7386_v27 = vpop.f32.mrf.mxu1 }
 0x44a   :  { %7785 = vst [vmem:[#allocation71_spill] sm:$0xff] %v7382_v31  ;;  %7786 = vst [vmem:[#allocation77_spill] sm:$0xff] %v7384_v41  ;;  %v7398_v31 = vrot.slane %v2374_v45, %v7790_v62  ;;  %v2991_v45 = vadd.f32 %v2990_v24, %v7375_v56 }
 0x44b   :  { %7787 = vst [vmem:[#allocation74_spill] sm:$0xff] %v7386_v27  ;;  %v2994_v53 = vpop.f32.mrf.mxu0  ;;  %v3117_v5 = vpop.f32.mrf.mxu1  ;;  %v3034_v27 = vadd.f32 %v7252_v49, %v2901_v47  ;;  %v2911_v49 = vadd.f32 %v7250_v35, %v7375_v56 }
 0x44c   :  { %v7389_v11 = vadd.f32 %v3117_v5, %v2985_v8  ;;  %v2907_v8 = vadd.f32 %v7248_v13, %v7398_v31  ;;  %v2903_v3 = vadd.f32 %v7242_v61, %v7398_v31  ;;  %v2913_v61 = vadd.f32 %v7255_v30, %v7398_v31 }
 0x44d   :  { %v7391_v63 = vpop.f32.mrf.mxu0  ;;  %v3044_v35 = vadd.f32 %v7269_v10, %v2911_v49  ;;  %v2995_v42 = vadd.f32 %v2994_v53, %v7375_v56  ;;  %v2927_v12 = vadd.f32 %v7279_v9, %v7398_v31 }
 0x44e   :  { %7788 = vst [vmem:[#allocation80_spill] sm:$0xff] %v7389_v11  ;;  %7789 = vst [vmem:[#allocation36_spill] sm:$0xff] %v7391_v63  ;;  %v7406_v11 = vpop.f32.mrf.mxu1  ;;  %v3040_v13 = vadd.f32 %v7265_v28, %v2907_v8  ;;  %v3036_v47 = vadd.f32 %v7257_v40, %v2903_v3 }
 0x44f   :  { %v3166_v55 = vpop.f32.mrf.mxu0 }
 0x450   :  { %v3167_v5 = vadd.f32 %v3166_v55, %v3034_v27 }
 0x451   :  { %v3168_v41 = vpop.f32.mrf.mxu0 }
 0x452   :  { %v3169_v40 = vadd.f32 %v3168_v41, %v3036_v47 }
 0x453   :  { %v3170_v57 = vpop.f32.mrf.mxu0 }
 0x454   :  { %v3171_v63 = vadd.f32 %v3170_v57, %v3038_v51 }
 0x455   :  { %v3172_v34 = vpop.f32.mrf.mxu0 }
 0x456   :  { %v3265_v62 = vpack.c.bf16 %v3171_v63, %v3167_v5  ;;  %v2917_v63 = vadd.f32 %v7263_v46, %v7398_v31  ;;  %v3173_v28 = vadd.f32 %v3172_v34, %v3040_v13  ;;  %v2923_v34 = vadd.f32 %v7271_v23, %v7398_v31 }
 0x457   :  { %v3123_v18 = vpop.f32.mrf.mxu1  ;;  %v3176_v58 = vpop.f32.mrf.mxu0  ;;  %v3054_v13 = vadd.f32 %v7285_v54, %v2921_v21 }
 0x458   :  { %v7414_v27 = vadd.f32 %v3123_v18, %v2991_v45  ;;  %v3046_v18 = vadd.f32 %v7273_v17, %v2913_v61  ;;  %v3050_v55 = vadd.f32 %v7281_v1, %v2917_v63  ;;  %v3177_v8 = vadd.f32 %v3176_v58, %v3044_v35 }
 0x459   :  { %v7421_v24 = vpop.f32.mrf.mxu1  ;;  %v3178_v57 = vpop.f32.mrf.mxu0  ;;  %v3266_v45 = vpack.c.bf16 %v3173_v28, %v3169_v40  ;;  %v2925_v17 = vadd.f32 %v7275_v48, %v7375_v56  ;;  %v3285_v1 = vmax.bf16 %v7610_v19, %v3265_v62  ;;  %v3056_v62 = vadd.f32 %v7289_v43, %v2923_v34  ;;  %v5650_v28 = vld [vmem:[#allocation11 + $0x264] ss:$8 sps:$4 sm:$0xff]  }
 0x45a   :  { %7791 = vst [vmem:[#allocation38_spill] sm:$0xff] %v7421_v24  ;;  %v3179_v24 = vadd.f32 %v3178_v57, %v3046_v18  ;;  %v2935_v43 = vadd.f32 %v7291_v60, %v7375_v56 }
 0x45b   :  { %v3127_v30 = vpop.f32.mrf.mxu1  ;;  %v3180_v51 = vpop.f32.mrf.mxu0  ;;  %v3058_v22 = vadd.f32 %v7293_v4, %v2925_v17  ;;  %v3286_v47 = vmax.bf16 %v7610_v19, %v3266_v45  ;;  %v5654_v17 = vld [vmem:[#allocation11 + $0x250] ss:$8 sps:$4 sm:$0xff]  }
 0x45c   :  { %v7428_v5 = vadd.f32 %v3127_v30, %v2995_v42  ;;  %v3181_v46 = vadd.f32 %v3180_v51, %v3048_v6  ;;  %v5642_v42 = vld [vmem:[#allocation11 + $0x270] ss:$8 sps:$4 sm:$0xff]   ;;  %v2931_v30 = vadd.f32 %v7283_v36, %v7375_v56 }
 0x45d   :  { %v3182_v3 = vpop.f32.mrf.mxu0 }
 0x45e   :  { %v3267_v10 = vpack.c.bf16 %v3181_v46, %v3177_v8  ;;  %v3183_v49 = vadd.f32 %v3182_v3, %v3050_v55  ;;  %v5656_v8 = vld [vmem:[#allocation11 + $0x254] ss:$8 sps:$4 sm:$0xff]   ;;  %v2933_v46 = vadd.f32 %v7287_v32, %v7398_v31  ;;  %v2937_v3 = vadd.f32 %v7295_v39, %v7398_v31 }
 0x45f   :  { %v3186_v53 = vpop.f32.mrf.mxu0  ;;  %v3064_v45 = vadd.f32 %v7301_v59, %v2931_v30  ;;  %v2941_v39 = vadd.f32 %v7299_v7, %v7375_v56 }
 0x460   :  { %v3287_v41 = vmax.bf16 %v7610_v19, %v3267_v10  ;;  %v3268_v58 = vpack.c.bf16 %v3183_v49, %v3179_v24  ;;  %v3060_v24 = vadd.f32 %v7297_v14, %v2927_v12  ;;  %v3187_v35 = vadd.f32 %v3186_v53, %v3054_v13  ;;  %v5648_v14 = vld [vmem:[#allocation11 + $0x260] ss:$8 sps:$4 sm:$0xff]  }
 0x461   :  { %v3188_v61 = vpop.f32.mrf.mxu0  ;;  %v3068_v10 = vadd.f32 %v7309_v2, %v2935_v43  ;;  %v3066_v49 = vadd.f32 %v7305_v15, %v2933_v46  ;;  %v3070_v60 = vadd.f32 %v7313_v26, %v2937_v3  ;;  %v2945_v2 = vadd.f32 %v7307_v25, %v7375_v56  ;;  %v5660_v13 = vld [vmem:[#allocation11 + $0x240] ss:$8 sps:$4 sm:$0xff]   ;;  %v5680_v46 = vld [vmem:[#allocation11 + $0x354] ss:$8 sps:$4 sm:$0xff]  }
 0x462   :  { %v3305_v63 = vmax.bf16 %v3287_v41, %v3285_v1  ;;  %v3288_v48 = vmax.bf16 %v7610_v19, %v3268_v58  ;;  %v3189_v54 = vadd.f32 %v3188_v61, %v3056_v62  ;;  %v5662_v41 = vld [vmem:[#allocation11 + $0x244] ss:$8 sps:$4 sm:$0xff]   ;;  %v2943_v61 = vadd.f32 %v7303_v52, %v7398_v31  ;;  %v5669_v43 = vld [vmem:[#allocation11 + $0x220] ss:$8 sps:$4 sm:$0xff]  }
 0x463   :  { %v3190_v57 = vpop.f32.mrf.mxu0  ;;  %v3078_v25 = vadd.f32 %v7325_v0, %v2945_v2  ;;  %v5674_v0 = vld [vmem:[#allocation11 + $0x364] ss:$8 sps:$4 sm:$0xff]   ;;  %v2957_v3 = vadd.f32 %v7327_v16, %v7398_v31  ;;  %v7796_v2 = vld [vmem:[#allocation22_spill] sm:$0xff] }
 0x464   :  { %v3191_v23 = vadd.f32 %v3190_v57, %v3058_v22  ;;  %v3306_v6 = vmax.bf16 %v3288_v48, %v3286_v47  ;;  %v2947_v22 = vadd.f32 %v7311_v44, %v7398_v31  ;;  %v3074_v47 = vadd.f32 %v7317_v20, %v2941_v39  ;;  %v5663_v20 = vld [vmem:[#allocation11 + $0x230] ss:$8 sps:$4 sm:$0xff]   ;;  %v5686_v16 = vld [vmem:[#allocation11 + $0x344] ss:$8 sps:$4 sm:$0xff]  }
 0x465   :  { %v3192_v9 = vpop.f32.mrf.mxu0 }
 0x466   :  { %v3269_v18 = vpack.c.bf16 %v3191_v23, %v3187_v35  ;;  %v3193_v55 = vadd.f32 %v3192_v9, %v3060_v24  ;;  %4319 = vmatprep.mubr.bf16.mxu1 %v3306_v6  ;;  %v3076_v24 = vadd.f32 %v7321_v29, %v2943_v61  ;;  %v3080_v52 = vadd.f32 %v7329_v50, %v2947_v22 }
 0x467   :  { %v3196_v4 = vpop.f32.mrf.mxu0  ;;  %4320 = vmatmul.mubr.bf16.vlgmr.msra.gmra.mxu1 %v3305_v63  ;;  %v5665_v63 = vld [vmem:[#allocation11 + $0x234] ss:$8 sps:$4 sm:$0xff]   ;;  %v2951_v29 = vadd.f32 %v7315_v37, %v7375_v56  ;;  %v2955_v50 = vadd.f32 %v7323_v38, %v7375_v56 }
 0x468   :  { %v3270_v51 = vpack.c.bf16 %v3193_v55, %v3189_v54  ;;  %4374 = vmatpush1.bf16.msra.mxu1 %v5642_v42  ;;  %v3197_v21 = vadd.f32 %v3196_v4, %v3064_v45  ;;  %v3289_v15 = vmax.bf16 %v7610_v19, %v3269_v18  ;;  %v5666_v42 = vld [vmem:[#allocation11 + $0x370] ss:$8 sps:$4 sm:$0xff]  }
 0x469   :  { %v3198_v40 = vpop.f32.mrf.mxu0  ;;  %4375 = vmatprep.subr.bf16.mxu1 %v5650_v28  ;;  %v5671_v28 = vld [vmem:[#allocation11 + $0x224] ss:$8 sps:$4 sm:$0xff]   ;;  %v7792_v37 = vld [vmem:[#allocation23_spill] sm:$0xff] }
 0x46a   :  { %v3199_v32 = vadd.f32 %v3198_v40, %v3066_v49  ;;  %v3290_v48 = vmax.bf16 %v7610_v19, %v3270_v51  ;;  %v5672_v51 = vld [vmem:[#allocation11 + $0x360] ss:$8 sps:$4 sm:$0xff]   ;;  %v3084_v45 = vadd.f32 %v7792_v37, %v2951_v29 }
 0x46b   :  { %v3200_v36 = vpop.f32.mrf.mxu0 }
 0x46c   :  { %v3201_v53 = vadd.f32 %v3200_v36, %v3068_v10  ;;  %4376 = vmatpush1.bf16.msra.mxu1 %v5648_v14  ;;  %v2953_v14 = vadd.f32 %v7319_v33, %v7398_v31  ;;  %v7793_v10 = vld [vmem:[#allocation27_spill] sm:$0xff]  ;;  %v7794_v36 = vld [vmem:[#allocation26_spill] sm:$0xff] }
 0x46d   :  { %v3202_v1 = vpop.f32.mrf.mxu0  ;;  %4377 = vmatprep.subr.bf16.mxu1 %v5656_v8  ;;  %v5677_v8 = vld [vmem:[#allocation11 + $0x214] ss:$8 sps:$4 sm:$0xff]   ;;  %v3088_v38 = vadd.f32 %v7793_v10, %v2955_v50  ;;  %v5675_v33 = vld [vmem:[#allocation11 + $0x210] ss:$8 sps:$4 sm:$0xff]  }
 0x46e   :  { %v3271_v58 = vpack.c.bf16 %v3201_v53, %v3197_v21  ;;  %v3203_v34 = vadd.f32 %v3202_v1, %v3070_v60  ;;  %v3086_v49 = vadd.f32 %v7794_v36, %v2953_v14  ;;  %v7795_v21 = vld [vmem:[#allocation53_spill] sm:$0xff]  ;;  %v7804_v10 = vld [vmem:[#allocation50_spill] sm:$0xff] }
 0x46f   :  { %v3206_v59 = vpop.f32.mrf.mxu0  ;;  %v3090_v53 = vadd.f32 %v7795_v21, %v2957_v3  ;;  %v5690_v14 = vld [vmem:[#allocation11 + $0x330] ss:$8 sps:$4 sm:$0xff]   ;;  %v5693_v21 = vld [vmem:[#allocation11 + $0x2e0] ss:$8 sps:$4 sm:$0xff]  }
 0x470   :  { %v3291_v26 = vmax.bf16 %v7610_v19, %v3271_v58  ;;  %v3272_v12 = vpack.c.bf16 %v3203_v34, %v3199_v32  ;;  %4378 = vmatpush1.bf16.msra.mxu1 %v5654_v17  ;;  %v3207_v23 = vadd.f32 %v3206_v59, %v3074_v47  ;;  %v5683_v58 = vld [vmem:[#allocation11 + $0x204] ss:$8 sps:$4 sm:$0xff]  }
 0x471   :  { %v3208_v7 = vpop.f32.mrf.mxu0  ;;  %4379 = vmatprep.subr.bf16.mxu1 %v5662_v41  ;;  %v5678_v41 = vld [vmem:[#allocation11 + $0x350] ss:$8 sps:$4 sm:$0xff]  }
 0x472   :  { %v3307_v62 = vmax.bf16 %v3291_v26, %v3289_v15  ;;  %v3292_v57 = vmax.bf16 %v7610_v19, %v3272_v12  ;;  %v3209_v54 = vadd.f32 %v3208_v7, %v3076_v24  ;;  %v2961_v15 = vadd.f32 %v7796_v2, %v7375_v56  ;;  %v7797_v26 = vld [vmem:[#allocation25_spill] sm:$0xff]  ;;  %v7800_v24 = vld [vmem:[#allocation56_spill] sm:$0xff] }
 0x473   :  { %v3210_v35 = vpop.f32.mrf.mxu0  ;;  %v2965_v12 = vadd.f32 %v7797_v26, %v7375_v56  ;;  %v5681_v7 = vld [vmem:[#allocation11 + $0x200] ss:$8 sps:$4 sm:$0xff]  }
 0x474   :  { %v3211_v6 = vadd.f32 %v3210_v35, %v3078_v25  ;;  %4380 = vmatpush1.bf16.msra.mxu1 %v5660_v13  ;;  %v3308_v44 = vmax.bf16 %v3292_v57, %v3290_v48  ;;  %v7798_v25 = vld [vmem:[#allocation24_spill] sm:$0xff]  ;;  %v3094_v35 = vadd.f32 %v7800_v24, %v2961_v15  ;;  %v7805_v36 = vld [vmem:[#allocation29_spill] sm:$0xff] }
 0x475   :  { %v3212_v9 = vpop.f32.mrf.mxu0  ;;  %4381 = vmatprep.subr.bf16.mxu1 %v5665_v63  ;;  %v5684_v63 = vld [vmem:[#allocation11 + $0x340] ss:$8 sps:$4 sm:$0xff]   ;;  %v2963_v48 = vadd.f32 %v7798_v25, %v7398_v31  ;;  %v5702_v25 = vld [vmem:[#allocation11 + $0x310] ss:$8 sps:$4 sm:$0xff]  }
 0x476   :  { %v3273_v18 = vpack.c.bf16 %v3211_v6, %v3207_v23  ;;  %v3213_v55 = vadd.f32 %v3212_v9, %v3080_v52  ;;  %4362 = vmatprep.mubr.bf16.mxu0 %v3308_v44  ;;  %v5689_v23 = vld [vmem:[#allocation11 + $0x2f4] ss:$8 sps:$4 sm:$0xff]   ;;  %v7810_v2 = vld [vmem:[#allocation32_spill] sm:$0xff] }
 0x477   :  { %v3216_v4 = vpop.f32.mrf.mxu0  ;;  %4363 = vmatmul.mubr.bf16.vlgmr.msra.gmra.mxu0 %v3307_v62  ;;  %v7799_v62 = vld [vmem:[#allocation47_spill] sm:$0xff] }
 0x478   :  { %v3274_v30 = vpack.c.bf16 %v3213_v55, %v3209_v54  ;;  %4382 = vmatpush1.bf16.msra.mxu1 %v5663_v20  ;;  %4417 = vmatpush1.bf16.msra.mxu0 %v5666_v42  ;;  %v3217_v17 = vadd.f32 %v3216_v4, %v3084_v45  ;;  %v7491_v61 = vmax.bf16 %v7610_v19, %v3273_v18  ;;  %v5692_v6 = vld [vmem:[#allocation11 + $0x334] ss:$8 sps:$4 sm:$0xff]   ;;  %v7803_v18 = vld [vmem:[#allocation65_spill] sm:$0xff] }
 0x479   :  { %v3218_v40 = vpop.f32.mrf.mxu0  ;;  %4383 = vmatprep.subr.bf16.mxu1 %v5671_v28  ;;  %4418 = vmatprep.subr.bf16.mxu0 %v5674_v0  ;;  %v2967_v57 = vadd.f32 %v7799_v62, %v7398_v31  ;;  %v7801_v44 = vld [vmem:[#allocation31_spill] sm:$0xff]  ;;  %v7802_v0 = vld [vmem:[#allocation30_spill] sm:$0xff]  ;;  %v5707_v62 = vld [vmem:[#allocation11 + $0x2c4] ss:$8 sps:$4 sm:$0xff]  }
 0x47a   :  { %v3219_v34 = vadd.f32 %v3218_v40, %v3086_v49  ;;  %v3098_v20 = vadd.f32 %v7801_v44, %v2965_v12  ;;  %v3294_v42 = vmax.bf16 %v7610_v19, %v3274_v30  ;;  %v3096_v54 = vadd.f32 %v7802_v0, %v2963_v48  ;;  %v5695_v30 = vld [vmem:[#allocation11 + $0x2e4] ss:$8 sps:$4 sm:$0xff]   ;;  %v7811_v12 = vld [vmem:[#allocation35_spill] sm:$0xff] }
 0x47b   :  { %v3220_v60 = vpop.f32.mrf.mxu0  ;;  %v3100_v55 = vadd.f32 %v7803_v18, %v2967_v57  ;;  %v2975_v49 = vadd.f32 %v7805_v36, %v7375_v56  ;;  %v5710_v57 = vld [vmem:[#allocation11 + $0x304] ss:$8 sps:$4 sm:$0xff]   ;;  %v5705_v0 = vld [vmem:[#allocation11 + $0x2c0] ss:$8 sps:$4 sm:$0xff]   ;;  %v5714_v36 = vld [vmem:[#allocation11 + $0x3f0] ss:$8 sps:$4 sm:$0xff]  }
 0x47c   :  { %v3221_v1 = vadd.f32 %v3220_v60, %v3088_v38  ;;  %4384 = vmatpush1.bf16.msra.mxu1 %v5669_v43  ;;  %4419 = vmatpush1.bf16.msra.mxu0 %v5672_v51  ;;  %v5687_v43 = vld [vmem:[#allocation11 + $0x2f0] ss:$8 sps:$4 sm:$0xff]   ;;  %v2971_v38 = vadd.f32 %v7804_v10, %v7375_v56  ;;  %v7813_v18 = vld [vmem:[#allocation68_spill] sm:$0xff] }
 0x47d   :  { %v3222_v32 = vpop.f32.mrf.mxu0  ;;  %4385 = vmatprep.subr.bf16.mxu1 %v5677_v8  ;;  %4420 = vmatprep.subr.bf16.mxu0 %v5680_v46  ;;  %v5698_v8 = vld [vmem:[#allocation11 + $0x324] ss:$8 sps:$4 sm:$0xff]  }
 0x47e   :  { %v3275_v39 = vpack.c.bf16 %v3221_v1, %v3217_v17  ;;  %v3223_v59 = vadd.f32 %v3222_v32, %v3090_v53  ;;  %v5696_v53 = vld [vmem:[#allocation11 + $0x320] ss:$8 sps:$4 sm:$0xff]   ;;  %v5704_v32 = vld [vmem:[#allocation11 + $0x314] ss:$8 sps:$4 sm:$0xff]  }
 0x47f   :  { %v3226_v13 = vpop.f32.mrf.mxu0  ;;  %v7806_v17 = vld [vmem:[#allocation28_spill] sm:$0xff] }
 0x480   :  { %v7494_v22 = vmax.bf16 %v7610_v19, %v3275_v39  ;;  %v3276_v47 = vpack.c.bf16 %v3223_v59, %v3219_v34  ;;  %4386 = vmatpush1.bf16.msra.mxu1 %v5675_v33  ;;  %4421 = vmatpush1.bf16.msra.mxu0 %v5678_v41  ;;  %v3227_v29 = vadd.f32 %v3226_v13, %v3094_v35  ;;  %v5701_v41 = vld [vmem:[#allocation11 + $0x2d4] ss:$8 sps:$4 sm:$0xff]  }
 0x481   :  { %v3228_v52 = vpop.f32.mrf.mxu0  ;;  %4387 = vmatprep.subr.bf16.mxu1 %v5683_v58  ;;  %4422 = vmatprep.subr.bf16.mxu0 %v5686_v16  ;;  %v2973_v1 = vadd.f32 %v7806_v17, %v7398_v31  ;;  %v7807_v58 = vld [vmem:[#allocation59_spill] sm:$0xff]  ;;  %v7808_v34 = vld [vmem:[#allocation62_spill] sm:$0xff] }
 0x482   :  { %v3309_v9 = vmax.bf16 %v7494_v22, %v7491_v61  ;;  %v3296_v28 = vmax.bf16 %v7610_v19, %v3276_v47  ;;  %v3229_v46 = vadd.f32 %v3228_v52, %v3096_v54  ;;  %v2977_v16 = vadd.f32 %v7807_v58, %v7398_v31  ;;  %v7809_v59 = vld [vmem:[#allocation34_spill] sm:$0xff]  ;;  %v5708_v54 = vld [vmem:[#allocation11 + $0x300] ss:$8 sps:$4 sm:$0xff]  }
 0x483   :  { %v3230_v4 = vpop.f32.mrf.mxu0  ;;  %v3104_v39 = vadd.f32 %v7808_v34, %v2971_v38  ;;  %v3108_v56 = vadd.f32 %v7809_v59, %v2975_v49  ;;  %v3106_v15 = vadd.f32 %v7810_v2, %v2973_v1  ;;  %v5711_v38 = vld [vmem:[#allocation11 + $0x2b0] ss:$8 sps:$4 sm:$0xff]   ;;  %v5717_v58 = vld [vmem:[#allocation11 + $0x2a0] ss:$8 sps:$4 sm:$0xff]   ;;  %v3129_v34 = vpop.f32.mrf.mxu1  ;;  %v5725_v59 = vld [vmem:[#allocation11 + $0x294] ss:$8 sps:$4 sm:$0xff]  }
 0x484   :  { %v3231_v50 = vadd.f32 %v3230_v4, %v3098_v20  ;;  %4388 = vmatpush1.bf16.msra.mxu1 %v5681_v7  ;;  %4423 = vmatpush1.bf16.msra.mxu0 %v5684_v63  ;;  %v3310_v51 = vmax.bf16 %v3296_v28, %v3294_v42  ;;  %v3110_v13 = vadd.f32 %v7811_v12, %v2977_v16  ;;  %v5699_v63 = vld [vmem:[#allocation11 + $0x2d0] ss:$8 sps:$4 sm:$0xff]   ;;  %v5720_v16 = vld [vmem:[#allocation11 + $0x3e0] ss:$8 sps:$4 sm:$0xff]  }
 0x485   :  { %v3232_v40 = vpop.f32.mrf.mxu0  ;;  %4389 = vmatprep.subr.bf16.mxu1 %v5689_v23  ;;  %4424 = vmatprep.subr.bf16.mxu0 %v5692_v6  ;;  %v7812_v42 = vld [vmem:[#allocation71_spill] sm:$0xff]  ;;  %v7817_v2 = vld [vmem:[#allocation77_spill] sm:$0xff] }
 0x486   :  { %v3277_v3 = vpack.c.bf16 %v3231_v50, %v3227_v29  ;;  %v3233_v37 = vadd.f32 %v3232_v40, %v3100_v55  ;;  %4405 = vmatprep.mubr.bf16.mxu1 %v3310_v51  ;;  %v2983_v55 = vadd.f32 %v7813_v18, %v7398_v31  ;;  %v5713_v29 = vld [vmem:[#allocation11 + $0x2b4] ss:$8 sps:$4 sm:$0xff]   ;;  %v5753_v61 = vld [vmem:[#allocation11 + $0x380] ss:$8 sps:$4 sm:$0xff]  }
 0x487   :  { %v3236_v45 = vpop.f32.mrf.mxu0  ;;  %v5716_v50 = vld [vmem:[#allocation11 + $0x3f4] ss:$8 sps:$4 sm:$0xff]   ;;  %v5756_v22 = vld [vmem:[#allocation11 + $0x440] ss:$8 sps:$4 sm:$0xff]  }
 0x488   :  { %v3278_v60 = vpack.c.bf16 %v3233_v37, %v3229_v46  ;;  %4390 = vmatpush2.bf16.msra.mxu1 %v5687_v43  ;;  %4425 = vmatpush1.bf16.msra.mxu0 %v5690_v14  ;;  %v3237_v47 = vadd.f32 %v3236_v45, %v3104_v39  ;;  %v7521_v23 = vmax.bf16 %v7610_v19, %v3277_v3  ;;  %v7814_v43 = vld [vmem:[#allocation33_spill] sm:$0xff]  ;;  %v7816_v45 = vld [vmem:[#allocation80_spill] sm:$0xff] }
 0x489   :  { %v3238_v33 = vpop.f32.mrf.mxu0  ;;  %4391 = vmatprep.subr.bf16.mxu1 %v5695_v30  ;;  %4426 = vmatprep.subr.bf16.mxu0 %v5698_v8  ;;  %v2987_v51 = vadd.f32 %v7814_v43, %v7398_v31  ;;  %v7815_v8 = vld [vmem:[#allocation74_spill] sm:$0xff] }
 0x48a   :  { %v3239_v24 = vadd.f32 %v3238_v33, %v3106_v15  ;;  %v3298_v14 = vmax.bf16 %v7610_v19, %v3278_v60  ;;  %v3116_v46 = vadd.f32 %v7815_v8, %v2983_v55  ;;  %v5719_v60 = vld [vmem:[#allocation11 + $0x2a4] ss:$8 sps:$4 sm:$0xff]   ;;  %v2993_v15 = vadd.f32 %v7817_v2, %v7398_v31  ;;  %v5744_v8 = vld [vmem:[#allocation11 + $0x460] ss:$8 sps:$4 sm:$0xff]   ;;  %v5789_v2 = vld [vmem:[#allocation11 + $0x490] ss:$8 sps:$4 sm:$0xff]  }
 0x48b   :  { %v3240_v26 = vpop.f32.mrf.mxu0  ;;  %v3120_v37 = vadd.f32 %v7406_v11, %v2987_v51  ;;  %v5743_v51 = vld [vmem:[#allocation11 + $0x3a4] ss:$8 sps:$4 sm:$0xff]  }
 0x48c   :  { %v3241_v7 = vadd.f32 %v3240_v26, %v3108_v56  ;;  %4392 = vmatpush2.bf16.msra.mxu1 %v5693_v21  ;;  %4427 = vmatpush1.bf16.msra.mxu0 %v5696_v53  ;;  %v5722_v53 = vld [vmem:[#allocation11 + $0x3e4] ss:$8 sps:$4 sm:$0xff]   ;;  %v5728_v56 = vld [vmem:[#allocation11 + $0x3d4] ss:$8 sps:$4 sm:$0xff]  }
 0x48d   :  { %v3242_v48 = vpop.f32.mrf.mxu0  ;;  %4393 = vmatprep.subr.bf16.mxu1 %v5701_v41  ;;  %4428 = vmatprep.subr.bf16.mxu0 %v5704_v32  ;;  %v7818_v26 = vld [vmem:[#allocation36_spill] sm:$0xff] }
 0x48e   :  { %v3279_v35 = vpack.c.bf16 %v3241_v7, %v3237_v47  ;;  %v3243_v52 = vadd.f32 %v3242_v48, %v3110_v13  ;;  %v2997_v12 = vadd.f32 %v7818_v26, %v7398_v31  ;;  %v7819_v47 = vld [vmem:[#allocation38_spill] sm:$0xff]  ;;  %v5792_v26 = vld [vmem:[#allocation11 + $0x480] ss:$8 sps:$4 sm:$0xff]  }
 0x48f   :  { %v3246_v6 = vpop.f32.mrf.mxu0  ;;  %v3126_v7 = vadd.f32 %v7819_v47, %v2993_v15  ;;  %v5726_v48 = vld [vmem:[#allocation11 + $0x3d0] ss:$8 sps:$4 sm:$0xff]   ;;  %v5794_v15 = vld [vmem:[#allocation11 + $0x484] ss:$8 sps:$4 sm:$0xff]  }
 0x490   :  { %v7524_v44 = vmax.bf16 %v7610_v19, %v3279_v35  ;;  %v3280_v20 = vpack.c.bf16 %v3243_v52, %v3239_v24  ;;  %v7527_v28 = vadd.f32 %v3246_v6, %v7812_v42  ;;  %4394 = vmatpush2.bf16.msra.mxu1 %v5699_v63  ;;  %4429 = vmatpush1.bf16.msra.mxu0 %v5702_v25  ;;  %v5723_v25 = vld [vmem:[#allocation11 + $0x290] ss:$8 sps:$4 sm:$0xff]   ;;  %v5734_v24 = vld [vmem:[#allocation11 + $0x3c4] ss:$8 sps:$4 sm:$0xff]  }
 0x491   :  { %v3248_v4 = vpop.f32.mrf.mxu0  ;;  %4395 = vmatprep.subr.bf16.mxu1 %v5707_v62  ;;  %4430 = vmatprep.subr.bf16.mxu0 %v5710_v57  ;;  %v5731_v57 = vld [vmem:[#allocation11 + $0x284] ss:$8 sps:$4 sm:$0xff]   ;;  %v5797_v47 = vld [vmem:[#allocation12 + $0x70] sm:$0xff]  }
 0x492   :  { %v3311_v40 = vmax.bf16 %v7524_v44, %v7521_v23  ;;  %v3300_v30 = vmax.bf16 %v7610_v19, %v3280_v20  ;;  %v3249_v17 = vadd.f32 %v3248_v4, %v3116_v46  ;;  %v5749_v46 = vld [vmem:[#allocation11 + $0x394] ss:$8 sps:$4 sm:$0xff]   ;;  %v5777_v44 = vld [vmem:[#allocation11 + $0x4d0] ss:$8 sps:$4 sm:$0xff]  }
 0x493   :  { %v3250_v3 = vpop.f32.mrf.mxu0  ;;  %v5779_v23 = vld [vmem:[#allocation11 + $0x4d4] ss:$8 sps:$4 sm:$0xff]  }
 0x494   :  { %v3251_v10 = vadd.f32 %v3250_v3, %v7816_v45  ;;  %4396 = vmatpush2.bf16.msra.mxu1 %v5705_v0  ;;  %4431 = vmatpush1.bf16.msra.mxu0 %v5708_v54  ;;  %v3312_v49 = vmax.bf16 %v3300_v30, %v3298_v14  ;;  %v5737_v0 = vld [vmem:[#allocation11 + $0x3b4] ss:$8 sps:$4 sm:$0xff]   ;;  %v5746_v14 = vld [vmem:[#allocation11 + $0x464] ss:$8 sps:$4 sm:$0xff]   ;;  %v5741_v30 = vld [vmem:[#allocation11 + $0x3a0] ss:$8 sps:$4 sm:$0xff]  }
 0x495   :  { %v3252_v21 = vpop.f32.mrf.mxu0  ;;  %4397 = vmatprep.subr.bf16.mxu1 %v5713_v29  ;;  %4432 = vmatprep.subr.bf16.mxu0 %v5716_v50  ;;  %v5740_v54 = vld [vmem:[#allocation11 + $0x474] ss:$8 sps:$4 sm:$0xff]   ;;  %v5735_v29 = vld [vmem:[#allocation11 + $0x3b0] ss:$8 sps:$4 sm:$0xff]  }
 0x496   :  { %v3281_v1 = vpack.c.bf16 %v3251_v10, %v7527_v28  ;;  %v3253_v33 = vadd.f32 %v3252_v21, %v3120_v37  ;;  %4448 = vmatprep.mubr.bf16.mxu0 %v3312_v49  ;;  %v5732_v28 = vld [vmem:[#allocation11 + $0x3c0] ss:$8 sps:$4 sm:$0xff]   ;;  %v5738_v50 = vld [vmem:[#allocation11 + $0x470] ss:$8 sps:$4 sm:$0xff]   ;;  %v5752_v3 = vld [vmem:[#allocation11 + $0x454] ss:$8 sps:$4 sm:$0xff]  }
 0x497   :  { %v3256_v41 = vpop.f32.mrf.mxu0  ;;  %v5747_v37 = vld [vmem:[#allocation11 + $0x390] ss:$8 sps:$4 sm:$0xff]   ;;  %v5755_v10 = vld [vmem:[#allocation11 + $0x384] ss:$8 sps:$4 sm:$0xff]   ;;  %v5762_v21 = vld [vmem:[#allocation11 + $0x420] ss:$8 sps:$4 sm:$0xff]  }
 0x498   :  { %v3282_v32 = vpack.c.bf16 %v3253_v33, %v3249_v17  ;;  %v3257_v11 = vadd.f32 %v3256_v41, %v7414_v27  ;;  %4398 = vmatpush2.bf16.msra.mxu1 %v5711_v38  ;;  %4433 = vmatpush2.bf16.msra.mxu0 %v5714_v36  ;;  %v3130_v27 = vadd.f32 %v3129_v34, %v2997_v12  ;;  %v5750_v45 = vld [vmem:[#allocation11 + $0x450] ss:$8 sps:$4 sm:$0xff]   ;;  %v5758_v38 = vld [vmem:[#allocation11 + $0x444] ss:$8 sps:$4 sm:$0xff]   ;;  %v5773_v33 = vld [vmem:[#allocation11 + $0x4f4] ss:$8 sps:$4 sm:$0xff]  }
 0x499   :  { %v3258_v39 = vpop.f32.mrf.mxu0  ;;  %4399 = vmatprep.subr.bf16.mxu1 %v5719_v60  ;;  %4434 = vmatprep.subr.bf16.mxu0 %v5722_v53  ;;  %v7549_v31 = vmax.bf16 %v7610_v19, %v3281_v1  ;;  %v5759_v36 = vld [vmem:[#allocation11 + $0x430] ss:$8 sps:$4 sm:$0xff]   ;;  %v5764_v49 = vld [vmem:[#allocation11 + $0x424] ss:$8 sps:$4 sm:$0xff]   ;;  %v5767_v60 = vld [vmem:[#allocation11 + $0x414] ss:$8 sps:$4 sm:$0xff]  }
 0x49a   :  { %v3259_v35 = vadd.f32 %v3258_v39, %v3126_v7  ;;  %v3302_v18 = vmax.bf16 %v7610_v19, %v3282_v32  ;;  %v5765_v53 = vld [vmem:[#allocation11 + $0x410] ss:$8 sps:$4 sm:$0xff]   ;;  %v5770_v17 = vld [vmem:[#allocation11 + $0x404] ss:$8 sps:$4 sm:$0xff]   ;;  %v5768_v1 = vld [vmem:[#allocation11 + $0x400] ss:$8 sps:$4 sm:$0xff]  }
 0x49b   :  { %v3260_v13 = vpop.f32.mrf.mxu0  ;;  %v5771_v41 = vld [vmem:[#allocation11 + $0x4f0] ss:$8 sps:$4 sm:$0xff]   ;;  %v5776_v32 = vld [vmem:[#allocation11 + $0x4e4] ss:$8 sps:$4 sm:$0xff]  }
 0x49c   :  { %v3261_v63 = vadd.f32 %v3260_v13, %v7428_v5  ;;  %4400 = vmatpush2.bf16.msra.mxu1 %v5717_v58  ;;  %4435 = vmatpush2.bf16.msra.mxu0 %v5720_v16  ;;  %v5729_v5 = vld [vmem:[#allocation11 + $0x280] ss:$8 sps:$4 sm:$0xff]   ;;  %v5785_v16 = vld [vmem:[#allocation11 + $0x4b4] ss:$8 sps:$4 sm:$0xff]   ;;  %v5783_v34 = vld [vmem:[#allocation11 + $0x4b0] ss:$8 sps:$4 sm:$0xff]  }
 0x49d   :  { %v3262_v62 = vpop.f32.mrf.mxu0  ;;  %4401 = vmatprep.subr.bf16.mxu1 %v5725_v59  ;;  %4436 = vmatprep.subr.bf16.mxu0 %v5728_v56  ;;  %v5780_v58 = vld [vmem:[#allocation11 + $0x4c0] ss:$8 sps:$4 sm:$0xff]   ;;  %v5788_v39 = vld [vmem:[#allocation11 + $0x4a4] ss:$8 sps:$4 sm:$0xff]   ;;  %v5791_v56 = vld [vmem:[#allocation11 + $0x494] ss:$8 sps:$4 sm:$0xff]  }
 0x49e   :  { %v3283_v52 = vpack.c.bf16 %v3261_v63, %v3257_v11  ;;  %v3263_v6 = vadd.f32 %v3262_v62, %v3130_v27  ;;  %v5774_v11 = vld [vmem:[#allocation11 + $0x4e0] ss:$8 sps:$4 sm:$0xff]   ;;  %v5795_v12 = vld [vmem:[#allocation12 + $0x78] sm:$0xff]   ;;  %v5798_v7 = vld [vmem:[#allocation12 + $0x30] sm:$0xff]  }
 0x49f   :  { %v5786_v59 = vld [vmem:[#allocation11 + $0x4a0] ss:$8 sps:$4 sm:$0xff]   ;;  %v5796_v13 = vld [vmem:[#allocation12 + $0x38] sm:$0xff]  }
 0x4a0   :  { %v7552_v20 = vmax.bf16 %v7610_v19, %v3283_v52  ;;  %v3284_v42 = vpack.c.bf16 %v3263_v6, %v3259_v35  ;;  %4402 = vmatpush2.bf16.msra.mxu1 %v5723_v25  ;;  %4437 = vmatpush2.bf16.msra.mxu0 %v5726_v48  ;;  %v5799_v27 = vld [vmem:[#allocation12 + $0x68] sm:$0xff]   ;;  %v5801_v25 = vld [vmem:[#allocation12 + $0x60] sm:$0xff]   ;;  %v5803_v62 = vld [vmem:[#allocation12 + $0x58] sm:$0xff]  }
 0x4a1   :  { %4403 = vmatprep.subr.bf16.mxu1 %v5731_v57  ;;  %4438 = vmatprep.subr.bf16.mxu0 %v5734_v24  ;;  %v5800_v63 = vld [vmem:[#allocation12 + $0x28] sm:$0xff]   ;;  %v5802_v48 = vld [vmem:[#allocation12 + $0x20] sm:$0xff]   ;;  %v5804_v57 = vld [vmem:[#allocation12 + $0x18] sm:$0xff]  }
 0x4a2   :  { %v3313_v55 = vmax.bf16 %v7552_v20, %v7549_v31  ;;  %v3304_v4 = vmax.bf16 %v7610_v19, %v3284_v42  ;;  %v5805_v24 = vld [vmem:[#allocation12 + $0x50] sm:$0xff]   ;;  %v5807_v52 = vld [vmem:[#allocation12 + $0x48] sm:$0xff]   ;;  %v5809_v31 = vld [vmem:[#allocation12 + $0x40] sm:$0xff]  }
 0x4a3   :  { %v5806_v35 = vld [vmem:[#allocation12 + $0x10] sm:$0xff]   ;;  %v5808_v6 = vld [vmem:[#allocation12 + $0x8] sm:$0xff]   ;;  %v5810_v20 = vld [vmem:[#allocation12] sm:$0xff]  }
 0x4a4   :  { %4404 = vmatpush2.bf16.msra.mxu1 %v5729_v5  ;;  %4439 = vmatpush2.bf16.msra.mxu0 %v5732_v28  ;;  %v3314_v43 = vmax.bf16 %v3304_v4, %v3302_v18 }
 0x4a5   :  { %4440 = vmatprep.subr.bf16.mxu0 %v5737_v0  ;;  %4459 = vmatprep.subr.bf16.mxu1 %v5740_v54 }
 0x4a7   :  { %4406 = vmatmul.mubr.bf16.vlgmr.msra.gmra.mxu1 %v3309_v9  ;;  %v5761_v9 = vld [vmem:[#allocation11 + $0x434] ss:$8 sps:$4 sm:$0xff]  }
 0x4a8   :  { %4441 = vmatpush2.bf16.msra.mxu0 %v5735_v29  ;;  %4460 = vmatpush1.bf16.msra.mxu1 %v5738_v50 }
 0x4a9   :  { %4491 = vmatprep.mubr.bf16.mxu1 %v3314_v43  ;;  %4442 = vmatprep.subr.bf16.mxu0 %v5743_v51  ;;  %v3475_v51 = vld [vmem:[%s7593_s8] sm:$0x3] }
 0x4aa   :  { %4461 = vmatprep.subr.bf16.mxu1 %v5746_v14  ;;  %v7820_v14 = vld [vmem:[#allocation20_spill] sm:$0xff] }
 0x4ac   :  { %4443 = vmatpush2.bf16.msra.mxu0 %v5741_v30  ;;  %4462 = vmatpush1.bf16.msra.mxu1 %v5744_v8  ;;  %v3480_v30 = vrot.slane %v3475_v51, %v7820_v14 }
 0x4ad   :  { %4444 = vmatprep.subr.bf16.mxu0 %v5749_v46  ;;  %4463 = vmatprep.subr.bf16.mxu1 %v5752_v3  ;;  %v7821_v3 = vld [vmem:[#allocation21_spill] sm:$0xff] }
 0x4b0   :  { %4445 = vmatpush2.bf16.msra.mxu0 %v5747_v37  ;;  %4464 = vmatpush1.bf16.msra.mxu1 %v5750_v45  ;;  %v3484_v37 = vrot.slane %v3475_v51, %v7821_v3 }
 0x4b1   :  { %4446 = vmatprep.subr.bf16.mxu0 %v5755_v10  ;;  %4465 = vmatprep.subr.bf16.mxu1 %v5758_v38 }
 0x4b4   :  { %4447 = vmatpush2.bf16.msra.mxu0 %v5753_v61  ;;  %4466 = vmatpush1.bf16.msra.mxu1 %v5756_v22 }
 0x4b5   :  { %4467 = vmatprep.subr.bf16.mxu1 %v5761_v9  ;;  %5183 = vmatprep.subr.bf16.mxu0 %v5795_v12 }
 0x4b7   :  { %4449 = vmatmul.mubr.bf16.vlgmr.msra.gmra.mxu0 %v3311_v40  ;;  %v5782_v40 = vld [vmem:[#allocation11 + $0x4c4] ss:$8 sps:$4 sm:$0xff]  }
 0x4b8   :  { %4468 = vmatpush1.bf16.msra.mxu1 %v5759_v36  ;;  %5184 = vmatpush3.bf16.msra.mxu0 %v5796_v13 }
 0x4b9   :  { %4469 = vmatprep.subr.bf16.mxu1 %v5764_v49  ;;  %5185 = vmatprep.subr.bf16.mxu0 %v5797_v47  ;;  %v5993_v47 = vmov 0.0  }
 0x4bc   :  { %4470 = vmatpush1.bf16.msra.mxu1 %v5762_v21  ;;  %5186 = vmatpush3.bf16.msra.mxu0 %v5798_v7  ;;  %v4685_v7 = vld [vmem:[#allocation2] sm:$0x1] }
 0x4bd   :  { %4471 = vmatprep.subr.bf16.mxu1 %v5767_v60  ;;  %5187 = vmatprep.subr.bf16.mxu0 %v5799_v27 }
 0x4be   :  { %4688 = vperm.xlu0 %5228, %v4685_v7  }
 0x4c0   :  { %4472 = vmatpush1.bf16.msra.mxu1 %v5765_v53  ;;  %5188 = vmatpush3.bf16.msra.mxu0 %v5800_v63 }
 0x4c1   :  { %4473 = vmatprep.subr.bf16.mxu1 %v5770_v17  ;;  %5189 = vmatprep.subr.bf16.mxu0 %v5801_v25 }
 0x4c4   :  { %4474 = vmatpush1.bf16.msra.mxu1 %v5768_v1  ;;  %5190 = vmatpush3.bf16.msra.mxu0 %v5802_v48 }
 0x4c5   :  { %4475 = vmatprep.subr.bf16.mxu1 %v5773_v33  ;;  %5191 = vmatprep.subr.bf16.mxu0 %v5803_v62  ;;  %v5165_v62 = vld [vmem:[%s7595_s10] ss:$0 sm:$0xff]  ;;  %s5995_s10 = smov [#allocation14]  }
 0x4c6   :  { %s4749_s27 = sshll.u32 %s5995_s10, 4  ;;  %s4750_s27 = int_to_ptr.vmem [resolvable:$true] %s4749_s27 }
 0x4c7   :  { %s5955_s28 = scalar_lea.vmem %s4750_s27, 32  ;;  %p5956_p3 = scmp.lt.s32.totalorder %s4750_s27, %s4750_s27 }
 0x4c8   :  { %4476 = vmatpush2.bf16.msra.mxu1 %v5771_v41  ;;  %5192 = vmatpush3.bf16.msra.mxu0 %v5804_v57 }
 0x4c9   :  { %4477 = vmatprep.subr.bf16.mxu1 %v5776_v32  ;;  %5193 = vmatprep.subr.bf16.mxu0 %v5805_v24 }
 0x4cc   :  { %4478 = vmatpush2.bf16.msra.mxu1 %v5774_v11  ;;  %5194 = vmatpush3.bf16.msra.mxu0 %v5806_v35 }
 0x4cd   :  { %4479 = vmatprep.subr.bf16.mxu1 %v5779_v23  ;;  %5195 = vmatprep.subr.bf16.mxu0 %v5807_v52 }
 0x4d0   :  { %4480 = vmatpush2.bf16.msra.mxu1 %v5777_v44  ;;  %5196 = vmatpush3.bf16.msra.mxu0 %v5808_v6 }
 0x4d1   :  { %4481 = vmatprep.subr.bf16.mxu1 %v5782_v40  ;;  %5197 = vmatprep.subr.bf16.mxu0 %v5809_v31 }
 0x4d4   :  { %4482 = vmatpush2.bf16.msra.mxu1 %v5780_v58  ;;  %5198 = vmatpush3.bf16.msra.mxu0 %v5810_v20  ;;  %v4684_v20 = vld [vmem:[%s7596_s11] sm:$0x1]  ;;  %s5951_s11 = scalar_lea.vmem %s4750_s27, 16 }
 0x4d5   :  { %4483 = vmatprep.subr.bf16.mxu1 %v5785_v16  ;;  %p5952_p2 = scmp.ne.s32.totalorder %s4750_s27, %s5951_s11  ;;  %p5957_p4 = scmp.lt.s32.totalorder %s5955_s28, %s5951_s11 }
 0x4d7   :  { %p5958_p5 = por %p5957_p4, %p5956_p3 }
 0x4d8   :  { %4484 = vmatpush2.bf16.msra.mxu1 %v5783_v34 }
 0x4d9   :  { %4485 = vmatprep.subr.bf16.mxu1 %v5788_v39  ;;  %p5959_p6 = pnand %p5958_p5, %p5952_p2 }
 0x4dc   :  { %4486 = vmatpush2.bf16.msra.mxu1 %v5786_v59 }
 0x4dd   :  { %4487 = vmatprep.subr.bf16.mxu1 %v5791_v56 }
 0x4e0   :  { %4488 = vmatpush2.bf16.msra.mxu1 %v5789_v2 }
 0x4e1   :  { %4489 = vmatprep.subr.bf16.mxu1 %v5794_v15 }
 0x4e4   :  { %4490 = vmatpush2.bf16.msra.mxu1 %v5792_v26 }
 0x4e5   :  { %5207 = vmatprep.subr.bf16.mxu1 %v5993_v47 }
 0x4e7   :  { %4492 = vmatmul.mubr.bf16.vlgmr.msra.gmra.mxu1 %v3313_v55 }
 0x4e8   :  { %5209 = vmatprep.mubr.msk.bf16.mxu1 %vm5994_vm3, %v5993_v47 }
 0x527   :  { %v4321_v42 = vpop.f32.mrf.mxu1 }
 0x528   :  { %v4322_v10 = vadd.f32 %v4321_v42, %v3480_v30 }
 0x529   :  { %v4323_v5 = vpop.f32.mrf.mxu1 }
 0x52a   :  { %v4324_v22 = vadd.f32 %v4323_v5, %v3484_v37 }
 0x52b   :  { %v4325_v0 = vpop.f32.mrf.mxu1 }
 0x52c   :  { %v4326_v45 = vadd.f32 %v4325_v0, %v3480_v30 }
 0x52d   :  { %v4327_v18 = vpop.f32.mrf.mxu1 }
 0x52e   :  { %v4328_v9 = vadd.f32 %v4327_v18, %v3484_v37 }
 0x537   :  { %v4364_v28 = vpop.f32.mrf.mxu0 }
 0x538   :  { %v4365_v49 = vadd.f32 %v4364_v28, %v4322_v10 }
 0x539   :  { %v4366_v54 = vpop.f32.mrf.mxu0  ;;  %v4689_v42 = vpop.permute.xlu0 %4688 }
 0x53a   :  { %v4367_v60 = vadd.f32 %v4366_v54, %v4324_v22  ;;  %v4694_v5 = vrot.slane %v4689_v42, %v7820_v14 }
 0x53b   :  { %v4368_v55 = vpop.f32.mrf.mxu0 }
 0x53c   :  { %v4369_v36 = vadd.f32 %v4368_v55, %v4326_v45 }
 0x53d   :  { %v4370_v29 = vpop.f32.mrf.mxu0 }
 0x53e   :  { %v4371_v53 = vadd.f32 %v4370_v29, %v4328_v9 }
 0x567   :  { %v4407_v4 = vpop.f32.mrf.mxu1 }
 0x568   :  { %v4408_v1 = vadd.f32 %v4407_v4, %v4365_v49 }
 0x569   :  { %v4409_v50 = vpop.f32.mrf.mxu1 }
 0x56a   :  { %v4410_v32 = vadd.f32 %v4409_v50, %v4367_v60 }
 0x56b   :  { %v4411_v8 = vpop.f32.mrf.mxu1 }
 0x56c   :  { %v4412_v17 = vadd.f32 %v4411_v8, %v4369_v36 }
 0x56d   :  { %v4413_v38 = vpop.f32.mrf.mxu1 }
 0x56e   :  { %v4414_v11 = vadd.f32 %v4413_v38, %v4371_v53 }
 0x577   :  { %v4450_v43 = vpop.f32.mrf.mxu0 }
 0x578   :  { %v4451_v44 = vadd.f32 %v4450_v43, %v4408_v1 }
 0x579   :  { %v4452_v46 = vpop.f32.mrf.mxu0 }
 0x57a   :  { %v4453_v58 = vadd.f32 %v4452_v46, %v4410_v32 }
 0x57b   :  { %v4454_v61 = vpop.f32.mrf.mxu0 }
 0x57c   :  { %v4455_v23 = vadd.f32 %v4454_v61, %v4412_v17 }
 0x57d   :  { %v4456_v33 = vpop.f32.mrf.mxu0 }
 0x57e   :  { %v4457_v16 = vadd.f32 %v4456_v33, %v4414_v11 }
 0x5a7   :  { %v4493_v21 = vpop.f32.mrf.mxu1 }
 0x5a8   :  { %v4494_v39 = vadd.f32 %v4493_v21, %v4451_v44 }
 0x5a9   :  { %v4495_v41 = vpop.f32.mrf.mxu1 }
 0x5aa   :  { %v4496_v56 = vadd.f32 %v4495_v41, %v4453_v58 }
 0x5ab   :  { %v4497_v40 = vpop.f32.mrf.mxu1 }
 0x5ac   :  { %v4498_v34 = vadd.f32 %v4497_v40, %v4455_v23 }
 0x5ad   :  { %v4499_v59 = vpop.f32.mrf.mxu1 }
 0x5ae   :  { %v4500_v2 = vadd.f32 %v4499_v59, %v4457_v16  ;;  %v4502_v15 = vpack.c.bf16 %v4498_v34, %v4494_v39 }
 0x5b0   :  { %v4503_v26 = vpack.c.bf16 %v4500_v2, %v4496_v56  ;;  %v4504_v13 = vmax.bf16 %v7610_v19, %v4502_v15 }
 0x5b2   :  { %v4505_v12 = vmax.bf16 %v7610_v19, %v4503_v26 }
 0x5b4   :  { %4673 = vmatprep.mubr.bf16.mxu0 %v4505_v12 }
 0x5b5   :  { %4674 = vmatmul.mubr.bf16.vlgmr.msra.gmra.mxu0 %v4504_v13 }
 0x675   :  { %v5199_v27 = vpop.f32.mrf.mxu0 }
 0x677   :  { %v5200_v63 = vpop.f32.mrf.mxu0 }
 0x678   :  { %v5201_v48 = vadd.f32 %v5200_v63, %v5199_v27 }
 0x679   :  { %v5202_v25 = vpop.f32.mrf.mxu0 }
 0x67a   :  { %v4676_v35 = vadd.f32 %v5201_v48, %v5165_v62 }
 0x67b   :  { %v5203_v57 = vpop.f32.mrf.mxu0 }
 0x67c   :  { %v5204_v24 = vadd.f32 %v5203_v57, %v5202_v25 }
 0x67e   :  { %v4679_v52 = vadd.f32 %v5204_v24, %v5165_v62 }
 0x680   :  { %v4682_v6 = vpack.c.bf16 %v4679_v52, %v4676_v35 }
 0x682   :  { %v4683_v31 = vmax.bf16 %v7610_v19, %v4682_v6 }
 0x684   :  { %5208 = vmatpush3.bf16.xpose.msra.mxu1 %v4683_v31 }
 0x68b   :  { %5210 = vmatmul.mubr.bf16.vlgmr.msra.gmra.mxu1 %v4684_v20 }
 0x74b   :  { %v4729_v28 = vpop.f32.mrf.mxu1 }
 0x74c   :  { %v4730_v0 = vadd.f32 %v4729_v28, %v4694_v5 }
 0x74d   :  { %v5211_v54 = vpop.f32.mrf.mxu1 }
 0x74e   :  { %v5182_v18 = vmul.f32 -1.442695, %v4730_v0 }
 0x74f   :  { %v4732_v55 = vpop.f32.mrf.mxu1 }
 0x750   :  { %5811 = vpow2.f32 %v5182_v18 }
 0x751   :  { %v5212_v4 = vpop.f32.mrf.mxu1 }
 0x75d   :  { %v5812_v29 = vpop.eup %5811 }
 0x75e   :  { %v4738_v50 = vadd.f32 1.0, %v5812_v29 }
 0x760   :  { %5813 = vrcp.f32 %v4738_v50 }
 0x76d   :  { %v5814_v19 = vpop.eup %5813 }
 0x76e   :  { %4742 = vst.msk [vmem:[#allocation14] sm:$0x1] %vm4741_vm4, %v5814_v19 }
 0x76f   :  { %5962 = shalt.err (!%p5959_p6)
}
 0x770   :  { %4752 = dma.vmem_to_hbm [thread:$0]  %s4750_s27, 16, %s7598_s13, [#allocation5]  }
 0x771   :  { %5979 = dma.done.wait [#allocation5], 16  }
 0x772   :  { %5980 = vsyncadd [#allocation5], 4294967280 }
 0x773   :  { %4756 = vsyncpa [#allocation4], 1 }
 0x774   :  { %4757 = vsyncpa [#allocation7], 1 }
 0x775   :  { %4758 = vsyncpa [#allocation10], 1 }
 0x776   :  { %4759 = vsyncpa [#allocation13], 1 }
 0x777   :  { %4760 = vsyncpa [#allocation5], 1 }

</bundles_post_ra>
